<compile_context>
chip_gen: v5e
topology: v5e:2x2
jax: 0.10.0
libtpu: 0.0.40
codegen_flags: <defaults>
</compile_context>

<pallas_src>
import functools

import jax
import jax.numpy as jnp
from jax.experimental import pallas as pl
from jax.experimental.pallas import tpu as pltpu


def _subword_embed_kernel(ids_ref, emb_ref, out_ref):
    # ids_ref : (P*S, BP)   int32     -- shifted token ids, one column per packed word
    # emb_ref : (P*V, P*D)  f32/bf16  -- block-diagonal embedding table kron(I_P, E)
    # out_ref : (BP, P*D)   f32       -- P summed word embeddings per row (lane dense)
    pv = emb_ref.shape[0]

    ids = ids_ref[...]                                            # (PS, BP)
    vocab = jax.lax.broadcasted_iota(jnp.int32, (1, 1, pv), 2)    # (1, 1, PV)
    # One broadcasted compare over every subword slot, then reduce the subword
    # axis -> per-packed-word histogram of (shifted) token ids.
    one_hot = (ids[:, :, None] == vocab).astype(jnp.float32)      # (PS, BP, PV)
    counts = one_hot.sum(axis=0)                                  # (BP, PV)

    # Gather + subword sum == counts @ block-diagonal table (counts are exact ints).
    out_ref[...] = jnp.dot(counts.astype(emb_ref.dtype), emb_ref[...],
                           preferred_element_type=jnp.float32)


@functools.partial(jax.jit, static_argnames=("block_words", "use_bf16_matmul"))
def subword_embedding_forward(token_ids, embedding_table, *, block_words=512,
                              use_bf16_matmul=False):
    """token_ids: int (..., W, S); embedding_table: f32 (V, D).
    Returns f32 (..., W, D) = sum over the subword axis of the embeddings
    (PyTorch `subwordembedding` forward with sumfirst=True, padding_idx=0).
    Out-of-range ids are silently dropped (PyTorch would raise)."""
    *lead, s = token_ids.shape
    v, d = embedding_table.shape

    # Pack P consecutive words per kernel row so the output last dim is a full
    # 128-lane slab; fall back to P = 1 when D does not divide 128.
    p = 128 // d if (d < 128 and 128 % d == 0) else 1
    ps, pv, dp = p * s, p * v, p * d

    # Packed rows per grid step: multiple of 128 so every BlockSpec dim is
    # (8,128)-aligned; >=128 packed rows amortizes per-step overhead.
    block_packed = max(128, (max(block_words, 1) // p) // 128 * 128)
    words_per_block = block_packed * p

    flat_ids = token_ids.reshape(-1, s).astype(jnp.int32)         # (N, S)
    n = flat_ids.shape[0]
    n_pad = pl.cdiv(n, words_per_block) * words_per_block
    if n_pad != n:
        flat_ids = jnp.pad(flat_ids, ((0, n_pad - n), (0, 0)))    # pad with id 0
    npk = n_pad // p                                              # packed rows

    # Drop out-of-range ids (map them to -1, which matches no histogram column).
    valid = (flat_ids >= 0) & (flat_ids < v)

    # Shift slot q's ids by q*V so one histogram covers all P packed words.
    packed = flat_ids.reshape(npk, p, s)
    offsets = (jnp.arange(p, dtype=jnp.int32) * v)[None, :, None]
    shifted = jnp.where(valid.reshape(npk, p, s), packed + offsets, -1)
    ids_kernel = shifted.reshape(npk, ps).T                       # (P*S, NPK)

    # Block-diagonal table kron(I_P, E): (P*V, P*D); diagonal block q holds E.
    emb_blk = jnp.kron(jnp.eye(p, dtype=embedding_table.dtype), embedding_table)
    if use_bf16_matmul:   # counts are exact small ints; only E loses precision
        emb_blk = emb_blk.astype(jnp.bfloat16)

    # Explicit VMEM budget with headroom (tiles + one-hot temp), capped for v7x.
    needed = (2 * ps * block_packed * 4                      # ids (double buffered)
              + 2 * block_packed * dp * 4                    # out (double buffered)
              + 2 * pv * dp * emb_blk.dtype.itemsize         # table
              + ps * block_packed * pv * 4                   # one-hot temp
              + 2 * block_packed * pv * 4)                   # counts
    vmem_limit = min(max(int(1.5 * needed) + (4 << 20), 16 << 20), 64 << 20)

    grid = (npk // block_packed,)
    out_packed = pl.pallas_call(
        _subword_embed_kernel,
        out_shape=jax.ShapeDtypeStruct((npk, dp), jnp.float32),
        grid_spec=pltpu.PrefetchScalarGridSpec(
            num_scalar_prefetch=0,
            grid=grid,
            in_specs=[
                pl.BlockSpec((ps, block_packed), lambda i: (0, i)),
                pl.BlockSpec((pv, dp), lambda i: (0, 0)),
            ],
            out_specs=pl.BlockSpec((block_packed, dp), lambda i: (i, 0)),
        ),
        compiler_params=pltpu.CompilerParams(
            dimension_semantics=("parallel",),
            vmem_limit_bytes=vmem_limit,
        ),
    )(ids_kernel, emb_blk)

    out = out_packed.reshape(n_pad, d)[:n]                        # unpack (row-major)
    return out.reshape(*lead, d)


def _reference(token_ids, embedding_table):
    # Pure-JAX reference of the PyTorch forward (sumfirst=True).
    gathered = jnp.take(embedding_table, token_ids, axis=0)       # (..., W, S, D)
    return gathered.sum(axis=-2)


if __name__ == "__main__":
    # Module config (synthetic, deterministic init — no checkpoint load).
    num_embeddings = 64
    embedding_dim = 32
    padding_idx = 0

    key = jax.random.PRNGKey(0)
    k_w, k_ids = jax.random.split(key)

    # Embedding weight ~ N(0,1) like torch.nn.Embedding, padding row zeroed.
    weight = jax.random.normal(k_w, (num_embeddings, embedding_dim), jnp.float32)
    weight = weight.at[padding_idx].set(0.0)

    # token_ids: (batch=2, words=8, subwords=4), with some padding tokens (0).
    batch, words, subwords = 2, 8, 4
    token_ids = jax.random.randint(
        k_ids, (batch, words, subwords), 0, num_embeddings, dtype=jnp.int32
    )

    out = subword_embedding_forward(token_ids, weight)
    out = jax.block_until_ready(out)

    ref = _reference(token_ids, weight)
    assert out.shape == (batch, words, embedding_dim)
    assert jnp.allclose(out, ref, atol=1e-5, rtol=1e-5), "mismatch vs reference"

    print("KERNEL_OK")
</pallas_src>

<mosaic_0001>
module attributes {stable_mosaic.version = 11 : i64} {
  func.func @_subword_embed_kernel(%arg0: i32, %arg1: memref<16x128xi32, #tpu.memory_space<vmem>>, %arg2: memref<256x128xf32, #tpu.memory_space<vmem>>, %arg3: memref<128x128xf32, #tpu.memory_space<vmem>>) attributes {dimension_semantics = [#tpu.dimension_semantics<parallel>], iteration_bounds = array<i64: 1>, scalar_prefetch = 0 : i64, scratch_operands = 0 : i64, tpu.core_type = #tpu.core_type<tc>, window_params = [{transform_indices = @transform_0, window_bounds = array<i64: 16, 128>}, {pipeline_mode = #tpu.pipeline_mode<synchronous>, transform_indices = @transform_1, window_bounds = array<i64: 256, 128>}, {transform_indices = @transform_2, window_bounds = array<i64: 128, 128>}]} {
    %c0 = arith.constant 0 : index
    %c0_0 = arith.constant 0 : index
    %0 = vector.load %arg1[%c0, %c0_0] : memref<16x128xi32, #tpu.memory_space<vmem>>, vector<16x128xi32>
    %1 = tpu.iota {dimensions = array<i32: 2>} : vector<1x1x256xi32>
    %2 = vector.shape_cast %0 : vector<16x128xi32> to vector<16x128x1xi32>
    %3 = vector.broadcast %2 : vector<16x128x1xi32> to vector<16x128x256xi32>
    %4 = vector.broadcast %1 : vector<1x1x256xi32> to vector<16x128x256xi32>
    %5 = arith.cmpi eq, %3, %4 : vector<16x128x256xi32>
    %6 = arith.extui %5 : vector<16x128x256xi1> to vector<16x128x256xi32>
    %7 = arith.sitofp %6 : vector<16x128x256xi32> to vector<16x128x256xf32>
    %cst = arith.constant dense<0.000000e+00> : vector<128x256xf32>
    %8 = vector.multi_reduction <add>, %7, %cst [0] : vector<16x128x256xf32> to vector<128x256xf32>
    %c0_1 = arith.constant 0 : index
    %c0_2 = arith.constant 0 : index
    %9 = vector.load %arg2[%c0_1, %c0_2] : memref<256x128xf32, #tpu.memory_space<vmem>>, vector<256x128xf32>
    %cst_3 = arith.constant dense<0.000000e+00> : vector<128x128xf32>
    %10 = tpu.matmul %8, %9, %cst_3 {dimension_numbers = #tpu.dot_dimension_numbers<[1], [0], [0], [1], [0, 0, 1, 1], [], []>} : vector<128x256xf32>, vector<256x128xf32>, vector<128x128xf32> -> vector<128x128xf32>
    %c0_4 = arith.constant 0 : index
    %c0_5 = arith.constant 0 : index
    %11 = vector.load %arg3[%c0_4, %c0_5] : memref<128x128xf32, #tpu.memory_space<vmem>>, vector<128x128xf32>
    tpu.vector_store %arg3[%c0_4, %c0_5], %10 {strides = array<i32>} : memref<128x128xf32, #tpu.memory_space<vmem>>, vector<128x128xf32>,
    return
  }
  func.func @transform_0(%arg0: i32) -> (i32, i32) {
    %c0_i32 = arith.constant 0 : i32
    %c0_i32_0 = arith.constant 0 : i32
    return %c0_i32, %arg0 : i32, i32
  }
  func.func @transform_1(%arg0: i32) -> (i32, i32) {
    %c0_i32 = arith.constant 0 : i32
    %c0_i32_0 = arith.constant 0 : i32
    %c0_i32_1 = arith.constant 0 : i32
    return %c0_i32, %c0_i32_0 : i32, i32
  }
  func.func @transform_2(%arg0: i32) -> (i32, i32) {
    %c0_i32 = arith.constant 0 : i32
    %c0_i32_0 = arith.constant 0 : i32
    return %arg0, %c0_i32 : i32, i32
  }
}

</mosaic_0001>

<bundles_post_ra>
// kernel: subword_embedding_forward.1
= control target key start
LH: loop header
LB: loop body
LE: loop exit
PB: predicated region body
PF: predicated region fallthrough
CT: control target
= control target key end

     0   :  { %v13_v0 = vlaneseq  ;;  %v7435_v55 = vmov 0.0   ;;  %s7432_s0 = inlined_call_operand.vmem [shape: s32[16,128], index: 0, kind: input, shape index: {}]   ;;  %s7433_s1 = inlined_call_operand.vmem [shape: f32[256,128], index: 1, kind: input, shape index: {}]   ;;  %s7434_s2 = inlined_call_operand.vmem [shape: f32[128,128], index: 2, kind: output, shape index: {}]  }
   0x1   :  { %v4553_v5 = vld [vmem:[%s7432_s0] sm:$0xff]  ;;  %v4567_v8 = vld [vmem:[%s7432_s0 + $0x8] sm:$0xff] }
   0x2   :  { %v4536_v1 = vshrl.u32 %v13_v0, 7  ;;  %v4556_v6 = vperm.slane %v4553_v5, 3  ;;  %v4559_v7 = vperm.slane %v4553_v5, 0  ;;  %v4570_v9 = vperm.slane %v4567_v8, 0 }
   0x3   :  { %v4585_v12 = vperm.slane %v4553_v5, 4  ;;  %v4597_v15 = vperm.slane %v4567_v8, 1  ;;  %v4612_v18 = vperm.slane %v4553_v5, 5  ;;  %v4618_v19 = vperm.slane %v4567_v8, 2 }
   0x4   :  { %7544 = vst [vmem:[#allocation2_spill] sm:$0xff] %v4536_v1  ;;  %v4539_v2 = vadd.s32 120, %v4536_v1  ;;  %v4542_v3 = vadd.s32 32, %v4536_v1  ;;  %v4545_v4 = vadd.s32 16, %v4536_v1  ;;  %v4573_v10 = vadd.s32 40, %v4536_v1 }
   0x5   :  { %v4576_v11 = vadd.s32 24, %v4536_v1  ;;  %v4588_v13 = vadd.s32 56, %v4536_v1  ;;  %v4591_v14 = vadd.s32 48, %v4536_v1  ;;  %v4603_v16 = vadd.s32 80, %v4536_v1  ;;  %7548 = vst [vmem:[#allocation6_spill] sm:$0xff] %v4618_v19 }
   0x6   :  { %7545 = vst [vmem:[#allocation3_spill] sm:$0xff] %v4545_v4  ;;  %4361 = vset.pattern.permute.xlu0 %v4539_v2  ;;  %4313 = vset.pattern.permute.xlu2 %v4542_v3  ;;  %v4606_v17 = vadd.s32 72, %v4536_v1  ;;  %v4621_v20 = vadd.s32 96, %v4536_v1  ;;  %v4624_v21 = vadd.s32 88, %v4536_v1  ;;  %v4633_v22 = vperm.slane %v4553_v5, 1 }
   0x7   :  { %4311 = vset.pattern.permute.xlu1 %v4545_v4  ;;  %7546 = vst [vmem:[#allocation4_spill] sm:$0xff] %v4576_v11  ;;  %v4636_v23 = vadd.s32 112, %v4536_v1  ;;  %v4642_v24 = vperm.slane %v4553_v5, 6  ;;  %v4648_v25 = vperm.slane %v4567_v8, 3  ;;  %v4651_v26 = vadd.s32 8, %v4536_v1 }
   0x8   :  { %7547 = vst [vmem:[#allocation5_spill] sm:$0xff] %v4591_v14  ;;  %v4672_v27 = vadd.s32 64, %v4536_v1  ;;  %v4680_v29 = vperm.slane %v4553_v5, 2  ;;  %v4688_v31 = vperm.slane %v4553_v5, 7  ;;  %v4696_v33 = vperm.slane %v4567_v8, 4 }
   0x9   :  { %7549 = vst [vmem:[#allocation7_spill] sm:$0xff] %v4621_v20  ;;  %v4704_v35 = vadd.s32 104, %v4536_v1  ;;  %v4751_v46 = vperm.slane %v4567_v8, 5  ;;  %v4768_v51 = vand.u32 127, %v13_v0 }
   0xa   :  { %7550 = vst [vmem:[#allocation8_spill] sm:$0xff] %v4648_v25 }
   0xb   :  { %7551 = vst [vmem:[#allocation9_spill] sm:$0xff] %v4651_v26  ;;  %v4774_v53 = vadd.s32 128, %v4768_v51 }
   0xc   :  { %7552 = vst [vmem:[#allocation10_spill] sm:$0xff] %v4672_v27 }
   0xd   :  { %7556 = vst [vmem:[#allocation14_spill] sm:$0xff] %v4696_v33 }
   0xe   :  { %402 = vperm.xlu0 %4361, %v4556_v6   ;;  %45 = vperm.xlu2 %4313, %v4559_v7   ;;  %7558 = vst [vmem:[#allocation16_spill] sm:$0xff] %v4704_v35 }
   0xf   :  { %33 = vperm.xlu1 %4311, %v4559_v7   ;;  %7564 = vst [vmem:[#allocation22_spill] sm:$0xff] %v4751_v46 }
  0x16   :  { %887 = vperm.xlu0 %4361, %v4570_v9   ;;  %4314 = vset.pattern.permute.xlu2 %v4573_v10 }
  0x17   :  { %4312 = vset.pattern.permute.xlu1 %v4576_v11 }
  0x1e   :  { %4426 = vset.pattern.permute.xlu0 %v4542_v3  ;;  %51 = vperm.xlu2 %4314, %v4559_v7  }
  0x1f   :  { %39 = vperm.xlu1 %4312, %v4559_v7  }
  0x26   :  { %433 = vperm.xlu0 %4426, %v4585_v12   ;;  %4316 = vset.pattern.permute.xlu2 %v4588_v13 }
  0x27   :  { %4315 = vset.pattern.permute.xlu1 %v4591_v14 }
  0x2e   :  { %918 = vperm.xlu0 %4426, %v4597_v15   ;;  %63 = vperm.xlu2 %4316, %v4559_v7  }
  0x2f   :  { %57 = vperm.xlu1 %4315, %v4559_v7  }
  0x36   :  { %4431 = vset.pattern.permute.xlu0 %v4576_v11  ;;  %4318 = vset.pattern.permute.xlu2 %v4603_v16 }
  0x37   :  { %4317 = vset.pattern.permute.xlu1 %v4606_v17 }
  0x3e   :  { %524 = vperm.xlu0 %4431, %v4612_v18   ;;  %81 = vperm.xlu2 %4318, %v4559_v7  }
  0x3f   :  { %75 = vperm.xlu1 %4317, %v4559_v7  }
  0x46   :  { %1009 = vperm.xlu0 %4431, %v4618_v19   ;;  %4320 = vset.pattern.permute.xlu2 %v4621_v20 }
  0x47   :  { %4319 = vset.pattern.permute.xlu1 %v4624_v21 }
  0x4e   :  { %4444 = vset.pattern.permute.xlu0 %v4545_v4  ;;  %93 = vperm.xlu2 %4320, %v4559_v7  }
  0x4f   :  { %87 = vperm.xlu1 %4319, %v4559_v7  }
  0x56   :  { %130 = vperm.xlu0 %4444, %v4633_v22   ;;  %4322 = vset.pattern.permute.xlu2 %v4539_v2 }
  0x57   :  { %4321 = vset.pattern.permute.xlu1 %v4636_v23 }
  0x5e   :  { %615 = vperm.xlu0 %4444, %v4642_v24   ;;  %111 = vperm.xlu2 %4322, %v4559_v7  }
  0x5f   :  { %105 = vperm.xlu1 %4321, %v4559_v7  }
  0x66   :  { %1100 = vperm.xlu0 %4444, %v4648_v25   ;;  %4324 = vset.pattern.permute.xlu2 %v4651_v26 }
  0x67   :  { %4323 = vset.pattern.permute.xlu1 %v4536_v1 }
  0x68   :  { %v4727_v39 = vpop.permute.xlu2 %45 }
  0x69   :  { %7561 = vst [vmem:[#allocation19_spill] sm:$0xff] %v4727_v39 }
  0x6e   :  { %4457 = vset.pattern.permute.xlu0 %v4588_v13  ;;  %124 = vperm.xlu2 %4324, %v4633_v22  }
  0x6f   :  { %118 = vperm.xlu1 %4323, %v4633_v22  }
  0x76   :  { %160 = vperm.xlu0 %4457, %v4633_v22   ;;  %4326 = vset.pattern.permute.xlu2 %v4542_v3 }
  0x77   :  { %4325 = vset.pattern.permute.xlu1 %v4576_v11 }
  0x78   :  { %v4734_v41 = vpop.permute.xlu2 %51 }
  0x7e   :  { %645 = vperm.xlu0 %4457, %v4642_v24   ;;  %142 = vperm.xlu2 %4326, %v4633_v22  }
  0x7f   :  { %136 = vperm.xlu1 %4325, %v4633_v22  }
  0x80   :  { %v4674_v28 = vpop.permute.xlu0 %402 }
  0x81   :  { %7553 = vst [vmem:[#allocation11_spill] sm:$0xff] %v4674_v28 }
  0x86   :  { %1130 = vperm.xlu0 %4457, %v4648_v25   ;;  %4328 = vset.pattern.permute.xlu2 %v4591_v14 }
  0x87   :  { %4327 = vset.pattern.permute.xlu1 %v4573_v10 }
  0x88   :  { %v4684_v30 = vpop.permute.xlu0 %887  ;;  %v4741_v43 = vpop.permute.xlu2 %63 }
  0x89   :  { %7554 = vst [vmem:[#allocation12_spill] sm:$0xff] %v4684_v30 }
  0x8e   :  { %4462 = vset.pattern.permute.xlu0 %v4651_v26  ;;  %154 = vperm.xlu2 %4328, %v4633_v22  }
  0x8f   :  { %148 = vperm.xlu1 %4327, %v4633_v22  }
  0x96   :  { %27 = vperm.xlu0 %4462, %v4559_v7   ;;  %4330 = vset.pattern.permute.xlu2 %v4606_v17 }
  0x97   :  { %4329 = vset.pattern.permute.xlu1 %v4672_v27 }
  0x98   :  { %v4693_v32 = vpop.permute.xlu0 %433  ;;  %v4748_v45 = vpop.permute.xlu2 %81 }
  0x99   :  { %7555 = vst [vmem:[#allocation13_spill] sm:$0xff] %v4693_v32 }
  0x9a   :  { %7563 = vst [vmem:[#allocation21_spill] sm:$0xff] %v4748_v45 }
  0x9e   :  { %221 = vperm.xlu0 %4462, %v4680_v29   ;;  %172 = vperm.xlu2 %4330, %v4633_v22  }
  0x9f   :  { %166 = vperm.xlu1 %4329, %v4633_v22  }
  0xa0   :  { %v4701_v34 = vpop.permute.xlu0 %918 }
  0xa1   :  { %7557 = vst [vmem:[#allocation15_spill] sm:$0xff] %v4701_v34 }
  0xa6   :  { %706 = vperm.xlu0 %4462, %v4688_v31   ;;  %4332 = vset.pattern.permute.xlu2 %v4624_v21 }
  0xa7   :  { %4331 = vset.pattern.permute.xlu1 %v4603_v16 }
  0xa8   :  { %v4758_v48 = vpop.permute.xlu2 %93 }
  0xa9   :  { %7565 = vst [vmem:[#allocation23_spill] sm:$0xff] %v4758_v48 }
  0xae   :  { %1191 = vperm.xlu0 %4462, %v4696_v33   ;;  %184 = vperm.xlu2 %4332, %v4633_v22  }
  0xaf   :  { %178 = vperm.xlu1 %4331, %v4633_v22  }
  0xb0   :  { %v4709_v36 = vpop.permute.xlu0 %524 }
  0xb1   :  { %7559 = vst [vmem:[#allocation17_spill] sm:$0xff] %v4709_v36 }
  0xb6   :  { %4471 = vset.pattern.permute.xlu0 %v4591_v14  ;;  %4334 = vset.pattern.permute.xlu2 %v4636_v23 }
  0xb7   :  { %4333 = vset.pattern.permute.xlu1 %v4704_v35 }
  0xb8   :  { %v4714_v37 = vpop.permute.xlu0 %1009  ;;  %v4765_v50 = vpop.permute.xlu2 %111 }
  0xb9   :  { %7560 = vst [vmem:[#allocation18_spill] sm:$0xff] %v4714_v37 }
  0xba   :  { %7567 = vst [vmem:[#allocation25_spill] sm:$0xff] %v4765_v50 }
  0xbe   :  { %251 = vperm.xlu0 %4471, %v4680_v29   ;;  %202 = vperm.xlu2 %4334, %v4633_v22  }
  0xbf   :  { %196 = vperm.xlu1 %4333, %v4633_v22  }
  0xc6   :  { %736 = vperm.xlu0 %4471, %v4688_v31   ;;  %4336 = vset.pattern.permute.xlu2 %v4536_v1 }
  0xc7   :  { %4335 = vset.pattern.permute.xlu1 %v4539_v2 }
  0xc8   :  { %v4722_v38 = vpop.permute.xlu0 %130  ;;  %v125_v54 = vpop.permute.xlu2 %124 }
  0xc9   :  { %vm1602_vm2 = vcmp.eq.s32.totalorder %v125_v54, %v4768_v51  ;;  %vm1603_vm3 = vcmp.eq.s32.totalorder %v125_v54, %v4774_v53  ;;  %v4798_v54 = vpop.permute.xlu1 %33  ;;  %vm1604_vm14 = vcmp.eq.s32.totalorder %v4722_v38, %v4768_v51  ;;  %vm1605_vm15 = vcmp.eq.s32.totalorder %v4722_v38, %v4774_v53 }
  0xca   :  { %v3800_v58 = vsel %vm1602_vm2, 1.0, %v7435_v55  ;;  %v3801_v59 = vsel %vm1603_vm3, 1.0, %v7435_v55 }
  0xce   :  { %1221 = vperm.xlu0 %4471, %v4696_v33   ;;  %215 = vperm.xlu2 %4336, %v4680_v29  }
  0xcf   :  { %208 = vperm.xlu1 %4335, %v4633_v22  }
  0xd0   :  { %v4729_v40 = vpop.permute.xlu0 %615 }
  0xd6   :  { %4476 = vset.pattern.permute.xlu0 %v4536_v1  ;;  %4338 = vset.pattern.permute.xlu2 %v4576_v11 }
  0xd7   :  { %4337 = vset.pattern.permute.xlu1 %v4545_v4 }
  0xd8   :  { %v4736_v42 = vpop.permute.xlu0 %1100 }
  0xd9   :  { %7562 = vst [vmem:[#allocation20_spill] sm:$0xff] %v4736_v42 }
  0xde   :  { %21 = vperm.xlu0 %4476, %v4559_v7   ;;  %233 = vperm.xlu2 %4338, %v4680_v29  }
  0xdf   :  { %227 = vperm.xlu1 %4337, %v4680_v29  }
  0xe6   :  { %312 = vperm.xlu0 %4476, %v4556_v6   ;;  %4340 = vset.pattern.permute.xlu2 %v4573_v10 }
  0xe7   :  { %4339 = vset.pattern.permute.xlu1 %v4542_v3 }
  0xe8   :  { %v4743_v44 = vpop.permute.xlu0 %160 }
  0xee   :  { %797 = vperm.xlu0 %4476, %v4570_v9   ;;  %245 = vperm.xlu2 %4340, %v4680_v29  }
  0xef   :  { %239 = vperm.xlu1 %4339, %v4680_v29  }
  0xf0   :  { %v4753_v47 = vpop.permute.xlu0 %645 }
  0xf6   :  { %1282 = vperm.xlu0 %4476, %v4751_v46   ;;  %4342 = vset.pattern.permute.xlu2 %v4672_v27 }
  0xf7   :  { %4341 = vset.pattern.permute.xlu1 %v4588_v13 }
  0xf8   :  { %v4762_v49 = vpop.permute.xlu0 %1130 }
  0xf9   :  { %7566 = vst [vmem:[#allocation24_spill] sm:$0xff] %v4762_v49 }
  0xfe   :  { %4485 = vset.pattern.permute.xlu0 %v4573_v10  ;;  %263 = vperm.xlu2 %4342, %v4680_v29  }
  0xff   :  { %257 = vperm.xlu1 %4341, %v4680_v29  }
 0x106   :  { %342 = vperm.xlu0 %4485, %v4556_v6   ;;  %4344 = vset.pattern.permute.xlu2 %v4603_v16 }
 0x107   :  { %4343 = vset.pattern.permute.xlu1 %v4606_v17 }
 0x108   :  { %v28_v52 = vpop.permute.xlu0 %27 }
 0x109   :  { %vm1570_vm0 = vcmp.eq.s32.totalorder %v28_v52, %v4768_v51  ;;  %vm1571_vm1 = vcmp.eq.s32.totalorder %v28_v52, %v4774_v53 }
 0x10a   :  { %v3768_v56 = vsel %vm1570_vm0, 1.0, %v7435_v55  ;;  %v3769_v57 = vsel %vm1571_vm1, 1.0, %v7435_v55  ;;  %vm1572_vm0 = vcmp.eq.s32.totalorder %v4798_v54, %v4768_v51  ;;  %vm1573_vm1 = vcmp.eq.s32.totalorder %v4798_v54, %v4774_v53 }
 0x10b   :  { %v3134_v61 = vadd.f32 %v3800_v58, %v3768_v56  ;;  %v3149_v62 = vadd.f32 %v3801_v59, %v3769_v57  ;;  %v4805_v57 = vpop.permute.xlu1 %39  ;;  %v4812_v59 = vpop.permute.xlu2 %142 }
 0x10c   :  { %7569 = vst [vmem:[#allocation27_spill] sm:$0xff] %v4812_v59 }
 0x10e   :  { %827 = vperm.xlu0 %4485, %v4570_v9   ;;  %275 = vperm.xlu2 %4344, %v4680_v29  }
 0x10f   :  { %269 = vperm.xlu1 %4343, %v4680_v29  }
 0x110   :  { %v222_v60 = vpop.permute.xlu0 %221 }
 0x111   :  { %vm1634_vm4 = vcmp.eq.s32.totalorder %v222_v60, %v4768_v51  ;;  %vm1635_vm5 = vcmp.eq.s32.totalorder %v222_v60, %v4774_v53 }
 0x112   :  { %v3832_v63 = vsel %vm1634_vm4, 1.0, %v7435_v55  ;;  %v3833_v0 = vsel %vm1635_vm5, 1.0, %v7435_v55 }
 0x113   :  { %v4791_v5 = vadd.f32 %v3832_v63, %v3134_v61  ;;  %v4793_v52 = vadd.f32 %v3833_v0, %v3149_v62  ;;  %v4814_v60 = vpop.permute.xlu1 %57  ;;  %v4819_v61 = vpop.permute.xlu2 %154  ;;  %v4829_v0 = vperm.slane %v4567_v8, 7 }
 0x115   :  { %7571 = vst [vmem:[#allocation29_spill] sm:$0xff] %v4829_v0 }
 0x116   :  { %1312 = vperm.xlu0 %4485, %v4751_v46   ;;  %4346 = vset.pattern.permute.xlu2 %v4704_v35 }
 0x117   :  { %4345 = vset.pattern.permute.xlu1 %v4621_v20 }
 0x118   :  { %v4803_v56 = vpop.permute.xlu0 %706 }
 0x11b   :  { %v4823_v63 = vpop.permute.xlu1 %75  ;;  %v4831_v55 = vpop.permute.xlu2 %172 }
 0x11c   :  { %7570 = vst [vmem:[#allocation28_spill] sm:$0xff] %v4823_v63 }
 0x11d   :  { %7572 = vst [vmem:[#allocation30_spill] sm:$0xff] %v4831_v55 }
 0x11e   :  { %4490 = vset.pattern.permute.xlu0 %v4672_v27  ;;  %293 = vperm.xlu2 %4346, %v4680_v29  }
 0x11f   :  { %287 = vperm.xlu1 %4345, %v4680_v29  }
 0x120   :  { %v4810_v58 = vpop.permute.xlu0 %1191 }
 0x121   :  { %7568 = vst [vmem:[#allocation26_spill] sm:$0xff] %v4810_v58 }
 0x123   :  { %v4835_v58 = vpop.permute.xlu1 %87  ;;  %v4840_v30 = vpop.permute.xlu2 %184 }
 0x124   :  { %7573 = vst [vmem:[#allocation31_spill] sm:$0xff] %v4835_v58 }
 0x125   :  { %7574 = vst [vmem:[#allocation32_spill] sm:$0xff] %v4840_v30 }
 0x126   :  { %69 = vperm.xlu0 %4490, %v4559_v7   ;;  %4348 = vset.pattern.permute.xlu2 %v4539_v2 }
 0x127   :  { %4347 = vset.pattern.permute.xlu1 %v4636_v23 }
 0x12b   :  { %v4842_v28 = vpop.permute.xlu1 %105  ;;  %v4849_v49 = vpop.permute.xlu2 %202 }
 0x12c   :  { %7575 = vst [vmem:[#allocation33_spill] sm:$0xff] %v4842_v28 }
 0x12d   :  { %7577 = vst [vmem:[#allocation35_spill] sm:$0xff] %v4849_v49 }
 0x12e   :  { %554 = vperm.xlu0 %4490, %v4612_v18   ;;  %305 = vperm.xlu2 %4348, %v4680_v29  }
 0x12f   :  { %299 = vperm.xlu1 %4347, %v4680_v29  }
 0x130   :  { %v4821_v62 = vpop.permute.xlu0 %251 }
 0x133   :  { %v119_v55 = vpop.permute.xlu1 %118  ;;  %v216_v59 = vpop.permute.xlu2 %215 }
 0x134   :  { %vm1600_vm6 = vcmp.eq.s32.totalorder %v119_v55, %v4768_v51  ;;  %vm1601_vm7 = vcmp.eq.s32.totalorder %v119_v55, %v4774_v53  ;;  %vm1632_vm10 = vcmp.eq.s32.totalorder %v216_v59, %v4768_v51  ;;  %vm1633_vm11 = vcmp.eq.s32.totalorder %v216_v59, %v4774_v53 }
 0x136   :  { %1039 = vperm.xlu0 %4490, %v4618_v19   ;;  %4350 = vset.pattern.permute.xlu2 %v4545_v4 }
 0x137   :  { %4349 = vset.pattern.permute.xlu1 %v4651_v26 }
 0x138   :  { %v4833_v46 = vpop.permute.xlu0 %736 }
 0x13e   :  { %1524 = vperm.xlu0 %4490, %v4829_v0   ;;  %324 = vperm.xlu2 %4350, %v4556_v6  }
 0x13f   :  { %318 = vperm.xlu1 %4349, %v4556_v6  }
 0x140   :  { %v4846_v8 = vpop.permute.xlu0 %1221 }
 0x141   :  { %7576 = vst [vmem:[#allocation34_spill] sm:$0xff] %v4846_v8  ;;  %v7578_v8 = vmov 0.0  }
 0x142   :  { %v3798_v63 = vsel %vm1600_vm6, 1.0, %v7578_v8  ;;  %v3799_v34 = vsel %vm1601_vm7, 1.0, %v7578_v8  ;;  %v3831_v55 = vsel %vm1633_vm11, 1.0, %v7578_v8  ;;  %v3803_v38 = vsel %vm1605_vm15, 1.0, %v7578_v8 }
 0x143   :  { %v3770_v54 = vsel %vm1572_vm0, 1.0, %v7578_v8  ;;  %vm1583_vm15 = vcmp.eq.s32.totalorder %v4741_v43, %v4774_v53 }
 0x146   :  { %4495 = vset.pattern.permute.xlu0 %v4606_v17  ;;  %4352 = vset.pattern.permute.xlu2 %v4542_v3 }
 0x147   :  { %4351 = vset.pattern.permute.xlu1 %v4576_v11 }
 0x14e   :  { %463 = vperm.xlu0 %4495, %v4585_v12   ;;  %336 = vperm.xlu2 %4352, %v4556_v6  }
 0x14f   :  { %330 = vperm.xlu1 %4351, %v4556_v6  }
 0x150   :  { %v22_v50 = vpop.permute.xlu0 %21 }
 0x151   :  { %vm1568_vm8 = vcmp.eq.s32.totalorder %v22_v50, %v4768_v51  ;;  %vm1569_vm9 = vcmp.eq.s32.totalorder %v22_v50, %v4774_v53  ;;  %v3830_v50 = vsel %vm1632_vm10, 1.0, %v7578_v8 }
 0x152   :  { %v3766_v28 = vsel %vm1568_vm8, 1.0, %v7578_v8  ;;  %v3767_v49 = vsel %vm1569_vm9, 1.0, %v7578_v8  ;;  %vm1764_vm8 = vcmp.eq.s32.totalorder %v4729_v40, %v4768_v51  ;;  %vm1765_vm9 = vcmp.eq.s32.totalorder %v4729_v40, %v4774_v53 }
 0x153   :  { %v3104_v45 = vadd.f32 %v3798_v63, %v3766_v28  ;;  %v3119_v32 = vadd.f32 %v3799_v34, %v3767_v49 }
 0x155   :  { %v3105_v42 = vadd.f32 %v3830_v50, %v3104_v45  ;;  %v3120_v48 = vadd.f32 %v3831_v55, %v3119_v32 }
 0x156   :  { %948 = vperm.xlu0 %4495, %v4597_v15   ;;  %4354 = vset.pattern.permute.xlu2 %v4588_v13 }
 0x157   :  { %4353 = vset.pattern.permute.xlu1 %v4591_v14 }
 0x158   :  { %v313_v39 = vpop.permute.xlu0 %312 }
 0x159   :  { %vm1664_vm12 = vcmp.eq.s32.totalorder %v313_v39, %v4768_v51  ;;  %vm1665_vm13 = vcmp.eq.s32.totalorder %v313_v39, %v4774_v53 }
 0x15a   :  { %v3862_v28 = vsel %vm1664_vm12, 1.0, %v7578_v8  ;;  %v3863_v34 = vsel %vm1665_vm13, 1.0, %v7578_v8  ;;  %vm1614_vm12 = vcmp.eq.s32.totalorder %v4743_v44, %v4768_v51  ;;  %vm1615_vm13 = vcmp.eq.s32.totalorder %v4743_v44, %v4774_v53 }
 0x15b   :  { %v4873_v49 = vadd.f32 %v3862_v28, %v3105_v42  ;;  %v4875_v59 = vadd.f32 %v3863_v34, %v3120_v48  ;;  %v3813_v44 = vsel %vm1615_vm13, 1.0, %v7578_v8 }
 0x15e   :  { %1530 = vperm.xlu0 %4495, %v4829_v0   ;;  %354 = vperm.xlu2 %4354, %v4556_v6  }
 0x15f   :  { %348 = vperm.xlu1 %4353, %v4556_v6  }
 0x166   :  { %4498 = vset.pattern.permute.xlu0 %v4603_v16  ;;  %4356 = vset.pattern.permute.xlu2 %v4606_v17 }
 0x167   :  { %4355 = vset.pattern.permute.xlu1 %v4672_v27 }
 0x16e   :  { %372 = vperm.xlu0 %4498, %v4556_v6   ;;  %366 = vperm.xlu2 %4356, %v4556_v6  }
 0x16f   :  { %360 = vperm.xlu1 %4355, %v4556_v6  }
 0x176   :  { %857 = vperm.xlu0 %4498, %v4570_v9   ;;  %4358 = vset.pattern.permute.xlu2 %v4621_v20 }
 0x177   :  { %4357 = vset.pattern.permute.xlu1 %v4624_v21 }
 0x17e   :  { %1536 = vperm.xlu0 %4498, %v4829_v0   ;;  %384 = vperm.xlu2 %4358, %v4556_v6  }
 0x17f   :  { %378 = vperm.xlu1 %4357, %v4556_v6  }
 0x186   :  { %4501 = vset.pattern.permute.xlu0 %v4624_v21  ;;  %4360 = vset.pattern.permute.xlu2 %v4636_v23 }
 0x187   :  { %4359 = vset.pattern.permute.xlu1 %v4704_v35 }
 0x18e   :  { %281 = vperm.xlu0 %4501, %v4680_v29   ;;  %396 = vperm.xlu2 %4360, %v4556_v6   ;;  %v4921_v29 = vpop.permute.xlu2 %233 }
 0x18f   :  { %390 = vperm.xlu1 %4359, %v4556_v6   ;;  %v4919_v6 = vpop.permute.xlu1 %136  ;;  %7579 = vst [vmem:[#allocation36_spill] sm:$0xff] %v4921_v29 }
 0x196   :  { %766 = vperm.xlu0 %4501, %v4688_v31   ;;  %4363 = vset.pattern.permute.xlu2 %v4651_v26  ;;  %v4928_v32 = vpop.permute.xlu2 %245 }
 0x197   :  { %4362 = vset.pattern.permute.xlu1 %v4536_v1 }
 0x19e   :  { %1251 = vperm.xlu0 %4501, %v4696_v33   ;;  %415 = vperm.xlu2 %4363, %v4585_v12   ;;  %v4935_v42 = vpop.permute.xlu2 %263 }
 0x19f   :  { %409 = vperm.xlu1 %4362, %v4585_v12   ;;  %7581 = vst [vmem:[#allocation38_spill] sm:$0xff] %v4935_v42 }
 0x1a6   :  { %1542 = vperm.xlu0 %4501, %v4829_v0   ;;  %4365 = vset.pattern.permute.xlu2 %v4576_v11  ;;  %v4942_v48 = vpop.permute.xlu2 %275 }
 0x1a7   :  { %4364 = vset.pattern.permute.xlu1 %v4545_v4  ;;  %7583 = vst [vmem:[#allocation40_spill] sm:$0xff] %v4942_v48 }
 0x1ae   :  { %4504 = vset.pattern.permute.xlu0 %v4621_v20  ;;  %427 = vperm.xlu2 %4365, %v4585_v12   ;;  %v4949_v50 = vpop.permute.xlu2 %293 }
 0x1af   :  { %421 = vperm.xlu1 %4364, %v4585_v12   ;;  %7585 = vst [vmem:[#allocation42_spill] sm:$0xff] %v4949_v50 }
 0x1b6   :  { %190 = vperm.xlu0 %4504, %v4633_v22   ;;  %4367 = vset.pattern.permute.xlu2 %v4591_v14  ;;  %v4926_v22 = vpop.permute.xlu1 %148  ;;  %v4956_v55 = vpop.permute.xlu2 %305 }
 0x1b7   :  { %4366 = vset.pattern.permute.xlu1 %v4573_v10  ;;  %7587 = vst [vmem:[#allocation44_spill] sm:$0xff] %v4956_v55 }
 0x1be   :  { %675 = vperm.xlu0 %4504, %v4642_v24   ;;  %445 = vperm.xlu2 %4367, %v4585_v12   ;;  %v4933_v39 = vpop.permute.xlu1 %166  ;;  %v4963_v34 = vpop.permute.xlu2 %324 }
 0x1bf   :  { %439 = vperm.xlu1 %4366, %v4585_v12   ;;  %7580 = vst [vmem:[#allocation37_spill] sm:$0xff] %v4933_v39  ;;  %vm1668_vm4 = vcmp.eq.s32.totalorder %v4963_v34, %v4768_v51  ;;  %vm1669_vm5 = vcmp.eq.s32.totalorder %v4963_v34, %v4774_v53 }
 0x1c0   :  { %v3867_v36 = vsel %vm1669_vm5, 1.0, %v7578_v8 }
 0x1c6   :  { %1160 = vperm.xlu0 %4504, %v4648_v25   ;;  %4369 = vset.pattern.permute.xlu2 %v4672_v27  ;;  %v4940_v45 = vpop.permute.xlu1 %178 }
 0x1c7   :  { %4368 = vset.pattern.permute.xlu1 %v4588_v13  ;;  %7582 = vst [vmem:[#allocation39_spill] sm:$0xff] %v4940_v45 }
 0x1ce   :  { %1548 = vperm.xlu0 %4504, %v4829_v0   ;;  %457 = vperm.xlu2 %4369, %v4585_v12   ;;  %v4947_v63 = vpop.permute.xlu1 %196 }
 0x1cf   :  { %451 = vperm.xlu1 %4368, %v4585_v12   ;;  %7584 = vst [vmem:[#allocation41_spill] sm:$0xff] %v4947_v63 }
 0x1d6   :  { %4507 = vset.pattern.permute.xlu0 %v4704_v35  ;;  %4371 = vset.pattern.permute.xlu2 %v4624_v21 }
 0x1d7   :  { %4370 = vset.pattern.permute.xlu1 %v4603_v16 }
 0x1de   :  { %99 = vperm.xlu0 %4507, %v4559_v7   ;;  %475 = vperm.xlu2 %4371, %v4585_v12   ;;  %v4954_v7 = vpop.permute.xlu1 %208 }
 0x1df   :  { %469 = vperm.xlu1 %4370, %v4585_v12   ;;  %7586 = vst [vmem:[#allocation43_spill] sm:$0xff] %v4954_v7  ;;  %v4970_v7 = vpop.permute.xlu2 %336 }
 0x1e0   :  { %7589 = vst [vmem:[#allocation46_spill] sm:$0xff] %v4970_v7 }
 0x1e6   :  { %584 = vperm.xlu0 %4507, %v4612_v18   ;;  %4373 = vset.pattern.permute.xlu2 %v4704_v35  ;;  %v4961_v28 = vpop.permute.xlu1 %227 }
 0x1e7   :  { %4372 = vset.pattern.permute.xlu1 %v4621_v20  ;;  %v4977_v48 = vpop.permute.xlu2 %354  ;;  %vm1636_vm2 = vcmp.eq.s32.totalorder %v4961_v28, %v4768_v51  ;;  %vm1637_vm3 = vcmp.eq.s32.totalorder %v4961_v28, %v4774_v53 }
 0x1e8   :  { %v3834_v28 = vsel %vm1636_vm2, 1.0, %v7578_v8  ;;  %vm1678_vm2 = vcmp.eq.s32.totalorder %v4977_v48, %v4768_v51 }
 0x1ee   :  { %1069 = vperm.xlu0 %4507, %v4618_v19   ;;  %487 = vperm.xlu2 %4373, %v4585_v12   ;;  %v4968_v33 = vpop.permute.xlu1 %239  ;;  %v3866_v19 = vsel %vm1668_vm4, 1.0, %v7578_v8 }
 0x1ef   :  { %481 = vperm.xlu1 %4372, %v4585_v12   ;;  %7588 = vst [vmem:[#allocation45_spill] sm:$0xff] %v4968_v33  ;;  %v4984_v33 = vpop.permute.xlu2 %366 }
 0x1f0   :  { %7591 = vst [vmem:[#allocation48_spill] sm:$0xff] %v4984_v33 }
 0x1f6   :  { %1554 = vperm.xlu0 %4507, %v4829_v0   ;;  %4375 = vset.pattern.permute.xlu2 %v4536_v1  ;;  %v4975_v55 = vpop.permute.xlu1 %257 }
 0x1f7   :  { %4374 = vset.pattern.permute.xlu1 %v4539_v2  ;;  %v4991_v7 = vpop.permute.xlu2 %384  ;;  %vm1646_vm0 = vcmp.eq.s32.totalorder %v4975_v55, %v4768_v51 }
 0x1f8   :  { %7593 = vst [vmem:[#allocation50_spill] sm:$0xff] %v4991_v7 }
 0x1fe   :  { %4510 = vset.pattern.permute.xlu0 %v4636_v23  ;;  %506 = vperm.xlu2 %4375, %v4612_v18   ;;  %v4982_v45 = vpop.permute.xlu1 %269 }
 0x1ff   :  { %499 = vperm.xlu1 %4374, %v4585_v12   ;;  %7590 = vst [vmem:[#allocation47_spill] sm:$0xff] %v4982_v45  ;;  %v4998_v45 = vpop.permute.xlu2 %396 }
 0x200   :  { %7595 = vst [vmem:[#allocation52_spill] sm:$0xff] %v4998_v45 }
 0x206   :  { %493 = vperm.xlu0 %4510, %v4585_v12   ;;  %4377 = vset.pattern.permute.xlu2 %v4545_v4  ;;  %v4989_v12 = vpop.permute.xlu1 %287 }
 0x207   :  { %4376 = vset.pattern.permute.xlu1 %v4651_v26  ;;  %7592 = vst [vmem:[#allocation49_spill] sm:$0xff] %v4989_v12  ;;  %v5005_v12 = vpop.permute.xlu2 %415 }
 0x208   :  { %vm1699_vm13 = vcmp.eq.s32.totalorder %v5005_v12, %v4774_v53 }
 0x20e   :  { %518 = vperm.xlu2 %4377, %v4612_v18   ;;  %978 = vperm.xlu0 %4510, %v4597_v15   ;;  %v4996_v25 = vpop.permute.xlu1 %299 }
 0x20f   :  { %512 = vperm.xlu1 %4376, %v4612_v18   ;;  %7594 = vst [vmem:[#allocation51_spill] sm:$0xff] %v4996_v25  ;;  %v5011_v50 = vpop.permute.xlu2 %427 }
 0x210   :  { %7597 = vst [vmem:[#allocation54_spill] sm:$0xff] %v5011_v50 }
 0x216   :  { %4379 = vset.pattern.permute.xlu2 %v4573_v10  ;;  %1560 = vperm.xlu0 %4510, %v4829_v0   ;;  %v5003_v33 = vpop.permute.xlu1 %318 }
 0x217   :  { %4378 = vset.pattern.permute.xlu1 %v4542_v3 }
 0x21e   :  { %536 = vperm.xlu2 %4379, %v4612_v18   ;;  %4515 = vset.pattern.permute.xlu0 %v4539_v2  ;;  %v5009_v7 = vpop.permute.xlu1 %330 }
 0x21f   :  { %530 = vperm.xlu1 %4378, %v4612_v18   ;;  %7596 = vst [vmem:[#allocation53_spill] sm:$0xff] %v5009_v7 }
 0x226   :  { %4381 = vset.pattern.permute.xlu2 %v4588_v13  ;;  %1566 = vperm.xlu0 %4515, %v4829_v0   ;;  %v5015_v45 = vpop.permute.xlu1 %348  ;;  %v5017_v0 = vpop.permute.xlu2 %445 }
 0x227   :  { %4380 = vset.pattern.permute.xlu1 %v4591_v14 }
 0x22e   :  { %548 = vperm.xlu2 %4381, %v4612_v18   ;;  %v5021_v25 = vpop.permute.xlu1 %360  ;;  %v5023_v63 = vpop.permute.xlu2 %457 }
 0x22f   :  { %542 = vperm.xlu1 %4380, %v4612_v18   ;;  %7598 = vst [vmem:[#allocation55_spill] sm:$0xff] %v5021_v25 }
 0x230   :  { %7599 = vst [vmem:[#allocation56_spill] sm:$0xff] %v5023_v63 }
 0x236   :  { %4383 = vset.pattern.permute.xlu2 %v4603_v16  ;;  %v5027_v42 = vpop.permute.xlu1 %378 }
 0x237   :  { %4382 = vset.pattern.permute.xlu1 %v4606_v17  ;;  %7600 = vst [vmem:[#allocation57_spill] sm:$0xff] %v5027_v42  ;;  %v3771_v42 = vsel %vm1573_vm1, 1.0, %v7578_v8  ;;  %vm1647_vm1 = vcmp.eq.s32.totalorder %v4975_v55, %v4774_v53  ;;  %v3844_v55 = vsel %vm1646_vm0, 1.0, %v7578_v8  ;;  %vm1794_vm0 = vcmp.eq.s32.totalorder %v4803_v56, %v4768_v51 }
 0x238   :  { %v5029_v30 = vpop.permute.xlu2 %475  ;;  %v3179_v37 = vadd.f32 %v3803_v38, %v3771_v42 }
 0x239   :  { %7601 = vst [vmem:[#allocation58_spill] sm:$0xff] %v5029_v30 }
 0x23e   :  { %566 = vperm.xlu2 %4383, %v4612_v18   ;;  %v5033_v39 = vpop.permute.xlu1 %390 }
 0x23f   :  { %560 = vperm.xlu1 %4382, %v4612_v18   ;;  %7602 = vst [vmem:[#allocation59_spill] sm:$0xff] %v5033_v39 }
 0x246   :  { %4385 = vset.pattern.permute.xlu2 %v4621_v20  ;;  %v5039_v63 = vpop.permute.xlu1 %409 }
 0x247   :  { %4384 = vset.pattern.permute.xlu1 %v4624_v21 }
 0x248   :  { %v5035_v58 = vpop.permute.xlu2 %487 }
 0x249   :  { %7603 = vst [vmem:[#allocation60_spill] sm:$0xff] %v5035_v58  ;;  %v3802_v58 = vsel %vm1604_vm14, 1.0, %v7578_v8  ;;  %vm1582_vm14 = vcmp.eq.s32.totalorder %v4741_v43, %v4768_v51 }
 0x24a   :  { %v3164_v25 = vadd.f32 %v3802_v58, %v3770_v54  ;;  %v3963_v54 = vsel %vm1765_vm9, 1.0, %v7578_v8  ;;  %v3780_v43 = vsel %vm1582_vm14, 1.0, %v7578_v8 }
 0x24c   :  { %v3165_v50 = vadd.f32 %v3834_v28, %v3164_v25 }
 0x24e   :  { %578 = vperm.xlu2 %4385, %v4612_v18   ;;  %v422_v39 = vpop.permute.xlu1 %421  ;;  %v3166_v58 = vadd.f32 %v3866_v19, %v3165_v50 }
 0x24f   :  { %572 = vperm.xlu1 %4384, %v4612_v18   ;;  %vm1700_vm6 = vcmp.eq.s32.totalorder %v422_v39, %v4768_v51  ;;  %vm1701_vm7 = vcmp.eq.s32.totalorder %v422_v39, %v4774_v53 }
 0x250   :  { %v3898_v7 = vsel %vm1700_vm6, 1.0, %v7578_v8  ;;  %v3899_v29 = vsel %vm1701_vm7, 1.0, %v7578_v8  ;;  %vm1774_vm6 = vcmp.eq.s32.totalorder %v4753_v47, %v4768_v51  ;;  %vm1775_vm7 = vcmp.eq.s32.totalorder %v4753_v47, %v4774_v53 }
 0x251   :  { %v3167_v38 = vadd.f32 %v3898_v7, %v3166_v58  ;;  %v3812_v7 = vsel %vm1614_vm12, 1.0, %v7578_v8  ;;  %vm1698_vm12 = vcmp.eq.s32.totalorder %v5005_v12, %v4768_v51 }
 0x256   :  { %4387 = vset.pattern.permute.xlu2 %v4539_v2 }
 0x257   :  { %4386 = vset.pattern.permute.xlu1 %v4636_v23 }
 0x258   :  { %v5057_v30 = vpop.permute.xlu2 %506 }
 0x25e   :  { %596 = vperm.xlu2 %4387, %v4612_v18  }
 0x25f   :  { %590 = vperm.xlu1 %4386, %v4612_v18   ;;  %v3835_v18 = vsel %vm1637_vm3, 1.0, %v7578_v8  ;;  %vm1679_vm3 = vcmp.eq.s32.totalorder %v4977_v48, %v4774_v53 }
 0x260   :  { %v3180_v34 = vadd.f32 %v3835_v18, %v3179_v37  ;;  %v3962_v37 = vsel %vm1764_vm8, 1.0, %v7578_v8 }
 0x262   :  { %v3181_v39 = vadd.f32 %v3867_v36, %v3180_v34 }
 0x264   :  { %v3182_v25 = vadd.f32 %v3899_v29, %v3181_v39  ;;  %v5093_v29 = vpop.permute.xlu1 %439  ;;  %v3781_v39 = vsel %vm1583_vm15, 1.0, %v7578_v8 }
 0x266   :  { %4389 = vset.pattern.permute.xlu2 %v4651_v26 }
 0x267   :  { %4388 = vset.pattern.permute.xlu1 %v4536_v1 }
 0x268   :  { %v519_v42 = vpop.permute.xlu2 %518 }
 0x269   :  { %vm1732_vm10 = vcmp.eq.s32.totalorder %v519_v42, %v4768_v51  ;;  %vm1733_vm11 = vcmp.eq.s32.totalorder %v519_v42, %v4774_v53  ;;  %v3845_v42 = vsel %vm1647_vm1, 1.0, %v7578_v8  ;;  %vm1795_vm1 = vcmp.eq.s32.totalorder %v4803_v56, %v4774_v53 }
 0x26a   :  { %v3930_v28 = vsel %vm1732_vm10, 1.0, %v7578_v8  ;;  %v3931_v18 = vsel %vm1733_vm11, 1.0, %v7578_v8  ;;  %vm1666_vm10 = vcmp.eq.s32.totalorder %v5003_v33, %v4768_v51  ;;  %vm1667_vm11 = vcmp.eq.s32.totalorder %v5003_v33, %v4774_v53 }
 0x26b   :  { %v3168_v40 = vadd.f32 %v3930_v28, %v3167_v38  ;;  %v3183_v19 = vadd.f32 %v3931_v18, %v3182_v25  ;;  %v3314_v38 = vadd.f32 %v3812_v7, %v3780_v43  ;;  %v3329_v25 = vadd.f32 %v3813_v44, %v3781_v39 }
 0x26c   :  { %v452_v34 = vpop.permute.xlu1 %451  ;;  %v3972_v39 = vsel %vm1774_vm6, 1.0, %v7578_v8  ;;  %v3896_v33 = vsel %vm1698_vm12, 1.0, %v7578_v8  ;;  %vm1580_vm6 = vcmp.eq.s32.totalorder %v4814_v60, %v4768_v51  ;;  %vm1708_vm12 = vcmp.eq.s32.totalorder %v5017_v0, %v4768_v51 }
 0x26d   :  { %v5085_v36 = vadd.f32 %v3962_v37, %v3168_v40  ;;  %v5087_v50 = vadd.f32 %v3963_v54, %v3183_v19  ;;  %vm1710_vm4 = vcmp.eq.s32.totalorder %v452_v34, %v4768_v51  ;;  %vm1711_vm5 = vcmp.eq.s32.totalorder %v452_v34, %v4774_v53 }
 0x26e   :  { %609 = vperm.xlu2 %4389, %v4642_v24   ;;  %v3876_v37 = vsel %vm1678_vm2, 1.0, %v7578_v8  ;;  %v3877_v54 = vsel %vm1679_vm3, 1.0, %v7578_v8  ;;  %v3315_v28 = vadd.f32 %v3844_v55, %v3314_v38  ;;  %v3330_v48 = vadd.f32 %v3845_v42, %v3329_v25 }
 0x26f   :  { %603 = vperm.xlu1 %4388, %v4642_v24   ;;  %v3908_v18 = vsel %vm1710_vm4, 1.0, %v7578_v8  ;;  %v3909_v40 = vsel %vm1711_vm5, 1.0, %v7578_v8  ;;  %v3973_v55 = vsel %vm1775_vm7, 1.0, %v7578_v8  ;;  %vm1612_vm4 = vcmp.eq.s32.totalorder %v4819_v61, %v4768_v51 }
 0x270   :  { %v3316_v19 = vadd.f32 %v3876_v37, %v3315_v28  ;;  %v3331_v7 = vadd.f32 %v3877_v54, %v3330_v48  ;;  %vm1613_vm5 = vcmp.eq.s32.totalorder %v4819_v61, %v4774_v53  ;;  %vm1581_vm7 = vcmp.eq.s32.totalorder %v4814_v60, %v4774_v53 }
 0x271   :  { %v3778_v60 = vsel %vm1580_vm6, 1.0, %v7578_v8  ;;  %v3779_v61 = vsel %vm1581_vm7, 1.0, %v7578_v8  ;;  %vm1728_vm6 = vcmp.eq.s32.totalorder %v5057_v30, %v4768_v51  ;;  %vm1729_vm7 = vcmp.eq.s32.totalorder %v5057_v30, %v4774_v53 }
 0x272   :  { %v3317_v34 = vadd.f32 %v3908_v18, %v3316_v19  ;;  %v3332_v43 = vadd.f32 %v3909_v40, %v3331_v7 }
 0x274   :  { %v5151_v28 = vpop.permute.xlu1 %469 }
 0x275   :  { %7604 = vst [vmem:[#allocation61_spill] sm:$0xff] %v5151_v28 }
 0x276   :  { %4391 = vset.pattern.permute.xlu2 %v4542_v3 }
 0x277   :  { %4390 = vset.pattern.permute.xlu1 %v4576_v11 }
 0x278   :  { %v5111_v58 = vpop.permute.xlu2 %536 }
 0x27c   :  { %v5155_v48 = vpop.permute.xlu1 %481 }
 0x27e   :  { %627 = vperm.xlu2 %4391, %v4642_v24  }
 0x27f   :  { %621 = vperm.xlu1 %4390, %v4642_v24  }
 0x284   :  { %v5161_v40 = vpop.permute.xlu1 %499 }
 0x285   :  { %7606 = vst [vmem:[#allocation63_spill] sm:$0xff] %v5161_v40 }
 0x286   :  { %4393 = vset.pattern.permute.xlu2 %v4591_v14 }
 0x287   :  { %4392 = vset.pattern.permute.xlu1 %v4573_v10 }
 0x288   :  { %v549_v44 = vpop.permute.xlu2 %548 }
 0x289   :  { %vm1742_vm8 = vcmp.eq.s32.totalorder %v549_v44, %v4768_v51  ;;  %vm1743_vm9 = vcmp.eq.s32.totalorder %v549_v44, %v4774_v53 }
 0x28a   :  { %v3940_v42 = vsel %vm1742_vm8, 1.0, %v7578_v8  ;;  %v3941_v38 = vsel %vm1743_vm9, 1.0, %v7578_v8  ;;  %vm1644_vm8 = vcmp.eq.s32.totalorder %v4821_v62, %v4768_v51  ;;  %vm1645_vm9 = vcmp.eq.s32.totalorder %v4821_v62, %v4774_v53 }
 0x28b   :  { %v3318_v47 = vadd.f32 %v3940_v42, %v3317_v34  ;;  %v3333_v25 = vadd.f32 %v3941_v38, %v3332_v43  ;;  %v3864_v34 = vsel %vm1666_vm10, 1.0, %v7578_v8  ;;  %v3865_v43 = vsel %vm1667_vm11, 1.0, %v7578_v8 }
 0x28c   :  { %v513_v7 = vpop.permute.xlu1 %512  ;;  %v3151_v42 = vadd.f32 %v3865_v43, %v4793_v52  ;;  %v3992_v52 = vsel %vm1794_vm0, 1.0, %v7578_v8  ;;  %v3993_v43 = vsel %vm1795_vm1, 1.0, %v7578_v8  ;;  %vm1676_vm10 = vcmp.eq.s32.totalorder %v5015_v45, %v4768_v51 }
 0x28d   :  { %v5139_v37 = vadd.f32 %v3972_v39, %v3318_v47  ;;  %v5141_v54 = vadd.f32 %v3973_v55, %v3333_v25  ;;  %vm1730_vm14 = vcmp.eq.s32.totalorder %v513_v7, %v4768_v51  ;;  %vm1731_vm15 = vcmp.eq.s32.totalorder %v513_v7, %v4774_v53 }
 0x28e   :  { %639 = vperm.xlu2 %4393, %v4642_v24   ;;  %v3897_v39 = vsel %vm1699_vm13, 1.0, %v7578_v8  ;;  %v3136_v55 = vadd.f32 %v3864_v34, %v4791_v5  ;;  %v3928_v38 = vsel %vm1730_vm14, 1.0, %v7578_v8  ;;  %v3929_v12 = vsel %vm1731_vm15, 1.0, %v7578_v8 }
 0x28f   :  { %633 = vperm.xlu1 %4392, %v4642_v24   ;;  %v3152_v25 = vadd.f32 %v3897_v39, %v3151_v42  ;;  %vm1677_vm11 = vcmp.eq.s32.totalorder %v5015_v45, %v4774_v53  ;;  %v3842_v62 = vsel %vm1644_vm8, 1.0, %v7578_v8  ;;  %vm1709_vm13 = vcmp.eq.s32.totalorder %v5017_v0, %v4774_v53 }
 0x290   :  { %v3137_v47 = vadd.f32 %v3896_v33, %v3136_v55  ;;  %v3874_v45 = vsel %vm1676_vm10, 1.0, %v7578_v8  ;;  %vm1804_vm0 = vcmp.eq.s32.totalorder %v4833_v46, %v4768_v51  ;;  %vm1805_vm1 = vcmp.eq.s32.totalorder %v4833_v46, %v4774_v53 }
 0x291   :  { %v3153_v34 = vadd.f32 %v3929_v12, %v3152_v25 }
 0x292   :  { %v3138_v5 = vadd.f32 %v3928_v38, %v3137_v47 }
 0x294   :  { %v5207_v42 = vpop.permute.xlu1 %530 }
 0x295   :  { %7608 = vst [vmem:[#allocation65_spill] sm:$0xff] %v5207_v42 }
 0x296   :  { %4395 = vset.pattern.permute.xlu2 %v4606_v17 }
 0x297   :  { %4394 = vset.pattern.permute.xlu1 %v4672_v27 }
 0x298   :  { %v5157_v18 = vpop.permute.xlu2 %566 }
 0x299   :  { %7605 = vst [vmem:[#allocation62_spill] sm:$0xff] %v5157_v18  ;;  %v7638_v18 = vld [vmem:[#allocation53_spill] sm:$0xff] }
 0x29e   :  { %657 = vperm.xlu2 %4395, %v4642_v24  }
 0x29f   :  { %651 = vperm.xlu1 %4394, %v4642_v24  }
 0x2a1   :  { %v543_v38 = vpop.permute.xlu1 %542 }
 0x2a2   :  { %vm1740_vm14 = vcmp.eq.s32.totalorder %v543_v38, %v4768_v51  ;;  %vm1741_vm15 = vcmp.eq.s32.totalorder %v543_v38, %v4774_v53  ;;  %v4002_v38 = vsel %vm1804_vm0, 1.0, %v7578_v8  ;;  %vm1578_vm0 = vcmp.eq.s32.totalorder %v4734_v41, %v4768_v51 }
 0x2a3   :  { %v3939_v0 = vsel %vm1741_vm15, 1.0, %v7578_v8  ;;  %vm1611_vm15 = vcmp.eq.s32.totalorder %v4926_v22, %v4774_v53 }
 0x2a6   :  { %4397 = vset.pattern.permute.xlu2 %v4624_v21 }
 0x2a7   :  { %4396 = vset.pattern.permute.xlu1 %v4603_v16 }
 0x2a8   :  { %v5163_v19 = vpop.permute.xlu2 %578 }
 0x2ae   :  { %669 = vperm.xlu2 %4397, %v4642_v24  }
 0x2af   :  { %663 = vperm.xlu1 %4396, %v4642_v24  }
 0x2b6   :  { %4399 = vset.pattern.permute.xlu2 %v4636_v23 }
 0x2b7   :  { %4398 = vset.pattern.permute.xlu1 %v4704_v35 }
 0x2b8   :  { %v5171_v44 = vpop.permute.xlu2 %596 }
 0x2b9   :  { %7607 = vst [vmem:[#allocation64_spill] sm:$0xff] %v5171_v44 }
 0x2be   :  { %687 = vperm.xlu2 %4399, %v4642_v24  }
 0x2bf   :  { %681 = vperm.xlu1 %4398, %v4642_v24  }
 0x2c6   :  { %4401 = vset.pattern.permute.xlu2 %v4536_v1 }
 0x2c7   :  { %4400 = vset.pattern.permute.xlu1 %v4539_v2 }
 0x2c8   :  { %v610_v7 = vpop.permute.xlu2 %609 }
 0x2c9   :  { %vm1762_vm2 = vcmp.eq.s32.totalorder %v610_v7, %v4768_v51  ;;  %vm1763_vm3 = vcmp.eq.s32.totalorder %v610_v7, %v4774_v53  ;;  %v3875_v7 = vsel %vm1677_vm11, 1.0, %v7578_v8 }
 0x2ca   :  { %v3960_v44 = vsel %vm1762_vm2, 1.0, %v7578_v8  ;;  %v3961_v40 = vsel %vm1763_vm3, 1.0, %v7578_v8 }
 0x2cb   :  { %v3139_v56 = vadd.f32 %v3960_v44, %v3138_v5  ;;  %v3154_v33 = vadd.f32 %v3961_v40, %v3153_v34  ;;  %v3811_v40 = vsel %vm1613_vm5, 1.0, %v7578_v8  ;;  %v3843_v44 = vsel %vm1645_vm9, 1.0, %v7578_v8 }
 0x2cc   :  { %v3299_v25 = vadd.f32 %v3811_v40, %v3779_v61  ;;  %vm1697_vm5 = vcmp.eq.s32.totalorder %v5039_v63, %v4774_v53 }
 0x2cd   :  { %v5199_v39 = vadd.f32 %v3992_v52, %v3139_v56  ;;  %v5201_v55 = vadd.f32 %v3993_v43, %v3154_v33  ;;  %v3906_v52 = vsel %vm1708_vm12, 1.0, %v7578_v8  ;;  %v3907_v43 = vsel %vm1709_vm13, 1.0, %v7578_v8 }
 0x2ce   :  { %700 = vperm.xlu2 %4401, %v4688_v31   ;;  %v3300_v34 = vadd.f32 %v3843_v44, %v3299_v25 }
 0x2cf   :  { %693 = vperm.xlu1 %4400, %v4642_v24   ;;  %v3810_v24 = vsel %vm1612_vm4, 1.0, %v7578_v8  ;;  %vm1696_vm4 = vcmp.eq.s32.totalorder %v5039_v63, %v4768_v51  ;;  %v3926_v63 = vsel %vm1728_vm6, 1.0, %v7578_v8  ;;  %vm1706_vm6 = vcmp.eq.s32.totalorder %v5093_v29, %v4768_v51 }
 0x2d0   :  { %v3284_v47 = vadd.f32 %v3810_v24, %v3778_v60  ;;  %v3301_v33 = vadd.f32 %v3875_v7, %v3300_v34  ;;  %v3938_v24 = vsel %vm1740_vm14, 1.0, %v7578_v8  ;;  %vm1610_vm14 = vcmp.eq.s32.totalorder %v4926_v22, %v4768_v51 }
 0x2d1   :  { %v3776_v22 = vsel %vm1578_vm0, 1.0, %v7578_v8 }
 0x2d2   :  { %v3285_v5 = vadd.f32 %v3842_v62, %v3284_v47  ;;  %v3302_v60 = vadd.f32 %v3907_v43, %v3301_v33  ;;  %v4003_v47 = vsel %vm1805_vm1, 1.0, %v7578_v8  ;;  %vm1579_vm1 = vcmp.eq.s32.totalorder %v4734_v41, %v4774_v53 }
 0x2d4   :  { %v3286_v56 = vadd.f32 %v3874_v45, %v3285_v5  ;;  %v3303_v44 = vadd.f32 %v3939_v0, %v3302_v60  ;;  %v3894_v60 = vsel %vm1696_vm4, 1.0, %v7578_v8 }
 0x2d6   :  { %4403 = vset.pattern.permute.xlu2 %v4576_v11  ;;  %v3287_v40 = vadd.f32 %v3906_v52, %v3286_v56  ;;  %v5271_v52 = vpop.permute.xlu1 %560 }
 0x2d7   :  { %4402 = vset.pattern.permute.xlu1 %v4545_v4  ;;  %7610 = vst [vmem:[#allocation67_spill] sm:$0xff] %v5271_v52 }
 0x2d8   :  { %v5233_v12 = vpop.permute.xlu2 %627  ;;  %v3288_v62 = vadd.f32 %v3938_v24, %v3287_v40 }
 0x2d9   :  { %7609 = vst [vmem:[#allocation66_spill] sm:$0xff] %v5233_v12  ;;  %v7639_v12 = vld [vmem:[#allocation54_spill] sm:$0xff] }
 0x2de   :  { %718 = vperm.xlu2 %4403, %v4688_v31   ;;  %v5275_v43 = vpop.permute.xlu1 %572 }
 0x2df   :  { %712 = vperm.xlu1 %4402, %v4688_v31  }
 0x2e6   :  { %4405 = vset.pattern.permute.xlu2 %v4573_v10  ;;  %v5281_v33 = vpop.permute.xlu1 %590 }
 0x2e7   :  { %4404 = vset.pattern.permute.xlu1 %v4542_v3  ;;  %7612 = vst [vmem:[#allocation69_spill] sm:$0xff] %v5281_v33 }
 0x2e8   :  { %v640_v61 = vpop.permute.xlu2 %639 }
 0x2e9   :  { %vm1772_vm2 = vcmp.eq.s32.totalorder %v640_v61, %v4768_v51  ;;  %vm1773_vm3 = vcmp.eq.s32.totalorder %v640_v61, %v4774_v53  ;;  %v3895_v61 = vsel %vm1697_vm5, 1.0, %v7578_v8 }
 0x2ea   :  { %v3970_v25 = vsel %vm1772_vm2, 1.0, %v7578_v8  ;;  %v3971_v45 = vsel %vm1773_vm3, 1.0, %v7578_v8  ;;  %vm1642_vm2 = vcmp.eq.s32.totalorder %v4928_v32, %v4768_v51  ;;  %vm1643_vm3 = vcmp.eq.s32.totalorder %v4928_v32, %v4774_v53 }
 0x2eb   :  { %v3289_v46 = vadd.f32 %v3970_v25, %v3288_v62  ;;  %v3304_v7 = vadd.f32 %v3971_v45, %v3303_v44  ;;  %v3927_v62 = vsel %vm1729_vm7, 1.0, %v7578_v8  ;;  %v3107_v44 = vadd.f32 %v3894_v60, %v4873_v49 }
 0x2ec   :  { %v3840_v41 = vsel %vm1642_vm2, 1.0, %v7578_v8  ;;  %vm1707_vm7 = vcmp.eq.s32.totalorder %v5093_v29, %v4774_v53 }
 0x2ed   :  { %v5259_v5 = vadd.f32 %v4002_v38, %v3289_v46  ;;  %v5261_v34 = vadd.f32 %v4003_v47, %v3304_v7  ;;  %v3122_v38 = vadd.f32 %v3895_v61, %v4875_v59  ;;  %v798_v47 = vpop.permute.xlu0 %797  ;;  %v3108_v45 = vadd.f32 %v3926_v63, %v3107_v44 }
 0x2ee   :  { %730 = vperm.xlu2 %4405, %v4688_v31   ;;  %v604_v0 = vpop.permute.xlu1 %603  ;;  %vm1824_vm10 = vcmp.eq.s32.totalorder %v798_v47, %v4768_v51  ;;  %vm1825_vm11 = vcmp.eq.s32.totalorder %v798_v47, %v4774_v53  ;;  %v3905_v29 = vsel %vm1707_vm7, 1.0, %v7578_v8  ;;  %vm1607_vm7 = vcmp.eq.s32.totalorder %v4919_v6, %v4774_v53 }
 0x2ef   :  { %724 = vperm.xlu1 %4404, %v4688_v31   ;;  %vm1760_vm8 = vcmp.eq.s32.totalorder %v604_v0, %v4768_v51  ;;  %vm1761_vm9 = vcmp.eq.s32.totalorder %v604_v0, %v4774_v53  ;;  %v3123_v46 = vadd.f32 %v3927_v62, %v3122_v38  ;;  %v4022_v59 = vsel %vm1824_vm10, 1.0, %v7578_v8 }
 0x2f0   :  { %v3958_v25 = vsel %vm1760_vm8, 1.0, %v7578_v8  ;;  %v3959_v30 = vsel %vm1761_vm9, 1.0, %v7578_v8  ;;  %v4023_v60 = vsel %vm1825_vm11, 1.0, %v7578_v8  ;;  %vm1738_vm8 = vcmp.eq.s32.totalorder %v5111_v58, %v4768_v51 }
 0x2f1   :  { %v3109_v0 = vadd.f32 %v3958_v25, %v3108_v45  ;;  %v3124_v49 = vadd.f32 %v3959_v30, %v3123_v46  ;;  %v3809_v30 = vsel %vm1611_vm15, 1.0, %v7578_v8  ;;  %v3777_v45 = vsel %vm1579_vm1, 1.0, %v7578_v8 }
 0x2f2   :  { %v3841_v46 = vsel %vm1643_vm3, 1.0, %v7578_v8  ;;  %v3269_v32 = vadd.f32 %v3809_v30, %v3777_v45  ;;  %vm1739_vm9 = vcmp.eq.s32.totalorder %v5111_v58, %v4774_v53  ;;  %v3936_v30 = vsel %vm1738_vm8, 1.0, %v7578_v8 }
 0x2f3   :  { %vm1574_vm8 = vcmp.eq.s32.totalorder %v4805_v57, %v4768_v51 }
 0x2f5   :  { %v5323_v38 = vpop.permute.xlu0 %1282 }
 0x2f6   :  { %4407 = vset.pattern.permute.xlu2 %v4672_v27  ;;  %7614 = vst [vmem:[#allocation71_spill] sm:$0xff] %v5323_v38  ;;  %v5327_v25 = vpop.permute.xlu1 %621 }
 0x2f7   :  { %4406 = vset.pattern.permute.xlu1 %v4588_v13 }
 0x2f8   :  { %v5277_v56 = vpop.permute.xlu2 %657 }
 0x2f9   :  { %7611 = vst [vmem:[#allocation68_spill] sm:$0xff] %v5277_v56 }
 0x2fe   :  { %748 = vperm.xlu2 %4407, %v4688_v31  }
 0x2ff   :  { %742 = vperm.xlu1 %4406, %v4688_v31  }
 0x306   :  { %4409 = vset.pattern.permute.xlu2 %v4603_v16 }
 0x307   :  { %4408 = vset.pattern.permute.xlu1 %v4606_v17 }
 0x308   :  { %v5283_v24 = vpop.permute.xlu2 %669 }
 0x30e   :  { %760 = vperm.xlu2 %4409, %v4688_v31  }
 0x30f   :  { %754 = vperm.xlu1 %4408, %v4688_v31  }
 0x316   :  { %4411 = vset.pattern.permute.xlu2 %v4704_v35 }
 0x317   :  { %4410 = vset.pattern.permute.xlu1 %v4621_v20 }
 0x318   :  { %v5291_v40 = vpop.permute.xlu2 %687 }
 0x319   :  { %7613 = vst [vmem:[#allocation70_spill] sm:$0xff] %v5291_v40 }
 0x31e   :  { %778 = vperm.xlu2 %4411, %v4688_v31  }
 0x31f   :  { %772 = vperm.xlu1 %4410, %v4688_v31  }
 0x326   :  { %4413 = vset.pattern.permute.xlu2 %v4539_v2 }
 0x327   :  { %4412 = vset.pattern.permute.xlu1 %v4636_v23 }
 0x328   :  { %v701_v7 = vpop.permute.xlu2 %700 }
 0x329   :  { %vm1792_vm12 = vcmp.eq.s32.totalorder %v701_v7, %v4768_v51  ;;  %vm1793_vm13 = vcmp.eq.s32.totalorder %v701_v7, %v4774_v53 }
 0x32a   :  { %v3990_v61 = vsel %vm1792_vm12, 1.0, %v7578_v8  ;;  %v3991_v40 = vsel %vm1793_vm13, 1.0, %v7578_v8 }
 0x32b   :  { %v3110_v47 = vadd.f32 %v3990_v61, %v3109_v0  ;;  %v3125_v63 = vadd.f32 %v3991_v40, %v3124_v49  ;;  %v343_v40 = vpop.permute.xlu0 %342 }
 0x32c   :  { %vm1674_vm4 = vcmp.eq.s32.totalorder %v343_v40, %v4768_v51  ;;  %vm1675_vm5 = vcmp.eq.s32.totalorder %v343_v40, %v4774_v53 }
 0x32d   :  { %v5317_v62 = vadd.f32 %v4022_v59, %v3110_v47  ;;  %v5319_v44 = vadd.f32 %v4023_v60, %v3125_v63  ;;  %v3872_v0 = vsel %vm1674_vm4, 1.0, %v7578_v8  ;;  %v3873_v49 = vsel %vm1675_vm5, 1.0, %v7578_v8  ;;  %v634_v59 = vpop.permute.xlu1 %633 }
 0x32e   :  { %790 = vperm.xlu2 %4413, %v4688_v31   ;;  %v3270_v47 = vadd.f32 %v3841_v46, %v3269_v32  ;;  %v3904_v63 = vsel %vm1706_vm6, 1.0, %v7578_v8  ;;  %vm1770_vm10 = vcmp.eq.s32.totalorder %v634_v59, %v4768_v51  ;;  %vm1771_vm11 = vcmp.eq.s32.totalorder %v634_v59, %v4774_v53 }
 0x32f   :  { %784 = vperm.xlu1 %4412, %v4688_v31   ;;  %v3808_v31 = vsel %vm1610_vm14, 1.0, %v7578_v8  ;;  %v3969_v58 = vsel %vm1771_vm11, 1.0, %v7578_v8  ;;  %vm1606_vm6 = vcmp.eq.s32.totalorder %v4919_v6, %v4768_v51 }
 0x330   :  { %v3254_v7 = vadd.f32 %v3808_v31, %v3776_v22  ;;  %v3271_v31 = vadd.f32 %v3873_v49, %v3270_v47  ;;  %v3937_v22 = vsel %vm1739_vm9, 1.0, %v7578_v8  ;;  %vm1575_vm9 = vcmp.eq.s32.totalorder %v4805_v57, %v4774_v53 }
 0x331   :  { %v3773_v57 = vsel %vm1575_vm9, 1.0, %v7578_v8 }
 0x332   :  { %v3255_v61 = vadd.f32 %v3840_v41, %v3254_v7  ;;  %v3272_v41 = vadd.f32 %v3905_v29, %v3271_v31  ;;  %v3968_v7 = vsel %vm1770_vm10, 1.0, %v7578_v8 }
 0x333   :  { %v828_v46 = vpop.permute.xlu0 %827 }
 0x334   :  { %v3256_v40 = vadd.f32 %v3872_v0, %v3255_v61  ;;  %vm1834_vm12 = vcmp.eq.s32.totalorder %v828_v46, %v4768_v51  ;;  %vm1835_vm13 = vcmp.eq.s32.totalorder %v828_v46, %v4774_v53  ;;  %v3273_v0 = vadd.f32 %v3937_v22, %v3272_v41 }
 0x335   :  { %v4032_v47 = vsel %vm1834_vm12, 1.0, %v7578_v8  ;;  %v5397_v46 = vpop.permute.xlu1 %651 }
 0x336   :  { %4415 = vset.pattern.permute.xlu2 %v4545_v4  ;;  %v3257_v45 = vadd.f32 %v3904_v63, %v3256_v40  ;;  %v3274_v61 = vadd.f32 %v3969_v58, %v3273_v0  ;;  %v4033_v63 = vsel %vm1835_vm13, 1.0, %v7578_v8 }
 0x337   :  { %4414 = vset.pattern.permute.xlu1 %v4651_v26 }
 0x338   :  { %v5357_v60 = vpop.permute.xlu2 %718  ;;  %v3258_v32 = vadd.f32 %v3936_v30, %v3257_v45 }
 0x339   :  { %vm1799_vm9 = vcmp.eq.s32.totalorder %v5357_v60, %v4774_v53 }
 0x33a   :  { %v3259_v59 = vadd.f32 %v3968_v7, %v3258_v32 }
 0x33b   :  { %v5394_v41 = vpop.permute.xlu0 %1312 }
 0x33c   :  { %7615 = vst [vmem:[#allocation72_spill] sm:$0xff] %v5394_v41 }
 0x33d   :  { %v5403_v58 = vpop.permute.xlu1 %663 }
 0x33e   :  { %809 = vperm.xlu2 %4415, %v4570_v9   ;;  %7616 = vst [vmem:[#allocation73_spill] sm:$0xff] %v5403_v58 }
 0x33f   :  { %803 = vperm.xlu1 %4414, %v4570_v9  }
 0x343   :  { %v5401_v7 = vpop.permute.xlu0 %69 }
 0x345   :  { %v5409_v0 = vpop.permute.xlu1 %681 }
 0x346   :  { %4417 = vset.pattern.permute.xlu2 %v4542_v3 }
 0x347   :  { %4416 = vset.pattern.permute.xlu1 %v4576_v11 }
 0x348   :  { %v731_v49 = vpop.permute.xlu2 %730 }
 0x349   :  { %vm1802_vm14 = vcmp.eq.s32.totalorder %v731_v49, %v4768_v51  ;;  %vm1803_vm15 = vcmp.eq.s32.totalorder %v731_v49, %v4774_v53 }
 0x34a   :  { %v4000_v29 = vsel %vm1802_vm14, 1.0, %v7578_v8  ;;  %v4001_v40 = vsel %vm1803_vm15, 1.0, %v7578_v8  ;;  %vm1670_vm14 = vcmp.eq.s32.totalorder %v7638_v18, %v4768_v51  ;;  %vm1671_vm15 = vcmp.eq.s32.totalorder %v7638_v18, %v4774_v53 }
 0x34b   :  { %v3260_v31 = vadd.f32 %v4000_v29, %v3259_v59  ;;  %v3275_v30 = vadd.f32 %v4001_v40, %v3274_v61  ;;  %v5407_v32 = vpop.permute.xlu0 %554  ;;  %v3868_v18 = vsel %vm1670_vm14, 1.0, %v7578_v8  ;;  %v3869_v42 = vsel %vm1671_vm15, 1.0, %v7578_v8 }
 0x34d   :  { %v5381_v22 = vadd.f32 %v4032_v47, %v3260_v31  ;;  %v5383_v45 = vadd.f32 %v4033_v63, %v3275_v30  ;;  %v5415_v59 = vpop.permute.xlu1 %693 }
 0x34e   :  { %821 = vperm.xlu2 %4417, %v4570_v9   ;;  %7617 = vst [vmem:[#allocation74_spill] sm:$0xff] %v5415_v59 }
 0x34f   :  { %815 = vperm.xlu1 %4416, %v4570_v9  }
 0x353   :  { %v5417_v61 = vpop.permute.xlu0 %1039 }
 0x354   :  { %7618 = vst [vmem:[#allocation75_spill] sm:$0xff] %v5417_v61 }
 0x355   :  { %v5423_v63 = vpop.permute.xlu1 %712 }
 0x356   :  { %4419 = vset.pattern.permute.xlu2 %v4588_v13 }
 0x357   :  { %4418 = vset.pattern.permute.xlu1 %v4591_v14 }
 0x358   :  { %v5413_v49 = vpop.permute.xlu2 %748 }
 0x35b   :  { %v5425_v29 = vpop.permute.xlu0 %1524 }
 0x35c   :  { %7620 = vst [vmem:[#allocation77_spill] sm:$0xff] %v5425_v29 }
 0x35e   :  { %839 = vperm.xlu2 %4419, %v4570_v9  }
 0x35f   :  { %833 = vperm.xlu1 %4418, %v4570_v9  }
 0x361   :  { %v5431_v31 = vpop.permute.xlu1 %724 }
 0x362   :  { %7621 = vst [vmem:[#allocation78_spill] sm:$0xff] %v5431_v31 }
 0x363   :  { %v5434_v30 = vpop.permute.xlu0 %463 }
 0x364   :  { %7622 = vst [vmem:[#allocation79_spill] sm:$0xff] %v5434_v30 }
 0x366   :  { %4421 = vset.pattern.permute.xlu2 %v4606_v17 }
 0x367   :  { %4420 = vset.pattern.permute.xlu1 %v4672_v27 }
 0x368   :  { %v5421_v47 = vpop.permute.xlu2 %760 }
 0x369   :  { %7619 = vst [vmem:[#allocation76_spill] sm:$0xff] %v5421_v47 }
 0x36b   :  { %v5443_v38 = vpop.permute.xlu0 %948 }
 0x36c   :  { %7624 = vst [vmem:[#allocation81_spill] sm:$0xff] %v5443_v38 }
 0x36e   :  { %851 = vperm.xlu2 %4421, %v4570_v9  }
 0x36f   :  { %845 = vperm.xlu1 %4420, %v4570_v9  }
 0x371   :  { %v743_v41 = vpop.permute.xlu1 %742 }
 0x372   :  { %vm1806_vm0 = vcmp.eq.s32.totalorder %v743_v41, %v4768_v51  ;;  %vm1807_vm1 = vcmp.eq.s32.totalorder %v743_v41, %v4774_v53 }
 0x373   :  { %v4004_v56 = vsel %vm1806_vm0, 1.0, %v7578_v8  ;;  %v4005_v38 = vsel %vm1807_vm1, 1.0, %v7578_v8  ;;  %vm1702_vm0 = vcmp.eq.s32.totalorder %v7639_v12, %v4768_v51  ;;  %vm1703_vm1 = vcmp.eq.s32.totalorder %v7639_v12, %v4774_v53 }
 0x374   :  { %v3320_v52 = vadd.f32 %v4004_v56, %v5139_v37  ;;  %v3335_v30 = vadd.f32 %v4005_v38, %v5141_v54 }
 0x376   :  { %4423 = vset.pattern.permute.xlu2 %v4621_v20 }
 0x377   :  { %4422 = vset.pattern.permute.xlu1 %v4624_v21 }
 0x378   :  { %v5429_v40 = vpop.permute.xlu2 %778 }
 0x37e   :  { %869 = vperm.xlu2 %4423, %v4570_v9  }
 0x37f   :  { %863 = vperm.xlu1 %4422, %v4570_v9  }
 0x381   :  { %v5445_v61 = vpop.permute.xlu1 %754 }
 0x382   :  { %7625 = vst [vmem:[#allocation82_spill] sm:$0xff] %v5445_v61 }
 0x386   :  { %4425 = vset.pattern.permute.xlu2 %v4636_v23 }
 0x387   :  { %4424 = vset.pattern.permute.xlu1 %v4704_v35 }
 0x38e   :  { %881 = vperm.xlu2 %4425, %v4570_v9  }
 0x38f   :  { %875 = vperm.xlu1 %4424, %v4570_v9   ;;  %v5437_v9 = vpop.permute.xlu2 %790 }
 0x390   :  { %7623 = vst [vmem:[#allocation80_spill] sm:$0xff] %v5437_v9  ;;  %v5453_v9 = vpop.permute.xlu0 %1530 }
 0x391   :  { %v5451_v59 = vpop.permute.xlu1 %772  ;;  %7627 = vst [vmem:[#allocation84_spill] sm:$0xff] %v5453_v9 }
 0x396   :  { %4428 = vset.pattern.permute.xlu2 %v4651_v26 }
 0x397   :  { %4427 = vset.pattern.permute.xlu1 %v4536_v1 }
 0x398   :  { %v5441_v29 = vpop.permute.xlu2 %809  ;;  %v5473_v31 = vpop.permute.xlu0 %372 }
 0x399   :  { %7629 = vst [vmem:[#allocation86_spill] sm:$0xff] %v5473_v31 }
 0x39e   :  { %900 = vperm.xlu2 %4428, %v4597_v15  }
 0x39f   :  { %894 = vperm.xlu1 %4427, %v4597_v15  }
 0x3a0   :  { %v5477_v54 = vpop.permute.xlu0 %857 }
 0x3a1   :  { %v5463_v47 = vpop.permute.xlu1 %784  ;;  %7630 = vst [vmem:[#allocation87_spill] sm:$0xff] %v5477_v54 }
 0x3a2   :  { %7628 = vst [vmem:[#allocation85_spill] sm:$0xff] %v5463_v47 }
 0x3a6   :  { %4430 = vset.pattern.permute.xlu2 %v4576_v11 }
 0x3a7   :  { %4429 = vset.pattern.permute.xlu1 %v4545_v4 }
 0x3a8   :  { %v5449_v33 = vpop.permute.xlu2 %821 }
 0x3a9   :  { %7626 = vst [vmem:[#allocation83_spill] sm:$0xff] %v5449_v33 }
 0x3ae   :  { %912 = vperm.xlu2 %4430, %v4597_v15  }
 0x3af   :  { %906 = vperm.xlu1 %4429, %v4597_v15  }
 0x3b1   :  { %v804_v37 = vpop.permute.xlu1 %803 }
 0x3b2   :  { %vm1826_vm10 = vcmp.eq.s32.totalorder %v804_v37, %v4768_v51  ;;  %vm1827_vm11 = vcmp.eq.s32.totalorder %v804_v37, %v4774_v53 }
 0x3b3   :  { %v4025_v37 = vsel %vm1827_vm11, 1.0, %v7578_v8 }
 0x3b6   :  { %4433 = vset.pattern.permute.xlu2 %v4591_v14 }
 0x3b7   :  { %4432 = vset.pattern.permute.xlu1 %v4573_v10 }
 0x3b8   :  { %v840_v61 = vpop.permute.xlu2 %839 }
 0x3b9   :  { %vm1838_vm2 = vcmp.eq.s32.totalorder %v840_v61, %v4768_v51  ;;  %vm1839_vm3 = vcmp.eq.s32.totalorder %v840_v61, %v4774_v53 }
 0x3ba   :  { %v4036_v41 = vsel %vm1838_vm2, 1.0, %v7578_v8  ;;  %v4037_v9 = vsel %vm1839_vm3, 1.0, %v7578_v8 }
 0x3bb   :  { %v5469_v33 = vadd.f32 %v4036_v41, %v3320_v52  ;;  %v5471_v58 = vadd.f32 %v4037_v9, %v3335_v30  ;;  %v5484_v52 = vpop.permute.xlu0 %1536 }
 0x3bc   :  { %7631 = vst [vmem:[#allocation88_spill] sm:$0xff] %v5484_v52 }
 0x3be   :  { %930 = vperm.xlu2 %4433, %v4597_v15  }
 0x3bf   :  { %924 = vperm.xlu1 %4432, %v4597_v15  }
 0x3c1   :  { %v5481_v56 = vpop.permute.xlu1 %815 }
 0x3c2   :  { %vm1831_vm11 = vcmp.eq.s32.totalorder %v5481_v56, %v4774_v53 }
 0x3c3   :  { %v5499_v52 = vpop.permute.xlu0 %281 }
 0x3c6   :  { %4435 = vset.pattern.permute.xlu2 %v4672_v27 }
 0x3c7   :  { %4434 = vset.pattern.permute.xlu1 %v4588_v13 }
 0x3cb   :  { %v5505_v47 = vpop.permute.xlu0 %766 }
 0x3ce   :  { %942 = vperm.xlu2 %4435, %v4597_v15  }
 0x3cf   :  { %936 = vperm.xlu1 %4434, %v4597_v15  }
 0x3d1   :  { %v834_v38 = vpop.permute.xlu1 %833 }
 0x3d2   :  { %vm1836_vm4 = vcmp.eq.s32.totalorder %v834_v38, %v4768_v51  ;;  %vm1837_vm5 = vcmp.eq.s32.totalorder %v834_v38, %v4774_v53  ;;  %v5503_v38 = vpop.permute.xlu2 %851 }
 0x3d3   :  { %v4034_v61 = vsel %vm1836_vm4, 1.0, %v7578_v8  ;;  %v4035_v30 = vsel %vm1837_vm5, 1.0, %v7578_v8  ;;  %7632 = vst [vmem:[#allocation89_spill] sm:$0xff] %v5503_v38  ;;  %v4024_v38 = vsel %vm1826_vm10, 1.0, %v7578_v8  ;;  %vm1830_vm10 = vcmp.eq.s32.totalorder %v5481_v56, %v4768_v51 }
 0x3d4   :  { %v5492_v9 = vadd.f32 %v4034_v61, %v5259_v5  ;;  %v5495_v41 = vadd.f32 %v4035_v30, %v5261_v34  ;;  %v5511_v34 = vpop.permute.xlu0 %1251  ;;  %v3804_v30 = vsel %vm1606_vm6, 1.0, %v7578_v8  ;;  %vm1766_vm6 = vcmp.eq.s32.totalorder %v5327_v25, %v4768_v51 }
 0x3d5   :  { %7634 = vst [vmem:[#allocation91_spill] sm:$0xff] %v5511_v34  ;;  %v3805_v34 = vsel %vm1607_vm7, 1.0, %v7578_v8  ;;  %vm1767_vm7 = vcmp.eq.s32.totalorder %v5327_v25, %v4774_v53 }
 0x3d6   :  { %4437 = vset.pattern.permute.xlu2 %v4624_v21  ;;  %v3209_v54 = vadd.f32 %v3805_v34, %v3773_v57  ;;  %v3141_v34 = vadd.f32 %v4024_v38, %v5199_v39  ;;  %v3901_v38 = vsel %vm1703_vm1, 1.0, %v7578_v8  ;;  %vm1585_vm1 = vcmp.eq.s32.totalorder %v5401_v7, %v4774_v53 }
 0x3d7   :  { %4436 = vset.pattern.permute.xlu1 %v4603_v16 }
 0x3da   :  { %v5509_v5 = vpop.permute.xlu2 %869 }
 0x3db   :  { %7633 = vst [vmem:[#allocation90_spill] sm:$0xff] %v5509_v5 }
 0x3dc   :  { %v5533_v6 = vpop.permute.xlu0 %1542 }
 0x3de   :  { %960 = vperm.xlu2 %4437, %v4597_v15  }
 0x3df   :  { %954 = vperm.xlu1 %4436, %v4597_v15  }
 0x3e1   :  { %v5553_v57 = vpop.permute.xlu1 %845 }
 0x3e6   :  { %4439 = vset.pattern.permute.xlu2 %v4704_v35  ;;  %v3772_v35 = vsel %vm1574_vm8, 1.0, %v7578_v8  ;;  %vm1798_vm8 = vcmp.eq.s32.totalorder %v5357_v60, %v4768_v51 }
 0x3e7   :  { %4438 = vset.pattern.permute.xlu1 %v4621_v20  ;;  %v3194_v27 = vadd.f32 %v3804_v30, %v3772_v35  ;;  %v3156_v30 = vadd.f32 %v4025_v37, %v5201_v55  ;;  %v3900_v55 = vsel %vm1702_vm0, 1.0, %v7578_v8  ;;  %v7640_v37 = vld [vmem:[#allocation17_spill] sm:$0xff]  ;;  %vm1584_vm0 = vcmp.eq.s32.totalorder %v5401_v7, %v4768_v51 }
 0x3e8   :  { %v5515_v61 = vpop.permute.xlu2 %881  ;;  %vm1734_vm4 = vcmp.eq.s32.totalorder %v7640_v37, %v4768_v51  ;;  %vm1735_vm5 = vcmp.eq.s32.totalorder %v7640_v37, %v4774_v53  ;;  %v7642_v37 = vld [vmem:[#allocation18_spill] sm:$0xff]  ;;  %v3782_v7 = vsel %vm1584_vm0, 1.0, %v7578_v8 }
 0x3e9   :  { %7635 = vst [vmem:[#allocation92_spill] sm:$0xff] %v5515_v61  ;;  %v7636_v61 = vld [vmem:[#allocation36_spill] sm:$0xff]  ;;  %v3932_v12 = vsel %vm1734_vm4, 1.0, %v7578_v8 }
 0x3ea   :  { %vm1638_vm12 = vcmp.eq.s32.totalorder %v7636_v61, %v4768_v51  ;;  %vm1639_vm13 = vcmp.eq.s32.totalorder %v7636_v61, %v4774_v53  ;;  %7637 = vst [vmem:[#allocation36_spill] sm:$0xff] %v5533_v6 }
 0x3eb   :  { %v3836_v61 = vsel %vm1638_vm12, 1.0, %v7578_v8  ;;  %v3837_v6 = vsel %vm1639_vm13, 1.0, %v7578_v8  ;;  %vm1894_vm12 = vcmp.eq.s32.totalorder %v7642_v37, %v4768_v51  ;;  %vm1895_vm13 = vcmp.eq.s32.totalorder %v7642_v37, %v4774_v53 }
 0x3ec   :  { %v3195_v11 = vadd.f32 %v3836_v61, %v3194_v27  ;;  %v5578_v61 = vpop.permute.xlu0 %190  ;;  %v3783_v37 = vsel %vm1585_vm1, 1.0, %v7578_v8 }
 0x3ee   :  { %972 = vperm.xlu2 %4439, %v4597_v15   ;;  %v3196_v27 = vadd.f32 %v3868_v18, %v3195_v11  ;;  %v3964_v11 = vsel %vm1766_vm6, 1.0, %v7578_v8 }
 0x3ef   :  { %966 = vperm.xlu1 %4438, %v4597_v15  }
 0x3f6   :  { %4441 = vset.pattern.permute.xlu2 %v4536_v1  ;;  %v3210_v1 = vadd.f32 %v3837_v6, %v3209_v54  ;;  %v3197_v54 = vadd.f32 %v3900_v55, %v3196_v27  ;;  %v4028_v55 = vsel %vm1830_vm10, 1.0, %v7578_v8  ;;  %v5608_v27 = vpop.permute.xlu0 %675 }
 0x3f7   :  { %4440 = vset.pattern.permute.xlu1 %v4539_v2 }
 0x3f8   :  { %v901_v35 = vpop.permute.xlu2 %900 }
 0x3f9   :  { %vm1858_vm2 = vcmp.eq.s32.totalorder %v901_v35, %v4768_v51  ;;  %vm1859_vm3 = vcmp.eq.s32.totalorder %v901_v35, %v4774_v53  ;;  %v3933_v35 = vsel %vm1735_vm5, 1.0, %v7578_v8 }
 0x3fa   :  { %v4056_v28 = vsel %vm1858_vm2, 1.0, %v7578_v8  ;;  %v4057_v31 = vsel %vm1859_vm3, 1.0, %v7578_v8 }
 0x3fb   :  { %v5561_v5 = vadd.f32 %v4056_v28, %v3141_v34  ;;  %v5563_v39 = vadd.f32 %v4057_v31, %v3156_v30  ;;  %v3211_v28 = vadd.f32 %v3869_v42, %v3210_v1  ;;  %v7641_v31 = vld [vmem:[#allocation6_spill] sm:$0xff]  ;;  %v5591_v1 = vpop.permute.xlu1 %863  ;;  %v3965_v42 = vsel %vm1767_vm7, 1.0, %v7578_v8 }
 0x3fc   :  { %v3198_v34 = vadd.f32 %v3932_v12, %v3197_v54  ;;  %v3997_v30 = vsel %vm1799_vm9, 1.0, %v7578_v8 }
 0x3fd   :  { %v3212_v6 = vadd.f32 %v3901_v38, %v3211_v28  ;;  %v4029_v38 = vsel %vm1831_vm11, 1.0, %v7578_v8 }
 0x3fe   :  { %991 = vperm.xlu2 %4441, %v7641_v31   ;;  %v3199_v18 = vadd.f32 %v3964_v11, %v3198_v34  ;;  %v4092_v11 = vsel %vm1894_vm12, 1.0, %v7578_v8 }
 0x3ff   :  { %984 = vperm.xlu1 %4440, %v4597_v15   ;;  %v3213_v25 = vadd.f32 %v3933_v35, %v3212_v6  ;;  %v3996_v15 = vsel %vm1798_vm8, 1.0, %v7578_v8 }
 0x400   :  { %v3200_v56 = vadd.f32 %v3996_v15, %v3199_v18  ;;  %v7643_v18 = vld [vmem:[#allocation31_spill] sm:$0xff] }
 0x401   :  { %v3214_v60 = vadd.f32 %v3965_v42, %v3213_v25  ;;  %v4093_v42 = vsel %vm1895_vm13, 1.0, %v7578_v8  ;;  %vm1590_vm2 = vcmp.eq.s32.totalorder %v7643_v18, %v4768_v51  ;;  %vm1591_vm3 = vcmp.eq.s32.totalorder %v7643_v18, %v4774_v53 }
 0x402   :  { %v3201_v6 = vadd.f32 %v4028_v55, %v3200_v56  ;;  %v3788_v56 = vsel %vm1590_vm2, 1.0, %v7578_v8  ;;  %vm1744_vm2 = vcmp.eq.s32.totalorder %v5407_v32, %v4768_v51 }
 0x403   :  { %v3215_v28 = vadd.f32 %v3997_v30, %v3214_v60  ;;  %v5611_v35 = vpop.permute.xlu1 %875  ;;  %v7644_v60 = vld [vmem:[#allocation37_spill] sm:$0xff] }
 0x404   :  { %vm1616_vm4 = vcmp.eq.s32.totalorder %v7644_v60, %v4768_v51  ;;  %vm1617_vm5 = vcmp.eq.s32.totalorder %v7644_v60, %v4774_v53 }
 0x405   :  { %v3216_v12 = vadd.f32 %v4029_v38, %v3215_v28  ;;  %v3789_v28 = vsel %vm1591_vm3, 1.0, %v7578_v8  ;;  %vm1745_vm3 = vcmp.eq.s32.totalorder %v5407_v32, %v4774_v53 }
 0x406   :  { %4443 = vset.pattern.permute.xlu2 %v4545_v4 }
 0x407   :  { %4442 = vset.pattern.permute.xlu1 %v4651_v26 }
 0x408   :  { %v913_v54 = vpop.permute.xlu2 %912 }
 0x409   :  { %vm1862_vm14 = vcmp.eq.s32.totalorder %v913_v54, %v4768_v51  ;;  %vm1863_vm15 = vcmp.eq.s32.totalorder %v913_v54, %v4774_v53  ;;  %v7647_v54 = vld [vmem:[#allocation32_spill] sm:$0xff] }
 0x40a   :  { %v4060_v34 = vsel %vm1862_vm14, 1.0, %v7578_v8  ;;  %v4061_v25 = vsel %vm1863_vm15, 1.0, %v7578_v8  ;;  %vm1622_vm6 = vcmp.eq.s32.totalorder %v7647_v54, %v4768_v51  ;;  %vm1623_vm7 = vcmp.eq.s32.totalorder %v7647_v54, %v4774_v53  ;;  %v7651_v54 = vld [vmem:[#allocation41_spill] sm:$0xff] }
 0x40b   :  { %v3202_v15 = vadd.f32 %v4060_v34, %v3201_v6  ;;  %v3217_v30 = vadd.f32 %v4061_v25, %v3216_v12  ;;  %v3814_v6 = vsel %vm1616_vm4, 1.0, %v7578_v8  ;;  %v3815_v12 = vsel %vm1617_vm5, 1.0, %v7578_v8  ;;  %v5651_v25 = vpop.permute.xlu0 %1160 }
 0x40c   :  { %v3359_v34 = vadd.f32 %v3815_v12, %v3783_v37  ;;  %7649 = vst [vmem:[#allocation17_spill] sm:$0xff] %v5651_v25  ;;  %v3820_v18 = vsel %vm1622_vm6, 1.0, %v7578_v8  ;;  %v3821_v60 = vsel %vm1623_vm7, 1.0, %v7578_v8  ;;  %vm1626_vm14 = vcmp.eq.s32.totalorder %v7651_v54, %v4768_v51 }
 0x40d   :  { %v5631_v55 = vadd.f32 %v4092_v11, %v3202_v15  ;;  %v5633_v38 = vadd.f32 %v4093_v42, %v3217_v30  ;;  %v7648_v11 = vld [vmem:[#allocation38_spill] sm:$0xff]  ;;  %v3344_v42 = vadd.f32 %v3814_v6, %v3782_v7  ;;  %v7650_v30 = vld [vmem:[#allocation55_spill] sm:$0xff]  ;;  %vm1627_vm15 = vcmp.eq.s32.totalorder %v7651_v54, %v4774_v53 }
 0x40e   :  { %1003 = vperm.xlu2 %4443, %v7641_v31   ;;  %vm1648_vm8 = vcmp.eq.s32.totalorder %v7648_v11, %v4768_v51  ;;  %vm1649_vm9 = vcmp.eq.s32.totalorder %v7648_v11, %v4774_v53  ;;  %vm1680_vm10 = vcmp.eq.s32.totalorder %v7650_v30, %v4768_v51  ;;  %vm1681_vm11 = vcmp.eq.s32.totalorder %v7650_v30, %v4774_v53 }
 0x40f   :  { %7645 = vst [vmem:[#allocation53_spill] sm:$0xff] %v5631_v55  ;;  %997 = vperm.xlu1 %4442, %v7641_v31   ;;  %v3847_v30 = vsel %vm1649_vm9, 1.0, %v7578_v8  ;;  %v3878_v25 = vsel %vm1680_vm10, 1.0, %v7578_v8  ;;  %v3879_v54 = vsel %vm1681_vm11, 1.0, %v7578_v8  ;;  %v5693_v11 = vsel %vm1626_vm14, 1.0, %v7578_v8 }
 0x410   :  { %7646 = vst [vmem:[#allocation54_spill] sm:$0xff] %v5633_v38  ;;  %v5696_v55 = vsel %vm1627_vm15, 1.0, %v7578_v8  ;;  %vm1796_vm6 = vcmp.eq.s32.totalorder %v5423_v63, %v4768_v51  ;;  %vm1797_vm7 = vcmp.eq.s32.totalorder %v5423_v63, %v4774_v53  ;;  %vm1655_vm9 = vcmp.eq.s32.totalorder %v5499_v52, %v4774_v53 }
 0x411   :  { %v895_v15 = vpop.permute.xlu1 %894  ;;  %vm1828_vm10 = vcmp.eq.s32.totalorder %v5441_v29, %v4768_v51  ;;  %vm1829_vm11 = vcmp.eq.s32.totalorder %v5441_v29, %v4774_v53  ;;  %vm1776_vm14 = vcmp.eq.s32.totalorder %v5397_v46, %v4768_v51  ;;  %vm1777_vm15 = vcmp.eq.s32.totalorder %v5397_v46, %v4774_v53 }
 0x412   :  { %vm1856_vm12 = vcmp.eq.s32.totalorder %v895_v15, %v4768_v51  ;;  %vm1857_vm13 = vcmp.eq.s32.totalorder %v895_v15, %v4774_v53  ;;  %v3846_v15 = vsel %vm1648_vm8, 1.0, %v7578_v8  ;;  %vm1654_vm8 = vcmp.eq.s32.totalorder %v5499_v52, %v4768_v51 }
 0x413   :  { %v4054_v7 = vsel %vm1856_vm12, 1.0, %v7578_v8  ;;  %v4055_v37 = vsel %vm1857_vm13, 1.0, %v7578_v8  ;;  %v3345_v38 = vadd.f32 %v3846_v15, %v3344_v42  ;;  %v3852_v32 = vsel %vm1654_vm8, 1.0, %v7578_v8 }
 0x414   :  { %v5668_v6 = vadd.f32 %v4054_v7, %v5317_v62  ;;  %v5671_v12 = vadd.f32 %v4055_v37, %v5319_v44  ;;  %v3360_v62 = vadd.f32 %v3847_v30, %v3359_v34  ;;  %v7652_v7 = vld [vmem:[#allocation56_spill] sm:$0xff]  ;;  %v5688_v44 = vadd.f32 %v3820_v18, %v3788_v56 }
 0x415   :  { %vm1712_vm0 = vcmp.eq.s32.totalorder %v7652_v7, %v4768_v51  ;;  %vm1713_vm1 = vcmp.eq.s32.totalorder %v7652_v7, %v4774_v53  ;;  %v5690_v37 = vadd.f32 %v3821_v60, %v3789_v28  ;;  %v3346_v42 = vadd.f32 %v3878_v25, %v3345_v38  ;;  %v5717_v25 = vpop.permute.xlu0 %1548 }
 0x416   :  { %4446 = vset.pattern.permute.xlu2 %v4573_v10  ;;  %v3361_v34 = vadd.f32 %v3879_v54, %v3360_v62  ;;  %v3910_v28 = vsel %vm1712_vm0, 1.0, %v7578_v8  ;;  %v3911_v18 = vsel %vm1713_vm1, 1.0, %v7578_v8  ;;  %7653 = vst [vmem:[#allocation6_spill] sm:$0xff] %v5717_v25  ;;  %v3942_v62 = vsel %vm1744_vm2, 1.0, %v7578_v8 }
 0x417   :  { %4445 = vset.pattern.permute.xlu1 %v4542_v3  ;;  %v3347_v54 = vadd.f32 %v3910_v28, %v3346_v42  ;;  %v3995_v7 = vsel %vm1797_vm7, 1.0, %v7578_v8  ;;  %v7655_v42 = vld [vmem:[#allocation57_spill] sm:$0xff]  ;;  %v3853_v29 = vsel %vm1655_vm9, 1.0, %v7578_v8  ;;  %v3975_v25 = vsel %vm1777_vm15, 1.0, %v7578_v8 }
 0x418   :  { %v931_v56 = vpop.permute.xlu2 %930  ;;  %v3362_v63 = vadd.f32 %v3911_v18, %v3361_v34  ;;  %vm1686_vm12 = vcmp.eq.s32.totalorder %v7655_v42, %v4768_v51  ;;  %vm1687_vm13 = vcmp.eq.s32.totalorder %v7655_v42, %v4774_v53  ;;  %v4026_v34 = vsel %vm1828_vm10, 1.0, %v7578_v8 }
 0x419   :  { %vm1868_vm4 = vcmp.eq.s32.totalorder %v931_v56, %v4768_v51  ;;  %vm1869_vm5 = vcmp.eq.s32.totalorder %v931_v56, %v4774_v53  ;;  %v4027_v56 = vsel %vm1829_vm11, 1.0, %v7578_v8  ;;  %v3348_v28 = vadd.f32 %v3942_v62, %v3347_v54 }
 0x41a   :  { %v4066_v60 = vsel %vm1868_vm4, 1.0, %v7578_v8  ;;  %v4067_v38 = vsel %vm1869_vm5, 1.0, %v7578_v8  ;;  %vm1808_vm0 = vcmp.eq.s32.totalorder %v5413_v49, %v4768_v51  ;;  %vm1809_vm1 = vcmp.eq.s32.totalorder %v5413_v49, %v4774_v53 }
 0x41b   :  { %v5720_v15 = vadd.f32 %v4066_v60, %v5492_v9  ;;  %v5723_v30 = vadd.f32 %v4067_v38, %v5495_v41  ;;  %v3943_v9 = vsel %vm1745_vm3, 1.0, %v7578_v8  ;;  %v3994_v41 = vsel %vm1796_vm6, 1.0, %v7578_v8 }
 0x41c   :  { %v3363_v46 = vadd.f32 %v3943_v9, %v3362_v63  ;;  %v3170_v18 = vadd.f32 %v3994_v41, %v5085_v36  ;;  %v3185_v60 = vadd.f32 %v3995_v7, %v5087_v50  ;;  %v3974_v38 = vsel %vm1776_vm14, 1.0, %v7578_v8  ;;  %v7656_v9 = vld [vmem:[#allocation42_spill] sm:$0xff] }
 0x41d   :  { %7654 = vst [vmem:[#allocation18_spill] sm:$0xff] %v5723_v30  ;;  %vm1840_vm4 = vcmp.eq.s32.totalorder %v5553_v57, %v4768_v51  ;;  %vm1841_vm5 = vcmp.eq.s32.totalorder %v5553_v57, %v4774_v53  ;;  %v4006_v54 = vsel %vm1808_vm0, 1.0, %v7578_v8  ;;  %v4007_v49 = vsel %vm1809_vm1, 1.0, %v7578_v8  ;;  %v100_v41 = vpop.permute.xlu0 %99 }
 0x41e   :  { %1021 = vperm.xlu2 %4446, %v7641_v31   ;;  %v3171_v4 = vadd.f32 %v4026_v34, %v3170_v18  ;;  %v3186_v30 = vadd.f32 %v4027_v56, %v3185_v60  ;;  %vm1658_vm6 = vcmp.eq.s32.totalorder %v7656_v9, %v4768_v51  ;;  %vm1659_vm7 = vcmp.eq.s32.totalorder %v7656_v9, %v4774_v53  ;;  %v7657_v60 = vld [vmem:[#allocation58_spill] sm:$0xff] }
 0x41f   :  { %1015 = vperm.xlu1 %4445, %v7641_v31   ;;  %v3349_v57 = vadd.f32 %v3974_v38, %v3348_v28  ;;  %v3364_v7 = vadd.f32 %v3975_v25, %v3363_v46  ;;  %v3884_v34 = vsel %vm1686_vm12, 1.0, %v7578_v8  ;;  %v4039_v56 = vsel %vm1841_vm5, 1.0, %v7578_v8 }
 0x420   :  { %v3435_v18 = vadd.f32 %v3852_v32, %v5688_v44  ;;  %v3450_v25 = vadd.f32 %v3853_v29, %v5690_v37  ;;  %vm1718_vm8 = vcmp.eq.s32.totalorder %v7657_v60, %v4768_v51  ;;  %vm1719_vm9 = vcmp.eq.s32.totalorder %v7657_v60, %v4774_v53 }
 0x421   :  { %v907_v52 = vpop.permute.xlu1 %906  ;;  %v3350_v28 = vadd.f32 %v4006_v54, %v3349_v57  ;;  %v3365_v46 = vadd.f32 %v4007_v49, %v3364_v7  ;;  %vm1594_vm10 = vcmp.eq.s32.totalorder %v100_v41, %v4768_v51  ;;  %vm1595_vm11 = vcmp.eq.s32.totalorder %v100_v41, %v4774_v53 }
 0x422   :  { %vm1860_vm2 = vcmp.eq.s32.totalorder %v907_v52, %v4768_v51  ;;  %vm1861_vm3 = vcmp.eq.s32.totalorder %v907_v52, %v4774_v53  ;;  %vm1750_vm14 = vcmp.eq.s32.totalorder %v5275_v43, %v4768_v51  ;;  %vm1751_vm15 = vcmp.eq.s32.totalorder %v5275_v43, %v4774_v53 }
 0x423   :  { %v4058_v36 = vsel %vm1860_vm2, 1.0, %v7578_v8  ;;  %v4059_v50 = vsel %vm1861_vm3, 1.0, %v7578_v8  ;;  %v3366_v52 = vadd.f32 %v4039_v56, %v3365_v46  ;;  %v3916_v32 = vsel %vm1718_vm8, 1.0, %v7578_v8 }
 0x424   :  { %v5777_v63 = vadd.f32 %v4058_v36, %v3171_v4  ;;  %v5779_v62 = vadd.f32 %v4059_v50, %v3186_v30  ;;  %v3885_v4 = vsel %vm1687_vm13, 1.0, %v7578_v8  ;;  %v4038_v30 = vsel %vm1840_vm4, 1.0, %v7578_v8 }
 0x425   :  { %v3351_v38 = vadd.f32 %v4038_v30, %v3350_v28  ;;  %v3917_v29 = vsel %vm1719_vm9, 1.0, %v7578_v8  ;;  %v3436_v54 = vadd.f32 %v3884_v34, %v3435_v18  ;;  %v3451_v49 = vadd.f32 %v3885_v4, %v3450_v25 }
 0x426   :  { %4448 = vset.pattern.permute.xlu2 %v4588_v13  ;;  %vm1782_vm0 = vcmp.eq.s32.totalorder %v5283_v24, %v4768_v51  ;;  %vm1783_vm1 = vcmp.eq.s32.totalorder %v5283_v24, %v4774_v53  ;;  %v3792_v43 = vsel %vm1594_vm10, 1.0, %v7578_v8  ;;  %v3793_v57 = vsel %vm1595_vm11, 1.0, %v7578_v8 }
 0x427   :  { %4447 = vset.pattern.permute.xlu1 %v4591_v14  ;;  %v3948_v7 = vsel %vm1750_vm14, 1.0, %v7578_v8  ;;  %v3949_v30 = vsel %vm1751_vm15, 1.0, %v7578_v8  ;;  %vm1814_vm2 = vcmp.eq.s32.totalorder %v5505_v47, %v4768_v51  ;;  %vm1815_vm3 = vcmp.eq.s32.totalorder %v5505_v47, %v4774_v53 }
 0x428   :  { %v943_v42 = vpop.permute.xlu2 %942  ;;  %v3437_v34 = vadd.f32 %v3916_v32, %v3436_v54  ;;  %v3452_v24 = vadd.f32 %v3917_v29, %v3451_v49  ;;  %v3856_v41 = vsel %vm1658_vm6, 1.0, %v7578_v8  ;;  %v3857_v4 = vsel %vm1659_vm7, 1.0, %v7578_v8 }
 0x429   :  { %vm1872_vm12 = vcmp.eq.s32.totalorder %v943_v42, %v4768_v51  ;;  %vm1873_vm13 = vcmp.eq.s32.totalorder %v943_v42, %v4774_v53  ;;  %v3980_v56 = vsel %vm1782_vm0, 1.0, %v7578_v8  ;;  %v3981_v18 = vsel %vm1783_vm1, 1.0, %v7578_v8  ;;  %v7660_v42 = vld [vmem:[#allocation59_spill] sm:$0xff] }
 0x42a   :  { %v4070_v44 = vsel %vm1872_vm12, 1.0, %v7578_v8  ;;  %v4071_v37 = vsel %vm1873_vm13, 1.0, %v7578_v8  ;;  %v3494_v25 = vadd.f32 %v5693_v11, %v3792_v43  ;;  %v3509_v28 = vadd.f32 %v5696_v55, %v3793_v57 }
 0x42b   :  { %v5815_v36 = vadd.f32 %v4070_v44, %v3351_v38  ;;  %v5817_v50 = vadd.f32 %v4071_v37, %v3366_v52  ;;  %v3438_v46 = vadd.f32 %v3948_v7, %v3437_v34  ;;  %v3453_v60 = vadd.f32 %v3949_v30, %v3452_v24  ;;  %v585_v24 = vpop.permute.xlu0 %584 }
 0x42c   :  { %vm1690_vm4 = vcmp.eq.s32.totalorder %v7660_v42, %v4768_v51  ;;  %vm1691_vm5 = vcmp.eq.s32.totalorder %v7660_v42, %v4774_v53  ;;  %v4012_v9 = vsel %vm1814_vm2, 1.0, %v7578_v8  ;;  %v4013_v11 = vsel %vm1815_vm3, 1.0, %v7578_v8 }
 0x42d   :  { %7658 = vst [vmem:[#allocation31_spill] sm:$0xff] %v5815_v36  ;;  %v3439_v55 = vadd.f32 %v3980_v56, %v3438_v46  ;;  %v3454_v52 = vadd.f32 %v3981_v18, %v3453_v60  ;;  %vm1846_vm8 = vcmp.eq.s32.totalorder %v5591_v1, %v4768_v51  ;;  %vm1847_vm9 = vcmp.eq.s32.totalorder %v5591_v1, %v4774_v53 }
 0x42e   :  { %7659 = vst [vmem:[#allocation37_spill] sm:$0xff] %v5817_v50  ;;  %1033 = vperm.xlu2 %4448, %v7641_v31   ;;  %v3495_v32 = vadd.f32 %v3856_v41, %v3494_v25  ;;  %v3510_v47 = vadd.f32 %v3857_v4, %v3509_v28  ;;  %v3888_v49 = vsel %vm1690_vm4, 1.0, %v7578_v8  ;;  %v3889_v1 = vsel %vm1691_vm5, 1.0, %v7578_v8 }
 0x42f   :  { %1027 = vperm.xlu1 %4447, %v7641_v31   ;;  %v4044_v43 = vsel %vm1846_vm8, 1.0, %v7578_v8  ;;  %v4045_v57 = vsel %vm1847_vm9, 1.0, %v7578_v8  ;;  %v3455_v7 = vadd.f32 %v4013_v11, %v3454_v52  ;;  %vm1754_vm14 = vcmp.eq.s32.totalorder %v585_v24, %v4768_v51 }
 0x430   :  { %v3496_v30 = vadd.f32 %v3888_v49, %v3495_v32  ;;  %v3511_v34 = vadd.f32 %v3889_v1, %v3510_v47  ;;  %vm1755_vm15 = vcmp.eq.s32.totalorder %v585_v24, %v4774_v53  ;;  %vm1786_vm0 = vcmp.eq.s32.totalorder %v5409_v0, %v4768_v51 }
 0x431   :  { %v925_v38 = vpop.permute.xlu1 %924  ;;  %v3456_v56 = vadd.f32 %v4045_v57, %v3455_v7  ;;  %vm1787_vm1 = vcmp.eq.s32.totalorder %v5409_v0, %v4774_v53  ;;  %vm1818_vm2 = vcmp.eq.s32.totalorder %v5429_v40, %v4768_v51  ;;  %vm1819_vm3 = vcmp.eq.s32.totalorder %v5429_v40, %v4774_v53 }
 0x432   :  { %vm1866_vm6 = vcmp.eq.s32.totalorder %v925_v38, %v4768_v51  ;;  %vm1867_vm7 = vcmp.eq.s32.totalorder %v925_v38, %v4774_v53  ;;  %v3952_v38 = vsel %vm1754_vm14, 1.0, %v7578_v8  ;;  %v3984_v32 = vsel %vm1786_vm0, 1.0, %v7578_v8 }
 0x433   :  { %v4064_v44 = vsel %vm1866_vm6, 1.0, %v7578_v8  ;;  %v4065_v37 = vsel %vm1867_vm7, 1.0, %v7578_v8  ;;  %v3985_v47 = vsel %vm1787_vm1, 1.0, %v7578_v8  ;;  %vm1850_vm6 = vcmp.eq.s32.totalorder %v5611_v35, %v4768_v51 }
 0x434   :  { %v5870_v29 = vadd.f32 %v4064_v44, %v5381_v22  ;;  %v5873_v54 = vadd.f32 %v4065_v37, %v5383_v45  ;;  %v7661_v22 = vld [vmem:[#allocation60_spill] sm:$0xff]  ;;  %v3440_v45 = vadd.f32 %v4012_v9, %v3439_v55  ;;  %v3953_v55 = vsel %vm1755_vm15, 1.0, %v7578_v8 }
 0x435   :  { %vm1722_vm10 = vcmp.eq.s32.totalorder %v7661_v22, %v4768_v51  ;;  %vm1723_vm11 = vcmp.eq.s32.totalorder %v7661_v22, %v4774_v53  ;;  %vm1851_vm7 = vcmp.eq.s32.totalorder %v5611_v35, %v4774_v53  ;;  %v4016_v40 = vsel %vm1818_vm2, 1.0, %v7578_v8 }
 0x436   :  { %4450 = vset.pattern.permute.xlu2 %v4603_v16  ;;  %v3441_v4 = vadd.f32 %v4044_v43, %v3440_v45  ;;  %v3920_v18 = vsel %vm1722_vm10, 1.0, %v7578_v8  ;;  %v3921_v25 = vsel %vm1723_vm11, 1.0, %v7578_v8  ;;  %v4017_v1 = vsel %vm1819_vm3, 1.0, %v7578_v8 }
 0x437   :  { %4449 = vset.pattern.permute.xlu1 %v4606_v17  ;;  %v3497_v9 = vadd.f32 %v3920_v18, %v3496_v30  ;;  %v3512_v11 = vadd.f32 %v3921_v25, %v3511_v34  ;;  %v4048_v7 = vsel %vm1850_vm6, 1.0, %v7578_v8  ;;  %v4049_v35 = vsel %vm1851_vm7, 1.0, %v7578_v8 }
 0x438   :  { %v961_v41 = vpop.permute.xlu2 %960  ;;  %vm1624_vm8 = vcmp.eq.s32.totalorder %v5578_v61, %v4768_v51  ;;  %vm1625_vm9 = vcmp.eq.s32.totalorder %v5578_v61, %v4774_v53  ;;  %vm1720_vm2 = vcmp.eq.s32.totalorder %v5155_v48, %v4768_v51  ;;  %vm1721_vm3 = vcmp.eq.s32.totalorder %v5155_v48, %v4774_v53 }
 0x439   :  { %vm1878_vm12 = vcmp.eq.s32.totalorder %v961_v41, %v4768_v51  ;;  %vm1879_vm13 = vcmp.eq.s32.totalorder %v961_v41, %v4774_v53  ;;  %v3498_v52 = vadd.f32 %v3952_v38, %v3497_v9  ;;  %v3513_v44 = vadd.f32 %v3953_v55, %v3512_v11  ;;  %v7665_v11 = vld [vmem:[#allocation49_spill] sm:$0xff] }
 0x43a   :  { %v4076_v28 = vsel %vm1878_vm12, 1.0, %v7578_v8  ;;  %v4077_v46 = vsel %vm1879_vm13, 1.0, %v7578_v8  ;;  %v3823_v61 = vsel %vm1625_vm9, 1.0, %v7578_v8  ;;  %vm1656_vm14 = vcmp.eq.s32.totalorder %v7665_v11, %v4768_v51 }
 0x43b   :  { %v5899_v60 = vadd.f32 %v4076_v28, %v3441_v4  ;;  %v5901_v42 = vadd.f32 %v4077_v46, %v3456_v56  ;;  %v3499_v22 = vadd.f32 %v3984_v32, %v3498_v52  ;;  %v3514_v45 = vadd.f32 %v3985_v47, %v3513_v44 }
 0x43c   :  { %v3822_v4 = vsel %vm1624_vm8, 1.0, %v7578_v8  ;;  %vm1657_vm15 = vcmp.eq.s32.totalorder %v7665_v11, %v4774_v53  ;;  %v3854_v52 = vsel %vm1656_vm14, 1.0, %v7578_v8  ;;  %vm1784_vm6 = vcmp.eq.s32.totalorder %v5608_v27, %v4768_v51 }
 0x43d   :  { %v3500_v30 = vadd.f32 %v4016_v40, %v3499_v22  ;;  %v3855_v44 = vsel %vm1657_vm15, 1.0, %v7578_v8  ;;  %v3918_v40 = vsel %vm1720_vm2, 1.0, %v7578_v8  ;;  %vm1785_vm7 = vcmp.eq.s32.totalorder %v5608_v27, %v4774_v53 }
 0x43e   :  { %1051 = vperm.xlu2 %4450, %v7641_v31   ;;  %v3982_v27 = vsel %vm1784_vm6, 1.0, %v7578_v8 }
 0x43f   :  { %1045 = vperm.xlu1 %4449, %v7641_v31   ;;  %v3501_v24 = vadd.f32 %v4048_v7, %v3500_v30 }
 0x441   :  { %v937_v37 = vpop.permute.xlu1 %936 }
 0x442   :  { %vm1870_vm4 = vcmp.eq.s32.totalorder %v937_v37, %v4768_v51  ;;  %vm1871_vm5 = vcmp.eq.s32.totalorder %v937_v37, %v4774_v53  ;;  %v7666_v37 = vld [vmem:[#allocation50_spill] sm:$0xff] }
 0x443   :  { %v4068_v0 = vsel %vm1870_vm4, 1.0, %v7578_v8  ;;  %v4069_v49 = vsel %vm1871_vm5, 1.0, %v7578_v8  ;;  %vm1688_vm0 = vcmp.eq.s32.totalorder %v7666_v37, %v4768_v51  ;;  %vm1689_vm1 = vcmp.eq.s32.totalorder %v7666_v37, %v4774_v53 }
 0x444   :  { %v5928_v43 = vadd.f32 %v4068_v0, %v5469_v33  ;;  %v5931_v57 = vadd.f32 %v4069_v49, %v5471_v58  ;;  %v3515_v33 = vadd.f32 %v4017_v1, %v3514_v45  ;;  %v7662_v58 = vld [vmem:[#allocation23_spill] sm:$0xff]  ;;  %vm1752_vm4 = vcmp.eq.s32.totalorder %v5163_v19, %v4768_v51 }
 0x445   :  { %vm1592_vm10 = vcmp.eq.s32.totalorder %v7662_v58, %v4768_v51  ;;  %vm1593_vm11 = vcmp.eq.s32.totalorder %v7662_v58, %v4774_v53  ;;  %vm1753_vm5 = vcmp.eq.s32.totalorder %v5163_v19, %v4774_v53  ;;  %v3886_v0 = vsel %vm1688_vm0, 1.0, %v7578_v8 }
 0x446   :  { %4452 = vset.pattern.permute.xlu2 %v4621_v20  ;;  %v3516_v41 = vadd.f32 %v4049_v35, %v3515_v33  ;;  %v3790_v46 = vsel %vm1592_vm10, 1.0, %v7578_v8  ;;  %v3791_v9 = vsel %vm1593_vm11, 1.0, %v7578_v8  ;;  %v3887_v49 = vsel %vm1689_vm1, 1.0, %v7578_v8 }
 0x447   :  { %4451 = vset.pattern.permute.xlu1 %v4624_v21  ;;  %v3464_v38 = vadd.f32 %v3822_v4, %v3790_v46  ;;  %v3479_v55 = vadd.f32 %v3823_v61, %v3791_v9  ;;  %v3919_v1 = vsel %vm1721_vm3, 1.0, %v7578_v8  ;;  %v3950_v7 = vsel %vm1752_vm4, 1.0, %v7578_v8 }
 0x448   :  { %v973_v34 = vpop.permute.xlu2 %972  ;;  %v3951_v48 = vsel %vm1753_vm5, 1.0, %v7578_v8  ;;  %vm1816_vm10 = vcmp.eq.s32.totalorder %v5451_v59, %v4768_v51  ;;  %vm1817_vm11 = vcmp.eq.s32.totalorder %v5451_v59, %v4774_v53  ;;  %v3983_v4 = vsel %vm1785_vm7, 1.0, %v7578_v8 }
 0x449   :  { %vm1882_vm12 = vcmp.eq.s32.totalorder %v973_v34, %v4768_v51  ;;  %vm1883_vm13 = vcmp.eq.s32.totalorder %v973_v34, %v4774_v53  ;;  %v3465_v32 = vadd.f32 %v3854_v52, %v3464_v38  ;;  %v3480_v47 = vadd.f32 %v3855_v44, %v3479_v55 }
 0x44a   :  { %v4080_v56 = vsel %vm1882_vm12, 1.0, %v7578_v8  ;;  %v4081_v18 = vsel %vm1883_vm13, 1.0, %v7578_v8  ;;  %v4014_v59 = vsel %vm1816_vm10, 1.0, %v7578_v8  ;;  %v4015_v46 = vsel %vm1817_vm11, 1.0, %v7578_v8 }
 0x44b   :  { %v5951_v25 = vadd.f32 %v4080_v56, %v3501_v24  ;;  %v5953_v28 = vadd.f32 %v4081_v18, %v3516_v41  ;;  %v3466_v22 = vadd.f32 %v3886_v0, %v3465_v32  ;;  %v3481_v45 = vadd.f32 %v3887_v49, %v3480_v47  ;;  %v7667_v18 = vld [vmem:[#allocation90_spill] sm:$0xff] }
 0x44c   :  { %vm1848_vm12 = vcmp.eq.s32.totalorder %v7667_v18, %v4768_v51  ;;  %vm1849_vm13 = vcmp.eq.s32.totalorder %v7667_v18, %v4774_v53 }
 0x44d   :  { %7663 = vst [vmem:[#allocation32_spill] sm:$0xff] %v5951_v25  ;;  %v3467_v35 = vadd.f32 %v3918_v40, %v3466_v22  ;;  %v3482_v30 = vadd.f32 %v3919_v1, %v3481_v45  ;;  %v4047_v38 = vsel %vm1849_vm13, 1.0, %v7578_v8  ;;  %v7669_v40 = vld [vmem:[#allocation2_spill] sm:$0xff] }
 0x44e   :  { %7664 = vst [vmem:[#allocation38_spill] sm:$0xff] %v5953_v28  ;;  %1063 = vperm.xlu2 %4452, %v7641_v31  }
 0x44f   :  { %1057 = vperm.xlu1 %4451, %v7641_v31   ;;  %v3468_v33 = vadd.f32 %v3950_v7, %v3467_v35  ;;  %v3483_v58 = vadd.f32 %v3951_v48, %v3482_v30  ;;  %v7670_v35 = vld [vmem:[#allocation19_spill] sm:$0xff] }
 0x450   :  { %vm1576_vm4 = vcmp.eq.s32.totalorder %v7670_v35, %v4768_v51  ;;  %vm1577_vm5 = vcmp.eq.s32.totalorder %v7670_v35, %v4774_v53 }
 0x451   :  { %v5989_v34 = vpop.permute.xlu1 %954  ;;  %v3469_v9 = vadd.f32 %v3982_v27, %v3468_v33  ;;  %v3484_v11 = vadd.f32 %v3983_v4, %v3483_v58  ;;  %v7671_v33 = vld [vmem:[#allocation13_spill] sm:$0xff]  ;;  %v3775_v27 = vsel %vm1577_vm5, 1.0, %v7578_v8 }
 0x452   :  { %vm1704_vm6 = vcmp.eq.s32.totalorder %v7671_v33, %v4768_v51  ;;  %vm1705_vm7 = vcmp.eq.s32.totalorder %v7671_v33, %v4774_v53  ;;  %v7674_v4 = vld [vmem:[#allocation21_spill] sm:$0xff]  ;;  %v7684_v33 = vld [vmem:[#allocation24_spill] sm:$0xff] }
 0x453   :  { %v3485_v55 = vadd.f32 %v4015_v46, %v3484_v11  ;;  %v6062_v18 = vsel %vm1705_vm7, 1.0, %v7578_v8  ;;  %v7677_v46 = vld [vmem:[#allocation15_spill] sm:$0xff] }
 0x454   :  { %vm1865_vm13 = vcmp.eq.s32.totalorder %v7677_v46, %v4774_v53 }
 0x455   :  { %v3486_v37 = vadd.f32 %v4047_v38, %v3485_v55  ;;  %v7679_v38 = vld [vmem:[#allocation25_spill] sm:$0xff] }
 0x456   :  { %4454 = vset.pattern.permute.xlu2 %v4539_v2 }
 0x457   :  { %4453 = vset.pattern.permute.xlu1 %v4636_v23 }
 0x458   :  { %v992_v19 = vpop.permute.xlu2 %991 }
 0x459   :  { %vm1888_vm8 = vcmp.eq.s32.totalorder %v992_v19, %v4768_v51  ;;  %vm1889_vm9 = vcmp.eq.s32.totalorder %v992_v19, %v4774_v53 }
 0x45a   :  { %v4086_v24 = vsel %vm1888_vm8, 1.0, %v7578_v8  ;;  %v4087_v41 = vsel %vm1889_vm9, 1.0, %v7578_v8  ;;  %vm1588_vm8 = vcmp.eq.s32.totalorder %v7674_v4, %v4768_v51  ;;  %vm1589_vm9 = vcmp.eq.s32.totalorder %v7674_v4, %v4774_v53  ;;  %v7685_v4 = vld [vmem:[#allocation4_spill] sm:$0xff] }
 0x45b   :  { %v6002_v61 = vadd.f32 %v4086_v24, %v5668_v6  ;;  %v6005_v56 = vadd.f32 %v4087_v41, %v5671_v12  ;;  %v4046_v6 = vsel %vm1848_vm12, 1.0, %v7578_v8  ;;  %v3470_v12 = vadd.f32 %v4014_v59, %v3469_v9  ;;  %v7676_v59 = vld [vmem:[#allocation27_spill] sm:$0xff]  ;;  %v7678_v9 = vld [vmem:[#allocation28_spill] sm:$0xff] }
 0x45c   :  { %v3774_v41 = vsel %vm1576_vm4, 1.0, %v7578_v8  ;;  %vm1608_vm10 = vcmp.eq.s32.totalorder %v7676_v59, %v4768_v51  ;;  %vm1609_vm11 = vcmp.eq.s32.totalorder %v7676_v59, %v4774_v53  ;;  %vm1864_vm12 = vcmp.eq.s32.totalorder %v7677_v46, %v4768_v51 }
 0x45d   :  { %v3471_v44 = vadd.f32 %v4046_v6, %v3470_v12  ;;  %v3786_v11 = vsel %vm1588_vm8, 1.0, %v7578_v8  ;;  %v3787_v6 = vsel %vm1589_vm9, 1.0, %v7578_v8  ;;  %v3806_v12 = vsel %vm1608_vm10, 1.0, %v7578_v8 }
 0x45e   :  { %1081 = vperm.xlu2 %4454, %v7641_v31   ;;  %v3807_v55 = vsel %vm1609_vm11, 1.0, %v7578_v8  ;;  %vm1934_vm10 = vcmp.eq.s32.totalorder %v7684_v33, %v4768_v51  ;;  %vm1935_vm11 = vcmp.eq.s32.totalorder %v7684_v33, %v4774_v53 }
 0x45f   :  { %1075 = vperm.xlu1 %4453, %v7641_v31   ;;  %v7668_v31 = vld [vmem:[#allocation20_spill] sm:$0xff] }
 0x460   :  { %vm1924_vm0 = vcmp.eq.s32.totalorder %v7668_v31, %v4768_v51  ;;  %vm1925_vm1 = vcmp.eq.s32.totalorder %v7668_v31, %v4774_v53 }
 0x461   :  { %v967_v52 = vpop.permute.xlu1 %966  ;;  %v4122_v22 = vsel %vm1924_vm0, 1.0, %v7578_v8  ;;  %v4123_v45 = vsel %vm1925_vm1, 1.0, %v7578_v8  ;;  %vm1598_vm0 = vcmp.eq.s32.totalorder %v7679_v38, %v4768_v51  ;;  %vm1599_vm1 = vcmp.eq.s32.totalorder %v7679_v38, %v4774_v53 }
 0x462   :  { %vm1880_vm14 = vcmp.eq.s32.totalorder %v967_v52, %v4768_v51  ;;  %vm1881_vm15 = vcmp.eq.s32.totalorder %v967_v52, %v4774_v53  ;;  %v7680_v52 = vld [vmem:[#allocation45_spill] sm:$0xff]  ;;  %v6102_v31 = vsel %vm1598_vm0, 1.0, %v7578_v8 }
 0x463   :  { %v4078_v32 = vsel %vm1880_vm14, 1.0, %v7578_v8  ;;  %v4079_v47 = vsel %vm1881_vm15, 1.0, %v7578_v8  ;;  %vm1586_vm14 = vcmp.eq.s32.totalorder %v7678_v9, %v4768_v51  ;;  %vm1587_vm15 = vcmp.eq.s32.totalorder %v7678_v9, %v4774_v53  ;;  %v7686_v9 = vld [vmem:[#allocation40_spill] sm:$0xff] }
 0x464   :  { %v6021_v0 = vadd.f32 %v4078_v32, %v3471_v44  ;;  %v6023_v49 = vadd.f32 %v4079_v47, %v3486_v37  ;;  %v6090_v44 = vsel %vm1864_vm12, 1.0, %v7578_v8  ;;  %v6093_v37 = vsel %vm1865_vm13, 1.0, %v7578_v8 }
 0x465   :  { %v6096_v32 = vsel %vm1586_vm14, 1.0, %v7578_v8  ;;  %v6099_v47 = vsel %vm1587_vm15, 1.0, %v7578_v8  ;;  %vm1652_vm12 = vcmp.eq.s32.totalorder %v7686_v9, %v4768_v51  ;;  %vm1653_vm13 = vcmp.eq.s32.totalorder %v7686_v9, %v4774_v53 }
 0x466   :  { %4456 = vset.pattern.permute.xlu2 %v4651_v26 }
 0x467   :  { %4455 = vset.pattern.permute.xlu1 %v7669_v40 }
 0x468   :  { %v1004_v1 = vpop.permute.xlu2 %1003 }
 0x469   :  { %vm1892_vm2 = vcmp.eq.s32.totalorder %v1004_v1, %v4768_v51  ;;  %vm1893_vm3 = vcmp.eq.s32.totalorder %v1004_v1, %v4774_v53  ;;  %v6105_v1 = vsel %vm1599_vm1, 1.0, %v7578_v8 }
 0x46a   :  { %v4090_v7 = vsel %vm1892_vm2, 1.0, %v7578_v8  ;;  %v4091_v48 = vsel %vm1893_vm3, 1.0, %v7578_v8  ;;  %vm1640_vm2 = vcmp.eq.s32.totalorder %v7680_v52, %v4768_v51  ;;  %vm1641_vm3 = vcmp.eq.s32.totalorder %v7680_v52, %v4774_v53 }
 0x46b   :  { %v3173_v30 = vadd.f32 %v4090_v7, %v5777_v63  ;;  %v3188_v19 = vadd.f32 %v4091_v48, %v5779_v62  ;;  %v7675_v63 = vld [vmem:[#allocation8_spill] sm:$0xff]  ;;  %v6059_v62 = vsel %vm1704_vm6, 1.0, %v7578_v8  ;;  %v3239_v7 = vadd.f32 %v3807_v55, %v3775_v27 }
 0x46c   :  { %v3838_v48 = vsel %vm1640_vm2, 1.0, %v7578_v8  ;;  %v3839_v35 = vsel %vm1641_vm3, 1.0, %v7578_v8 }
 0x46d   :  { %v6047_v58 = vadd.f32 %v4122_v22, %v3173_v30  ;;  %v6049_v24 = vadd.f32 %v4123_v45, %v3188_v19  ;;  %v7681_v22 = vld [vmem:[#allocation39_spill] sm:$0xff]  ;;  %v3224_v45 = vadd.f32 %v3806_v12, %v3774_v41  ;;  %v7682_v30 = vld [vmem:[#allocation30_spill] sm:$0xff]  ;;  %v3240_v46 = vadd.f32 %v3839_v35, %v3239_v7 }
 0x46e   :  { %1094 = vperm.xlu2 %4456, %v7675_v63   ;;  %vm1620_vm4 = vcmp.eq.s32.totalorder %v7681_v22, %v4768_v51  ;;  %vm1621_vm5 = vcmp.eq.s32.totalorder %v7681_v22, %v4774_v53  ;;  %vm1618_vm6 = vcmp.eq.s32.totalorder %v7682_v30, %v4768_v51  ;;  %vm1619_vm7 = vcmp.eq.s32.totalorder %v7682_v30, %v4774_v53  ;;  %v7683_v19 = vld [vmem:[#allocation46_spill] sm:$0xff] }
 0x46f   :  { %7672 = vst [vmem:[#allocation55_spill] sm:$0xff] %v6047_v58  ;;  %1088 = vperm.xlu1 %4455, %v7675_v63   ;;  %vm1672_vm8 = vcmp.eq.s32.totalorder %v7683_v19, %v4768_v51  ;;  %vm1673_vm9 = vcmp.eq.s32.totalorder %v7683_v19, %v4774_v53  ;;  %v3818_v41 = vsel %vm1620_vm4, 1.0, %v7578_v8  ;;  %v3819_v27 = vsel %vm1621_vm5, 1.0, %v7578_v8  ;;  %v7687_v22 = vld [vmem:[#allocation86_spill] sm:$0xff] }
 0x470   :  { %7673 = vst [vmem:[#allocation41_spill] sm:$0xff] %v6049_v24  ;;  %v3225_v59 = vadd.f32 %v3838_v48, %v3224_v45  ;;  %v3870_v12 = vsel %vm1672_vm8, 1.0, %v7578_v8  ;;  %v3871_v55 = vsel %vm1673_vm9, 1.0, %v7578_v8  ;;  %vm1684_vm0 = vcmp.eq.s32.totalorder %v7687_v22, %v4768_v51 }
 0x471   :  { %v6135_v52 = vpop.permute.xlu1 %984  ;;  %vm1685_vm1 = vcmp.eq.s32.totalorder %v7687_v22, %v4774_v53  ;;  %v3850_v48 = vsel %vm1652_vm12, 1.0, %v7578_v8  ;;  %v3851_v35 = vsel %vm1653_vm13, 1.0, %v7578_v8  ;;  %v3419_v24 = vadd.f32 %v3819_v27, %v3787_v6 }
 0x472   :  { %v3226_v58 = vadd.f32 %v3870_v12, %v3225_v59  ;;  %v3241_v26 = vadd.f32 %v3871_v55, %v3240_v46  ;;  %v6157_v22 = vsel %vm1618_vm6, 1.0, %v7578_v8  ;;  %v6163_v28 = vsel %vm1619_vm7, 1.0, %v7578_v8 }
 0x473   :  { %v3420_v6 = vadd.f32 %v3851_v35, %v3419_v24  ;;  %v6176_v30 = vsel %vm1934_vm10, 1.0, %v7578_v8  ;;  %v6182_v27 = vsel %vm1935_vm11, 1.0, %v7578_v8  ;;  %v7689_v24 = vld [vmem:[#allocation65_spill] sm:$0xff] }
 0x474   :  { %vm1736_vm4 = vcmp.eq.s32.totalorder %v7689_v24, %v4768_v51  ;;  %vm1737_vm5 = vcmp.eq.s32.totalorder %v7689_v24, %v4774_v53  ;;  %v3227_v12 = vadd.f32 %v6059_v62, %v3226_v58  ;;  %v3242_v55 = vadd.f32 %v6062_v18, %v3241_v26  ;;  %v7691_v26 = vld [vmem:[#allocation62_spill] sm:$0xff] }
 0x475   :  { %v3934_v35 = vsel %vm1736_vm4, 1.0, %v7578_v8  ;;  %vm1748_vm10 = vcmp.eq.s32.totalorder %v7691_v26, %v4768_v51  ;;  %vm1749_vm11 = vcmp.eq.s32.totalorder %v7691_v26, %v4774_v53  ;;  %v7697_v26 = vld [vmem:[#allocation76_spill] sm:$0xff] }
 0x476   :  { %4459 = vset.pattern.permute.xlu2 %v4542_v3  ;;  %v3228_v24 = vadd.f32 %v3934_v35, %v3227_v12  ;;  %v3947_v12 = vsel %vm1749_vm11, 1.0, %v7578_v8 }
 0x477   :  { %4458 = vset.pattern.permute.xlu1 %v7685_v4 }
 0x478   :  { %v1022_v38 = vpop.permute.xlu2 %1021 }
 0x479   :  { %vm1898_vm14 = vcmp.eq.s32.totalorder %v1022_v38, %v4768_v51  ;;  %vm1899_vm15 = vcmp.eq.s32.totalorder %v1022_v38, %v4774_v53  ;;  %v3404_v38 = vadd.f32 %v3818_v41, %v3786_v11  ;;  %v7688_v41 = vld [vmem:[#allocation61_spill] sm:$0xff] }
 0x47a   :  { %v4096_v45 = vsel %vm1898_vm14, 1.0, %v7578_v8  ;;  %v4097_v7 = vsel %vm1899_vm15, 1.0, %v7578_v8  ;;  %vm1716_vm2 = vcmp.eq.s32.totalorder %v7688_v41, %v4768_v51  ;;  %vm1717_vm3 = vcmp.eq.s32.totalorder %v7688_v41, %v4774_v53  ;;  %v7693_v41 = vld [vmem:[#allocation47_spill] sm:$0xff] }
 0x47b   :  { %v6148_v19 = vadd.f32 %v4096_v45, %v5870_v29  ;;  %v6151_v9 = vadd.f32 %v4097_v7, %v5873_v54  ;;  %v3882_v29 = vsel %vm1684_vm0, 1.0, %v7578_v8  ;;  %v3883_v54 = vsel %vm1685_vm1, 1.0, %v7578_v8  ;;  %v7690_v7 = vld [vmem:[#allocation66_spill] sm:$0xff] }
 0x47c   :  { %v3405_v11 = vadd.f32 %v3850_v48, %v3404_v38  ;;  %v3421_v46 = vadd.f32 %v3883_v54, %v3420_v6  ;;  %v3914_v45 = vsel %vm1716_vm2, 1.0, %v7578_v8  ;;  %v3915_v33 = vsel %vm1717_vm3, 1.0, %v7578_v8  ;;  %v7692_v6 = vld [vmem:[#allocation43_spill] sm:$0xff] }
 0x47d   :  { %vm1768_vm6 = vcmp.eq.s32.totalorder %v7690_v7, %v4768_v51  ;;  %vm1769_vm7 = vcmp.eq.s32.totalorder %v7690_v7, %v4774_v53  ;;  %v3935_v38 = vsel %vm1737_vm5, 1.0, %v7578_v8  ;;  %vm1630_vm12 = vcmp.eq.s32.totalorder %v7692_v6, %v4768_v51 }
 0x47e   :  { %1112 = vperm.xlu2 %4459, %v7675_v63   ;;  %v3406_v59 = vadd.f32 %v3882_v29, %v3405_v11  ;;  %v3966_v18 = vsel %vm1768_vm6, 1.0, %v7578_v8  ;;  %v3967_v29 = vsel %vm1769_vm7, 1.0, %v7578_v8  ;;  %vm1631_vm13 = vcmp.eq.s32.totalorder %v7692_v6, %v4774_v53 }
 0x47f   :  { %1106 = vperm.xlu1 %4458, %v7675_v63   ;;  %vm1650_vm14 = vcmp.eq.s32.totalorder %v7693_v41, %v4768_v51  ;;  %vm1651_vm15 = vcmp.eq.s32.totalorder %v7693_v41, %v4774_v53  ;;  %v3243_v7 = vadd.f32 %v3935_v38, %v3242_v55  ;;  %v7695_v55 = vld [vmem:[#allocation73_spill] sm:$0xff] }
 0x480   :  { %vm1780_vm2 = vcmp.eq.s32.totalorder %v7695_v55, %v4768_v51  ;;  %vm1781_vm3 = vcmp.eq.s32.totalorder %v7695_v55, %v4774_v53 }
 0x481   :  { %v998_v48 = vpop.permute.xlu1 %997 }
 0x482   :  { %vm1890_vm8 = vcmp.eq.s32.totalorder %v998_v48, %v4768_v51  ;;  %vm1891_vm9 = vcmp.eq.s32.totalorder %v998_v48, %v4774_v53  ;;  %v3407_v48 = vadd.f32 %v3914_v45, %v3406_v59  ;;  %v3229_v59 = vadd.f32 %v3966_v18, %v3228_v24  ;;  %v7696_v45 = vld [vmem:[#allocation83_spill] sm:$0xff] }
 0x483   :  { %v4088_v58 = vsel %vm1890_vm8, 1.0, %v7578_v8  ;;  %v4089_v62 = vsel %vm1891_vm9, 1.0, %v7578_v8  ;;  %vm1832_vm4 = vcmp.eq.s32.totalorder %v7696_v45, %v4768_v51  ;;  %vm1833_vm5 = vcmp.eq.s32.totalorder %v7696_v45, %v4774_v53 }
 0x484   :  { %v6210_v54 = vadd.f32 %v4088_v58, %v5561_v5  ;;  %v6213_v11 = vadd.f32 %v4089_v62, %v5563_v39  ;;  %v3422_v5 = vadd.f32 %v3915_v33, %v3421_v46  ;;  %v7694_v58 = vld [vmem:[#allocation78_spill] sm:$0xff]  ;;  %v3946_v39 = vsel %vm1748_vm10, 1.0, %v7578_v8 }
 0x485   :  { %vm1800_vm0 = vcmp.eq.s32.totalorder %v7694_v58, %v4768_v51  ;;  %vm1801_vm1 = vcmp.eq.s32.totalorder %v7694_v58, %v4774_v53  ;;  %v3244_v46 = vadd.f32 %v3967_v29, %v3243_v7  ;;  %vm1812_vm8 = vcmp.eq.s32.totalorder %v7697_v26, %v4768_v51 }
 0x486   :  { %4461 = vset.pattern.permute.xlu2 %v4591_v14  ;;  %v3998_v35 = vsel %vm1800_vm0, 1.0, %v7578_v8  ;;  %v3999_v38 = vsel %vm1801_vm1, 1.0, %v7578_v8  ;;  %vm1813_vm9 = vcmp.eq.s32.totalorder %v7697_v26, %v4774_v53  ;;  %v4030_v29 = vsel %vm1832_vm4, 1.0, %v7578_v8 }
 0x487   :  { %4460 = vset.pattern.permute.xlu1 %v4573_v10  ;;  %v4031_v24 = vsel %vm1833_vm5, 1.0, %v7578_v8  ;;  %v3978_v45 = vsel %vm1780_vm2, 1.0, %v7578_v8  ;;  %v3230_v14 = vadd.f32 %v3998_v35, %v3229_v59  ;;  %v3245_v25 = vadd.f32 %v3999_v38, %v3244_v46 }
 0x488   :  { %v1034_v33 = vpop.permute.xlu2 %1033  ;;  %v3408_v20 = vadd.f32 %v3946_v39, %v3407_v48  ;;  %v3423_v50 = vadd.f32 %v3947_v12, %v3422_v5  ;;  %v4011_v55 = vsel %vm1813_vm9, 1.0, %v7578_v8  ;;  %v3828_v39 = vsel %vm1630_vm12, 1.0, %v7578_v8 }
 0x489   :  { %vm1902_vm6 = vcmp.eq.s32.totalorder %v1034_v33, %v4768_v51  ;;  %vm1903_vm7 = vcmp.eq.s32.totalorder %v1034_v33, %v4774_v53  ;;  %v3979_v33 = vsel %vm1781_vm3, 1.0, %v7578_v8  ;;  %v3231_v59 = vadd.f32 %v4030_v29, %v3230_v14 }
 0x48a   :  { %v4100_v62 = vsel %vm1902_vm6, 1.0, %v7578_v8  ;;  %v4101_v18 = vsel %vm1903_vm7, 1.0, %v7578_v8  ;;  %v3246_v46 = vadd.f32 %v4031_v24, %v3245_v25  ;;  %v3409_v48 = vadd.f32 %v3978_v45, %v3408_v20 }
 0x48b   :  { %v3323_v7 = vadd.f32 %v4100_v62, %v5928_v43  ;;  %v3338_v58 = vadd.f32 %v4101_v18, %v5931_v57  ;;  %v4010_v57 = vsel %vm1812_vm8, 1.0, %v7578_v8  ;;  %v3424_v5 = vadd.f32 %v3979_v33, %v3423_v50  ;;  %v7698_v50 = vld [vmem:[#allocation87_spill] sm:$0xff]  ;;  %v7700_v62 = vld [vmem:[#allocation44_spill] sm:$0xff] }
 0x48c   :  { %v3829_v14 = vsel %vm1631_vm13, 1.0, %v7578_v8  ;;  %v3848_v25 = vsel %vm1650_vm14, 1.0, %v7578_v8  ;;  %v3849_v20 = vsel %vm1651_vm15, 1.0, %v7578_v8  ;;  %vm1844_vm10 = vcmp.eq.s32.totalorder %v7698_v50, %v4768_v51 }
 0x48d   :  { %v6268_v36 = vadd.f32 %v6176_v30, %v3323_v7  ;;  %v6271_v43 = vadd.f32 %v6182_v27, %v3338_v58  ;;  %v3374_v30 = vadd.f32 %v6157_v22, %v6096_v32  ;;  %v3389_v27 = vadd.f32 %v6163_v28, %v6099_v47  ;;  %v7699_v22 = vld [vmem:[#allocation11_spill] sm:$0xff] }
 0x48e   :  { %1124 = vperm.xlu2 %4461, %v7675_v63   ;;  %vm1845_vm11 = vcmp.eq.s32.totalorder %v7698_v50, %v4774_v53  ;;  %v3410_v28 = vadd.f32 %v4010_v57, %v3409_v48  ;;  %v3425_v32 = vadd.f32 %v4011_v55, %v3424_v5  ;;  %vm1694_vm12 = vcmp.eq.s32.totalorder %v7699_v22, %v4768_v51  ;;  %v7702_v55 = vld [vmem:[#allocation10_spill] sm:$0xff] }
 0x48f   :  { %1118 = vperm.xlu1 %4460, %v7675_v63   ;;  %vm1695_vm13 = vcmp.eq.s32.totalorder %v7699_v22, %v4774_v53  ;;  %v3232_v6 = vadd.f32 %v6090_v44, %v3231_v59  ;;  %v3247_v41 = vadd.f32 %v6093_v37, %v3246_v46  ;;  %vm1876_vm0 = vcmp.eq.s32.totalorder %v5989_v34, %v4768_v51 }
 0x490   :  { %vm1877_vm1 = vcmp.eq.s32.totalorder %v5989_v34, %v4774_v53  ;;  %v4042_v38 = vsel %vm1844_vm10, 1.0, %v7578_v8  ;;  %v4043_v44 = vsel %vm1845_vm11, 1.0, %v7578_v8  ;;  %vm1662_vm2 = vcmp.eq.s32.totalorder %v7700_v62, %v4768_v51  ;;  %v7701_v34 = vld [vmem:[#allocation48_spill] sm:$0xff] }
 0x491   :  { %v1016_v47 = vpop.permute.xlu1 %1015  ;;  %vm1663_vm3 = vcmp.eq.s32.totalorder %v7700_v62, %v4774_v53  ;;  %vm1682_vm4 = vcmp.eq.s32.totalorder %v7701_v34, %v4768_v51  ;;  %vm1683_vm5 = vcmp.eq.s32.totalorder %v7701_v34, %v4774_v53  ;;  %v3554_v18 = vadd.f32 %v3828_v39, %v6102_v31 }
 0x492   :  { %vm1896_vm14 = vcmp.eq.s32.totalorder %v1016_v47, %v4768_v51  ;;  %vm1897_vm15 = vcmp.eq.s32.totalorder %v1016_v47, %v4774_v53  ;;  %v3569_v29 = vadd.f32 %v3829_v14, %v6105_v1  ;;  %v4074_v24 = vsel %vm1876_vm0, 1.0, %v7578_v8 }
 0x493   :  { %v4094_v12 = vsel %vm1896_vm14, 1.0, %v7578_v8  ;;  %v4095_v35 = vsel %vm1897_vm15, 1.0, %v7578_v8  ;;  %v4075_v7 = vsel %vm1877_vm1, 1.0, %v7578_v8  ;;  %v3375_v58 = vadd.f32 %v3848_v25, %v3374_v30  ;;  %v7703_v30 = vld [vmem:[#allocation79_spill] sm:$0xff] }
 0x494   :  { %v6323_v26 = vadd.f32 %v4094_v12, %v3232_v6  ;;  %v6325_v37 = vadd.f32 %v4095_v35, %v3247_v41  ;;  %v3390_v45 = vadd.f32 %v3849_v20, %v3389_v27  ;;  %v3411_v33 = vadd.f32 %v4042_v38, %v3410_v28  ;;  %v7704_v38 = vld [vmem:[#allocation63_spill] sm:$0xff] }
 0x495   :  { %v3426_v57 = vadd.f32 %v4043_v44, %v3425_v32  ;;  %v3860_v59 = vsel %vm1662_vm2, 1.0, %v7578_v8  ;;  %v3861_v46 = vsel %vm1663_vm3, 1.0, %v7578_v8  ;;  %v3880_v31 = vsel %vm1682_vm4, 1.0, %v7578_v8  ;;  %v7705_v44 = vld [vmem:[#allocation67_spill] sm:$0xff] }
 0x496   :  { %4464 = vset.pattern.permute.xlu2 %v4606_v17  ;;  %v3881_v1 = vsel %vm1683_vm5, 1.0, %v7578_v8  ;;  %v3412_v5 = vadd.f32 %v4074_v24, %v3411_v33  ;;  %vm1714_vm8 = vcmp.eq.s32.totalorder %v7703_v30, %v4768_v51  ;;  %vm1715_vm9 = vcmp.eq.s32.totalorder %v7703_v30, %v4774_v53  ;;  %v7709_v30 = vld [vmem:[#allocation81_spill] sm:$0xff] }
 0x497   :  { %4463 = vset.pattern.permute.xlu1 %v7702_v55  ;;  %v3427_v39 = vadd.f32 %v4075_v7, %v3426_v57  ;;  %v3555_v50 = vadd.f32 %v3860_v59, %v3554_v18  ;;  %v3570_v28 = vadd.f32 %v3861_v46, %v3569_v29  ;;  %v3376_v32 = vadd.f32 %v3880_v31, %v3375_v58  ;;  %v7706_v7 = vld [vmem:[#allocation68_spill] sm:$0xff] }
 0x498   :  { %v1052_v48 = vpop.permute.xlu2 %1051  ;;  %v3391_v47 = vadd.f32 %v3881_v1, %v3390_v45  ;;  %v3892_v6 = vsel %vm1694_vm12, 1.0, %v7578_v8  ;;  %v3893_v41 = vsel %vm1695_vm13, 1.0, %v7578_v8  ;;  %v3912_v12 = vsel %vm1714_vm8, 1.0, %v7578_v8  ;;  %v7707_v57 = vld [vmem:[#allocation64_spill] sm:$0xff] }
 0x499   :  { %vm1908_vm6 = vcmp.eq.s32.totalorder %v1052_v48, %v4768_v51  ;;  %vm1909_vm7 = vcmp.eq.s32.totalorder %v1052_v48, %v4774_v53  ;;  %v3913_v35 = vsel %vm1715_vm9, 1.0, %v7578_v8  ;;  %vm1726_vm10 = vcmp.eq.s32.totalorder %v7704_v38, %v4768_v51 }
 0x49a   :  { %v4106_v27 = vsel %vm1908_vm6, 1.0, %v7578_v8  ;;  %v4107_v14 = vsel %vm1909_vm7, 1.0, %v7578_v8  ;;  %vm1727_vm11 = vcmp.eq.s32.totalorder %v7704_v38, %v4774_v53  ;;  %vm1746_vm12 = vcmp.eq.s32.totalorder %v7705_v44, %v4768_v51 }
 0x49b   :  { %v6353_v25 = vadd.f32 %v4106_v27, %v3412_v5  ;;  %v6355_v20 = vadd.f32 %v4107_v14, %v3427_v39  ;;  %vm1747_vm14 = vcmp.eq.s32.totalorder %v7705_v44, %v4774_v53  ;;  %v3556_v22 = vadd.f32 %v3892_v6, %v3555_v50  ;;  %v7708_v5 = vld [vmem:[#allocation18_spill] sm:$0xff]  ;;  %v6427_v44 = vpop.permute.xlu0 %1069 }
 0x49c   :  { %v3571_v62 = vadd.f32 %v3893_v41, %v3570_v28  ;;  %v3377_v34 = vadd.f32 %v3912_v12, %v3376_v32  ;;  %v3392_v18 = vadd.f32 %v3913_v35, %v3391_v47  ;;  %v3924_v29 = vsel %vm1726_vm10, 1.0, %v7578_v8  ;;  %v7710_v32 = vld [vmem:[#allocation82_spill] sm:$0xff]  ;;  %v7712_v35 = vld [vmem:[#allocation89_spill] sm:$0xff] }
 0x49d   :  { %v3925_v24 = vsel %vm1727_vm11, 1.0, %v7578_v8  ;;  %vm1778_vm13 = vcmp.eq.s32.totalorder %v7706_v7, %v4768_v51  ;;  %vm1779_vm15 = vcmp.eq.s32.totalorder %v7706_v7, %v4774_v53  ;;  %v3944_v45 = vsel %vm1746_vm12, 1.0, %v7578_v8  ;;  %v7711_v12 = vld [vmem:[#allocation74_spill] sm:$0xff] }
 0x49e   :  { %1142 = vperm.xlu2 %4464, %v7675_v63   ;;  %v3945_v33 = vsel %vm1747_vm14, 1.0, %v7578_v8  ;;  %vm1758_vm2 = vcmp.eq.s32.totalorder %v7707_v57, %v4768_v51  ;;  %vm1759_vm3 = vcmp.eq.s32.totalorder %v7707_v57, %v4774_v53  ;;  %v3976_v31 = vsel %vm1778_vm13, 1.0, %v7578_v8 }
 0x49f   :  { %1136 = vperm.xlu1 %4463, %v7675_v63   ;;  %v3977_v1 = vsel %vm1779_vm15, 1.0, %v7578_v8  ;;  %vm1874_vm4 = vcmp.eq.s32.totalorder %v7709_v30, %v4768_v51  ;;  %vm1875_vm5 = vcmp.eq.s32.totalorder %v7709_v30, %v4774_v53  ;;  %v3378_v27 = vadd.f32 %v3944_v45, %v3377_v34  ;;  %v7713_v34 = vld [vmem:[#allocation80_spill] sm:$0xff] }
 0x4a0   :  { %v3393_v14 = vadd.f32 %v3945_v33, %v3392_v18  ;;  %v3557_v50 = vadd.f32 %v3924_v29, %v3556_v22  ;;  %v3572_v28 = vadd.f32 %v3925_v24, %v3571_v62  ;;  %vm1810_vm6 = vcmp.eq.s32.totalorder %v7710_v32, %v4768_v51 }
 0x4a1   :  { %v1028_v58 = vpop.permute.xlu1 %1027  ;;  %vm1811_vm7 = vcmp.eq.s32.totalorder %v7710_v32, %v4774_v53  ;;  %v3957_v47 = vsel %vm1759_vm3, 1.0, %v7578_v8  ;;  %v3379_v6 = vadd.f32 %v3976_v31, %v3378_v27  ;;  %vm1790_vm8 = vcmp.eq.s32.totalorder %v7711_v12, %v4768_v51 }
 0x4a2   :  { %vm1900_vm0 = vcmp.eq.s32.totalorder %v1028_v58, %v4768_v51  ;;  %vm1901_vm1 = vcmp.eq.s32.totalorder %v1028_v58, %v4774_v53  ;;  %v3394_v41 = vadd.f32 %v3977_v1, %v3393_v14  ;;  %vm1791_vm9 = vcmp.eq.s32.totalorder %v7711_v12, %v4774_v53 }
 0x4a3   :  { %v4098_v59 = vsel %vm1900_vm0, 1.0, %v7578_v8  ;;  %v4099_v46 = vsel %vm1901_vm1, 1.0, %v7578_v8  ;;  %vm1842_vm10 = vcmp.eq.s32.totalorder %v7712_v35, %v4768_v51  ;;  %vm1843_vm11 = vcmp.eq.s32.totalorder %v7712_v35, %v4774_v53  ;;  %v6473_v30 = vpop.permute.xlu0 %1554 }
 0x4a4   :  { %v6396_v48 = vadd.f32 %v4098_v59, %v5720_v15  ;;  %v6399_v39 = vadd.f32 %v4099_v46, %v7708_v5  ;;  %v3956_v15 = vsel %vm1758_vm2, 1.0, %v7578_v8  ;;  %v4008_v22 = vsel %vm1810_vm6, 1.0, %v7578_v8 }
 0x4a5   :  { %v4009_v62 = vsel %vm1811_vm7, 1.0, %v7578_v8  ;;  %vm1822_vm13 = vcmp.eq.s32.totalorder %v7713_v34, %v4768_v51  ;;  %vm1823_vm15 = vcmp.eq.s32.totalorder %v7713_v34, %v4774_v53  ;;  %v4040_v24 = vsel %vm1842_vm10, 1.0, %v7578_v8 }
 0x4a6   :  { %4466 = vset.pattern.permute.xlu2 %v4624_v21  ;;  %v4041_v7 = vsel %vm1843_vm11, 1.0, %v7578_v8  ;;  %v3988_v33 = vsel %vm1790_vm8, 1.0, %v7578_v8  ;;  %v3989_v57 = vsel %vm1791_vm9, 1.0, %v7578_v8  ;;  %v3380_v59 = vadd.f32 %v4008_v22, %v3379_v6 }
 0x4a7   :  { %4465 = vset.pattern.permute.xlu1 %v4603_v16  ;;  %v3395_v46 = vadd.f32 %v4009_v62, %v3394_v41  ;;  %v3558_v31 = vadd.f32 %v3956_v15, %v3557_v50  ;;  %v3573_v1 = vadd.f32 %v3957_v47, %v3572_v28  ;;  %v4021_v5 = vsel %vm1823_vm15, 1.0, %v7578_v8  ;;  %v7714_v15 = vld [vmem:[#allocation12_spill] sm:$0xff] }
 0x4a8   :  { %v1064_v38 = vpop.permute.xlu2 %1063  ;;  %v4072_v14 = vsel %vm1874_vm4, 1.0, %v7578_v8  ;;  %v4073_v32 = vsel %vm1875_vm5, 1.0, %v7578_v8  ;;  %vm1854_vm0 = vcmp.eq.s32.totalorder %v7714_v15, %v4768_v51  ;;  %vm1855_vm1 = vcmp.eq.s32.totalorder %v7714_v15, %v4774_v53 }
 0x4a9   :  { %vm1912_vm12 = vcmp.eq.s32.totalorder %v1064_v38, %v4768_v51  ;;  %vm1913_vm14 = vcmp.eq.s32.totalorder %v1064_v38, %v4774_v53  ;;  %v3396_v27 = vadd.f32 %v4041_v7, %v3395_v46  ;;  %v3559_v50 = vadd.f32 %v3988_v33, %v3558_v31  ;;  %v7717_v46 = vld [vmem:[#allocation33_spill] sm:$0xff]  ;;  %v7718_v31 = vld [vmem:[#allocation51_spill] sm:$0xff] }
 0x4aa   :  { %v4110_v18 = vsel %vm1912_vm12, 1.0, %v7578_v8  ;;  %v4111_v29 = vsel %vm1913_vm14, 1.0, %v7578_v8  ;;  %v3574_v28 = vadd.f32 %v3989_v57, %v3573_v1  ;;  %vm1886_vm4 = vcmp.eq.s32.totalorder %v6135_v52, %v4768_v51 }
 0x4ab   :  { %v6442_v58 = vadd.f32 %v4110_v18, %v6021_v0  ;;  %v6445_v45 = vadd.f32 %v4111_v29, %v6023_v49  ;;  %v4020_v0 = vsel %vm1822_vm13, 1.0, %v7578_v8  ;;  %v3381_v49 = vadd.f32 %v4040_v24, %v3380_v59  ;;  %v7716_v59 = vld [vmem:[#allocation16_spill] sm:$0xff] }
 0x4ac   :  { %v3560_v47 = vadd.f32 %v4020_v0, %v3559_v50  ;;  %v3575_v6 = vadd.f32 %v4021_v5, %v3574_v28  ;;  %v3397_v35 = vadd.f32 %v4073_v32, %v3396_v27  ;;  %vm1887_vm5 = vcmp.eq.s32.totalorder %v6135_v52, %v4774_v53  ;;  %v7715_v52 = vld [vmem:[#allocation35_spill] sm:$0xff]  ;;  %v7719_v50 = vld [vmem:[#allocation52_spill] sm:$0xff] }
 0x4ad   :  { %v3382_v12 = vadd.f32 %v4072_v14, %v3381_v49  ;;  %v4052_v62 = vsel %vm1854_vm0, 1.0, %v7578_v8  ;;  %v4053_v34 = vsel %vm1855_vm1, 1.0, %v7578_v8  ;;  %v4084_v24 = vsel %vm1886_vm4, 1.0, %v7578_v8 }
 0x4ae   :  { %1154 = vperm.xlu2 %4466, %v7675_v63   ;;  %v4085_v7 = vsel %vm1887_vm5, 1.0, %v7578_v8  ;;  %vm1628_vm6 = vcmp.eq.s32.totalorder %v7715_v52, %v4768_v51  ;;  %vm1629_vm7 = vcmp.eq.s32.totalorder %v7715_v52, %v4774_v53  ;;  %v3561_v33 = vadd.f32 %v4052_v62, %v3560_v47  ;;  %v7720_v52 = vld [vmem:[#allocation26_spill] sm:$0xff] }
 0x4af   :  { %1148 = vperm.xlu1 %4465, %v7675_v63   ;;  %v3576_v57 = vadd.f32 %v4053_v34, %v3575_v6  ;;  %vm1596_vm8 = vcmp.eq.s32.totalorder %v7717_v46, %v4768_v51  ;;  %vm1597_vm9 = vcmp.eq.s32.totalorder %v7717_v46, %v4774_v53  ;;  %vm1660_vm10 = vcmp.eq.s32.totalorder %v7718_v31, %v4768_v51 }
 0x4b0   :  { %vm1661_vm11 = vcmp.eq.s32.totalorder %v7718_v31, %v4774_v53  ;;  %v3562_v0 = vadd.f32 %v4084_v24, %v3561_v33  ;;  %v3826_v49 = vsel %vm1628_vm6, 1.0, %v7578_v8  ;;  %v3827_v27 = vsel %vm1629_vm7, 1.0, %v7578_v8  ;;  %v7721_v31 = vld [vmem:[#allocation69_spill] sm:$0xff] }
 0x4b1   :  { %v1046_v41 = vpop.permute.xlu1 %1045  ;;  %v3577_v5 = vadd.f32 %v4085_v7, %v3576_v57  ;;  %vm1692_vm13 = vcmp.eq.s32.totalorder %v7719_v50, %v4768_v51  ;;  %vm1693_vm15 = vcmp.eq.s32.totalorder %v7719_v50, %v4774_v53  ;;  %v3794_v47 = vsel %vm1596_vm8, 1.0, %v7578_v8 }
 0x4b2   :  { %vm1906_vm2 = vcmp.eq.s32.totalorder %v1046_v41, %v4768_v51  ;;  %vm1907_vm3 = vcmp.eq.s32.totalorder %v1046_v41, %v4774_v53  ;;  %v3795_v6 = vsel %vm1597_vm9, 1.0, %v7578_v8  ;;  %v3858_v41 = vsel %vm1660_vm10, 1.0, %v7578_v8 }
 0x4b3   :  { %v4104_v38 = vsel %vm1906_vm2, 1.0, %v7578_v8  ;;  %v4105_v22 = vsel %vm1907_vm3, 1.0, %v7578_v8  ;;  %v3890_v62 = vsel %vm1692_vm13, 1.0, %v7578_v8  ;;  %v3891_v34 = vsel %vm1693_vm15, 1.0, %v7578_v8 }
 0x4b4   :  { %v6483_v18 = vadd.f32 %v4104_v38, %v3382_v12  ;;  %v6485_v29 = vadd.f32 %v4105_v22, %v3397_v35  ;;  %v3859_v12 = vsel %vm1661_vm11, 1.0, %v7578_v8  ;;  %v3524_v35 = vadd.f32 %v3826_v49, %v3794_v47  ;;  %v494_v22 = vpop.permute.xlu0 %493 }
 0x4b5   :  { %v3539_v38 = vadd.f32 %v3827_v27, %v3795_v6  ;;  %vm1724_vm0 = vcmp.eq.s32.totalorder %v494_v22, %v4768_v51  ;;  %vm1725_vm1 = vcmp.eq.s32.totalorder %v494_v22, %v4774_v53  ;;  %vm1954_vm2 = vcmp.eq.s32.totalorder %v7720_v52, %v4768_v51  ;;  %v7722_v27 = vld [vmem:[#allocation70_spill] sm:$0xff] }
 0x4b6   :  { %4468 = vset.pattern.permute.xlu2 %v4636_v23  ;;  %v3525_v24 = vadd.f32 %v3858_v41, %v3524_v35  ;;  %vm1955_vm3 = vcmp.eq.s32.totalorder %v7720_v52, %v4774_v53  ;;  %vm1756_vm4 = vcmp.eq.s32.totalorder %v7721_v31, %v4768_v51  ;;  %vm1757_vm5 = vcmp.eq.s32.totalorder %v7721_v31, %v4774_v53 }
 0x4b7   :  { %4467 = vset.pattern.permute.xlu1 %v7716_v59  ;;  %v3540_v7 = vadd.f32 %v3859_v12, %v3539_v38  ;;  %vm1788_vm8 = vcmp.eq.s32.totalorder %v7722_v27, %v4768_v51  ;;  %vm1789_vm9 = vcmp.eq.s32.totalorder %v7722_v27, %v4774_v53  ;;  %v3954_v50 = vsel %vm1756_vm4, 1.0, %v7578_v8  ;;  %v7723_v12 = vld [vmem:[#allocation85_spill] sm:$0xff] }
 0x4b8   :  { %v1082_v1 = vpop.permute.xlu2 %1081  ;;  %v3526_v33 = vadd.f32 %v3890_v62, %v3525_v24  ;;  %v3955_v47 = vsel %vm1757_vm5, 1.0, %v7578_v8  ;;  %vm1820_vm10 = vcmp.eq.s32.totalorder %v7723_v12, %v4768_v51  ;;  %vm1821_vm11 = vcmp.eq.s32.totalorder %v7723_v12, %v4774_v53 }
 0x4b9   :  { %vm1918_vm12 = vcmp.eq.s32.totalorder %v1082_v1, %v4768_v51  ;;  %vm1919_vm14 = vcmp.eq.s32.totalorder %v1082_v1, %v4774_v53  ;;  %v3541_v57 = vadd.f32 %v3891_v34, %v3540_v7  ;;  %v3922_v1 = vsel %vm1724_vm0, 1.0, %v7578_v8  ;;  %v7724_v34 = vld [vmem:[#allocation92_spill] sm:$0xff] }
 0x4ba   :  { %v4116_v14 = vsel %vm1918_vm12, 1.0, %v7578_v8  ;;  %v4117_v32 = vsel %vm1919_vm14, 1.0, %v7578_v8  ;;  %v3527_v6 = vadd.f32 %v3922_v1, %v3526_v33  ;;  %v3986_v35 = vsel %vm1788_vm8, 1.0, %v7578_v8 }
 0x4bb   :  { %v6513_v28 = vadd.f32 %v4116_v14, %v3562_v0  ;;  %v6515_v15 = vadd.f32 %v4117_v32, %v3577_v5  ;;  %v3923_v0 = vsel %vm1725_vm1, 1.0, %v7578_v8  ;;  %v3987_v38 = vsel %vm1789_vm9, 1.0, %v7578_v8 }
 0x4bc   :  { %v3542_v41 = vadd.f32 %v3923_v0, %v3541_v57  ;;  %v3528_v22 = vadd.f32 %v3954_v50, %v3527_v6  ;;  %vm1852_vm12 = vcmp.eq.s32.totalorder %v7724_v34, %v4768_v51  ;;  %vm1853_vm14 = vcmp.eq.s32.totalorder %v7724_v34, %v4774_v53  ;;  %v979_v33 = vpop.permute.xlu0 %978 }
 0x4bd   :  { %v4018_v7 = vsel %vm1820_vm10, 1.0, %v7578_v8  ;;  %v4019_v52 = vsel %vm1821_vm11, 1.0, %v7578_v8  ;;  %v4050_v0 = vsel %vm1852_vm12, 1.0, %v7578_v8  ;;  %vm1884_vm0 = vcmp.eq.s32.totalorder %v979_v33, %v4768_v51 }
 0x4be   :  { %1172 = vperm.xlu2 %4468, %v7675_v63   ;;  %v3543_v62 = vadd.f32 %v3955_v47, %v3542_v41  ;;  %v3529_v57 = vadd.f32 %v3986_v35, %v3528_v22  ;;  %vm1885_vm1 = vcmp.eq.s32.totalorder %v979_v33, %v4774_v53  ;;  %v4082_v22 = vsel %vm1884_vm0, 1.0, %v7578_v8 }
 0x4bf   :  { %1166 = vperm.xlu1 %4467, %v7675_v63  }
 0x4c0   :  { %v3530_v50 = vadd.f32 %v4018_v7, %v3529_v57 }
 0x4c1   :  { %v1058_v46 = vpop.permute.xlu1 %1057 }
 0x4c2   :  { %vm1910_vm6 = vcmp.eq.s32.totalorder %v1058_v46, %v4768_v51  ;;  %vm1911_vm7 = vcmp.eq.s32.totalorder %v1058_v46, %v4774_v53  ;;  %v3544_v46 = vadd.f32 %v3987_v38, %v3543_v62  ;;  %v3531_v12 = vadd.f32 %v4050_v0, %v3530_v50  ;;  %v7725_v38 = vld [vmem:[#allocation14_spill] sm:$0xff] }
 0x4c3   :  { %v4108_v5 = vsel %vm1910_vm6, 1.0, %v7578_v8  ;;  %v4109_v49 = vsel %vm1911_vm7, 1.0, %v7578_v8 }
 0x4c4   :  { %v6558_v14 = vadd.f32 %v4108_v5, %v5899_v60  ;;  %v6561_v32 = vadd.f32 %v4109_v49, %v5901_v42  ;;  %v4152_v60 = vsel %vm1954_vm2, 1.0, %v7578_v8  ;;  %v4153_v42 = vsel %vm1955_vm3, 1.0, %v7578_v8 }
 0x4c5   :  { %v4051_v5 = vsel %vm1853_vm14, 1.0, %v7578_v8  ;;  %v3545_v47 = vadd.f32 %v4019_v52, %v3544_v46  ;;  %v3532_v62 = vadd.f32 %v4082_v22, %v3531_v12  ;;  %v7726_v52 = vld [vmem:[#allocation3_spill] sm:$0xff] }
 0x4c6   :  { %4470 = vset.pattern.permute.xlu2 %v7669_v40 }
 0x4c7   :  { %4469 = vset.pattern.permute.xlu1 %v4539_v2  ;;  %v3546_v35 = vadd.f32 %v4051_v5, %v3545_v47 }
 0x4c8   :  { %v1095_v24 = vpop.permute.xlu2 %1094 }
 0x4c9   :  { %vm1922_vm13 = vcmp.eq.s32.totalorder %v1095_v24, %v4768_v51  ;;  %vm1923_vm15 = vcmp.eq.s32.totalorder %v1095_v24, %v4774_v53 }
 0x4ca   :  { %v4120_v31 = vsel %vm1922_vm13, 1.0, %v7578_v8  ;;  %v4121_v1 = vsel %vm1923_vm15, 1.0, %v7578_v8 }
 0x4cb   :  { %v3144_v49 = vadd.f32 %v4120_v31, %v6210_v54  ;;  %v3159_v27 = vadd.f32 %v4121_v1, %v6213_v11  ;;  %v4083_v54 = vsel %vm1885_vm1, 1.0, %v7578_v8 }
 0x4cc   :  { %v3547_v34 = vadd.f32 %v4083_v54, %v3546_v35 }
 0x4cd   :  { %v6597_v6 = vadd.f32 %v4152_v60, %v3144_v49  ;;  %v6599_v41 = vadd.f32 %v4153_v42, %v3159_v27 }
 0x4ce   :  { %1185 = vperm.xlu2 %4470, %v7725_v38  }
 0x4cf   :  { %1178 = vperm.xlu1 %4469, %v7675_v63  }
 0x4d1   :  { %v1076_v11 = vpop.permute.xlu1 %1075 }
 0x4d2   :  { %vm1916_vm2 = vcmp.eq.s32.totalorder %v1076_v11, %v4768_v51  ;;  %vm1917_vm3 = vcmp.eq.s32.totalorder %v1076_v11, %v4774_v53 }
 0x4d3   :  { %v4114_v60 = vsel %vm1916_vm2, 1.0, %v7578_v8  ;;  %v4115_v42 = vsel %vm1917_vm3, 1.0, %v7578_v8 }
 0x4d4   :  { %v6609_v24 = vadd.f32 %v4114_v60, %v3532_v62  ;;  %v6611_v7 = vadd.f32 %v4115_v42, %v3547_v34 }
 0x4d6   :  { %4473 = vset.pattern.permute.xlu2 %v7685_v4 }
 0x4d7   :  { %4472 = vset.pattern.permute.xlu1 %v7726_v52 }
 0x4d8   :  { %v1113_v63 = vpop.permute.xlu2 %1112 }
 0x4d9   :  { %vm1928_vm4 = vcmp.eq.s32.totalorder %v1113_v63, %v4768_v51  ;;  %vm1929_vm5 = vcmp.eq.s32.totalorder %v1113_v63, %v4774_v53 }
 0x4da   :  { %v4126_v33 = vsel %vm1928_vm4, 1.0, %v7578_v8  ;;  %v4127_v57 = vsel %vm1929_vm5, 1.0, %v7578_v8 }
 0x4db   :  { %v6620_v46 = vadd.f32 %v4126_v33, %v6323_v26  ;;  %v6623_v31 = vadd.f32 %v4127_v57, %v6325_v37  ;;  %v7727_v37 = vld [vmem:[#allocation34_spill] sm:$0xff] }
 0x4dc   :  { %vm1964_vm8 = vcmp.eq.s32.totalorder %v7727_v37, %v4768_v51  ;;  %vm1965_vm9 = vcmp.eq.s32.totalorder %v7727_v37, %v4774_v53 }
 0x4de   :  { %1203 = vperm.xlu2 %4473, %v7725_v38  }
 0x4df   :  { %1197 = vperm.xlu1 %4472, %v7725_v38  }
 0x4e1   :  { %v1089_v1 = vpop.permute.xlu1 %1088 }
 0x4e2   :  { %vm1920_vm6 = vcmp.eq.s32.totalorder %v1089_v1, %v4768_v51  ;;  %vm1921_vm7 = vcmp.eq.s32.totalorder %v1089_v1, %v4774_v53 }
 0x4e3   :  { %v4118_v0 = vsel %vm1920_vm6, 1.0, %v7578_v8  ;;  %v4119_v5 = vsel %vm1921_vm7, 1.0, %v7578_v8 }
 0x4e4   :  { %v6632_v49 = vadd.f32 %v4118_v0, %v6002_v61  ;;  %v6635_v26 = vadd.f32 %v4119_v5, %v6005_v56  ;;  %v4162_v61 = vsel %vm1964_vm8, 1.0, %v7578_v8  ;;  %v4163_v56 = vsel %vm1965_vm9, 1.0, %v7578_v8 }
 0x4e6   :  { %4475 = vset.pattern.permute.xlu2 %v4573_v10 }
 0x4e7   :  { %4474 = vset.pattern.permute.xlu1 %v4542_v3 }
 0x4e8   :  { %v1125_v27 = vpop.permute.xlu2 %1124 }
 0x4e9   :  { %vm1932_vm10 = vcmp.eq.s32.totalorder %v1125_v27, %v4768_v51  ;;  %vm1933_vm11 = vcmp.eq.s32.totalorder %v1125_v27, %v4774_v53 }
 0x4ea   :  { %v4130_v50 = vsel %vm1932_vm10, 1.0, %v7578_v8  ;;  %v4131_v47 = vsel %vm1933_vm11, 1.0, %v7578_v8 }
 0x4eb   :  { %v3294_v12 = vadd.f32 %v4130_v50, %v6396_v48  ;;  %v3309_v35 = vadd.f32 %v4131_v47, %v6399_v39  ;;  %v7728_v48 = vld [vmem:[#allocation53_spill] sm:$0xff]  ;;  %v7729_v39 = vld [vmem:[#allocation54_spill] sm:$0xff] }
 0x4ed   :  { %v6651_v22 = vadd.f32 %v4162_v61, %v3294_v12  ;;  %v6653_v54 = vadd.f32 %v4163_v56, %v3309_v35 }
 0x4ee   :  { %1215 = vperm.xlu2 %4475, %v7725_v38  }
 0x4ef   :  { %1209 = vperm.xlu1 %4474, %v7725_v38  }
 0x4f1   :  { %v1107_v11 = vpop.permute.xlu1 %1106 }
 0x4f2   :  { %vm1926_vm12 = vcmp.eq.s32.totalorder %v1107_v11, %v4768_v51  ;;  %vm1927_vm14 = vcmp.eq.s32.totalorder %v1107_v11, %v4774_v53 }
 0x4f3   :  { %v4124_v62 = vsel %vm1926_vm12, 1.0, %v7578_v8  ;;  %v4125_v34 = vsel %vm1927_vm14, 1.0, %v7578_v8 }
 0x4f4   :  { %v6662_v60 = vadd.f32 %v4124_v62, %v7728_v48  ;;  %v6665_v42 = vadd.f32 %v4125_v34, %v7729_v39  ;;  %v7732_v34 = vld [vmem:[#allocation37_spill] sm:$0xff] }
 0x4f6   :  { %4478 = vset.pattern.permute.xlu2 %v7702_v55 }
 0x4f7   :  { %4477 = vset.pattern.permute.xlu1 %v4588_v13 }
 0x4f8   :  { %v1143_v63 = vpop.permute.xlu2 %1142 }
 0x4f9   :  { %vm1938_vm13 = vcmp.eq.s32.totalorder %v1143_v63, %v4768_v51  ;;  %vm1939_vm15 = vcmp.eq.s32.totalorder %v1143_v63, %v4774_v53 }
 0x4fa   :  { %v4136_v33 = vsel %vm1938_vm13, 1.0, %v7578_v8  ;;  %v4137_v57 = vsel %vm1939_vm15, 1.0, %v7578_v8 }
 0x4fb   :  { %v6674_v1 = vadd.f32 %v4136_v33, %v6483_v18  ;;  %v6677_v0 = vadd.f32 %v4137_v57, %v6485_v29  ;;  %v7733_v57 = vld [vmem:[#allocation7_spill] sm:$0xff] }
 0x4fe   :  { %1233 = vperm.xlu2 %4478, %v7725_v38  }
 0x4ff   :  { %1227 = vperm.xlu1 %4477, %v7725_v38  }
 0x501   :  { %v1119_v5 = vpop.permute.xlu1 %1118 }
 0x502   :  { %vm1930_vm0 = vcmp.eq.s32.totalorder %v1119_v5, %v4768_v51  ;;  %vm1931_vm1 = vcmp.eq.s32.totalorder %v1119_v5, %v4774_v53 }
 0x503   :  { %v4128_v37 = vsel %vm1930_vm0, 1.0, %v7578_v8  ;;  %v4129_v27 = vsel %vm1931_vm1, 1.0, %v7578_v8  ;;  %vm1914_vm0 = vcmp.eq.s32.totalorder %v6427_v44, %v4768_v51  ;;  %vm1915_vm1 = vcmp.eq.s32.totalorder %v6427_v44, %v4774_v53 }
 0x504   :  { %v6686_v61 = vadd.f32 %v4128_v37, %v6148_v19  ;;  %v6689_v18 = vadd.f32 %v4129_v27, %v6151_v9  ;;  %v7730_v9 = vld [vmem:[#allocation75_spill] sm:$0xff] }
 0x505   :  { %vm1904_vm4 = vcmp.eq.s32.totalorder %v7730_v9, %v4768_v51  ;;  %vm1905_vm5 = vcmp.eq.s32.totalorder %v7730_v9, %v4774_v53 }
 0x506   :  { %4480 = vset.pattern.permute.xlu2 %v4603_v16  ;;  %v4102_v12 = vsel %vm1904_vm4, 1.0, %v7578_v8  ;;  %v4103_v35 = vsel %vm1905_vm5, 1.0, %v7578_v8 }
 0x507   :  { %4479 = vset.pattern.permute.xlu1 %v4606_v17 }
 0x508   :  { %v1155_v29 = vpop.permute.xlu2 %1154 }
 0x509   :  { %vm1942_vm2 = vcmp.eq.s32.totalorder %v1155_v29, %v4768_v51  ;;  %vm1943_vm3 = vcmp.eq.s32.totalorder %v1155_v29, %v4774_v53 }
 0x50a   :  { %v4140_v56 = vsel %vm1942_vm2, 1.0, %v7578_v8  ;;  %v4141_v50 = vsel %vm1943_vm3, 1.0, %v7578_v8 }
 0x50b   :  { %v6698_v47 = vadd.f32 %v4140_v56, %v6558_v14  ;;  %v6701_v19 = vadd.f32 %v4141_v50, %v6561_v32  ;;  %v7731_v14 = vld [vmem:[#allocation31_spill] sm:$0xff]  ;;  %v3368_v32 = vadd.f32 %v4103_v35, %v7732_v34 }
 0x50c   :  { %v3353_v62 = vadd.f32 %v4102_v12, %v7731_v14 }
 0x50e   :  { %1245 = vperm.xlu2 %4480, %v7725_v38  }
 0x50f   :  { %1239 = vperm.xlu1 %4479, %v7725_v38  }
 0x511   :  { %v1137_v11 = vpop.permute.xlu1 %1136 }
 0x512   :  { %vm1936_vm6 = vcmp.eq.s32.totalorder %v1137_v11, %v4768_v51  ;;  %vm1937_vm7 = vcmp.eq.s32.totalorder %v1137_v11, %v4774_v53 }
 0x513   :  { %v4134_v48 = vsel %vm1936_vm6, 1.0, %v7578_v8  ;;  %v4135_v39 = vsel %vm1937_vm7, 1.0, %v7578_v8 }
 0x514   :  { %v6717_v63 = vadd.f32 %v4134_v48, %v3353_v62  ;;  %v6719_v33 = vadd.f32 %v4135_v39, %v3368_v32 }
 0x516   :  { %4482 = vset.pattern.permute.xlu2 %v7716_v59 }
 0x517   :  { %4481 = vset.pattern.permute.xlu1 %v7733_v57 }
 0x518   :  { %v1173_v5 = vpop.permute.xlu2 %1172 }
 0x519   :  { %vm1948_vm8 = vcmp.eq.s32.totalorder %v1173_v5, %v4768_v51  ;;  %vm1949_vm9 = vcmp.eq.s32.totalorder %v1173_v5, %v4774_v53  ;;  %v4112_v5 = vsel %vm1914_vm0, 1.0, %v7578_v8 }
 0x51a   :  { %v4146_v37 = vsel %vm1948_vm8, 1.0, %v7578_v8  ;;  %v4147_v27 = vsel %vm1949_vm9, 1.0, %v7578_v8 }
 0x51b   :  { %v6728_v29 = vadd.f32 %v4146_v37, %v6609_v24  ;;  %v6731_v56 = vadd.f32 %v4147_v27, %v6611_v7  ;;  %v7734_v7 = vld [vmem:[#allocation71_spill] sm:$0xff]  ;;  %v4113_v37 = vsel %vm1915_vm1, 1.0, %v7578_v8 }
 0x51c   :  { %vm1984_vm12 = vcmp.eq.s32.totalorder %v7734_v7, %v4768_v51  ;;  %vm1985_vm14 = vcmp.eq.s32.totalorder %v7734_v7, %v4774_v53 }
 0x51e   :  { %1263 = vperm.xlu2 %4482, %v7725_v38  }
 0x51f   :  { %1257 = vperm.xlu1 %4481, %v7725_v38  }
 0x521   :  { %v1149_v50 = vpop.permute.xlu1 %1148 }
 0x522   :  { %vm1940_vm10 = vcmp.eq.s32.totalorder %v1149_v50, %v4768_v51  ;;  %vm1941_vm11 = vcmp.eq.s32.totalorder %v1149_v50, %v4774_v53  ;;  %v7736_v50 = vld [vmem:[#allocation38_spill] sm:$0xff] }
 0x523   :  { %v4138_v9 = vsel %vm1940_vm10, 1.0, %v7578_v8  ;;  %v4139_v12 = vsel %vm1941_vm11, 1.0, %v7578_v8 }
 0x524   :  { %v6740_v35 = vadd.f32 %v4138_v9, %v6353_v25  ;;  %v6743_v24 = vadd.f32 %v4139_v12, %v6355_v20  ;;  %v4182_v25 = vsel %vm1984_vm12, 1.0, %v7578_v8  ;;  %v4183_v20 = vsel %vm1985_vm14, 1.0, %v7578_v8 }
 0x525   :  { %v3518_v9 = vadd.f32 %v4113_v37, %v7736_v50 }
 0x526   :  { %4484 = vset.pattern.permute.xlu2 %v4539_v2 }
 0x527   :  { %4483 = vset.pattern.permute.xlu1 %v4636_v23 }
 0x528   :  { %v1186_v11 = vpop.permute.xlu2 %1185 }
 0x529   :  { %vm1952_vm13 = vcmp.eq.s32.totalorder %v1186_v11, %v4768_v51  ;;  %vm1953_vm15 = vcmp.eq.s32.totalorder %v1186_v11, %v4774_v53 }
 0x52a   :  { %v4150_v14 = vsel %vm1952_vm13, 1.0, %v7578_v8  ;;  %v4151_v62 = vsel %vm1953_vm15, 1.0, %v7578_v8 }
 0x52b   :  { %v3115_v34 = vadd.f32 %v4150_v14, %v6632_v49  ;;  %v3130_v32 = vadd.f32 %v4151_v62, %v6635_v26  ;;  %v7735_v26 = vld [vmem:[#allocation32_spill] sm:$0xff] }
 0x52c   :  { %v3503_v27 = vadd.f32 %v4112_v5, %v7735_v26 }
 0x52d   :  { %v6763_v48 = vadd.f32 %v4182_v25, %v3115_v34  ;;  %v6765_v39 = vadd.f32 %v4183_v20, %v3130_v32  ;;  %v7738_v32 = vld [vmem:[#allocation22_spill] sm:$0xff] }
 0x52e   :  { %1275 = vperm.xlu2 %4484, %v7725_v38  }
 0x52f   :  { %1269 = vperm.xlu1 %4483, %v7725_v38   ;;  %v7737_v38 = vld [vmem:[#allocation9_spill] sm:$0xff] }
 0x531   :  { %v1167_v49 = vpop.permute.xlu1 %1166 }
 0x532   :  { %vm1946_vm2 = vcmp.eq.s32.totalorder %v1167_v49, %v4768_v51  ;;  %vm1947_vm3 = vcmp.eq.s32.totalorder %v1167_v49, %v4774_v53 }
 0x533   :  { %v4144_v44 = vsel %vm1946_vm2, 1.0, %v7578_v8  ;;  %v4145_v12 = vsel %vm1947_vm3, 1.0, %v7578_v8 }
 0x534   :  { %v6777_v7 = vadd.f32 %v4144_v44, %v3503_v27  ;;  %v6779_v11 = vadd.f32 %v4145_v12, %v3518_v9 }
 0x536   :  { %4487 = vset.pattern.permute.xlu2 %v7726_v52 }
 0x537   :  { %4486 = vset.pattern.permute.xlu1 %v7737_v38 }
 0x538   :  { %v1204_v25 = vpop.permute.xlu2 %1203 }
 0x539   :  { %vm1958_vm4 = vcmp.eq.s32.totalorder %v1204_v25, %v4768_v51  ;;  %vm1959_vm5 = vcmp.eq.s32.totalorder %v1204_v25, %v4774_v53 }
 0x53a   :  { %v4156_v20 = vsel %vm1958_vm4, 1.0, %v7578_v8  ;;  %v4157_v14 = vsel %vm1959_vm5, 1.0, %v7578_v8 }
 0x53b   :  { %v6788_v62 = vadd.f32 %v4156_v20, %v6662_v60  ;;  %v6791_v34 = vadd.f32 %v4157_v14, %v6665_v42  ;;  %v7739_v42 = vld [vmem:[#allocation72_spill] sm:$0xff] }
 0x53c   :  { %vm1994_vm8 = vcmp.eq.s32.totalorder %v7739_v42, %v4768_v51  ;;  %vm1995_vm9 = vcmp.eq.s32.totalorder %v7739_v42, %v4774_v53 }
 0x53e   :  { %1294 = vperm.xlu2 %4487, %v7738_v32  }
 0x53f   :  { %1288 = vperm.xlu1 %4486, %v7738_v32  }
 0x541   :  { %v1179_v5 = vpop.permute.xlu1 %1178 }
 0x542   :  { %vm1950_vm6 = vcmp.eq.s32.totalorder %v1179_v5, %v4768_v51  ;;  %vm1951_vm7 = vcmp.eq.s32.totalorder %v1179_v5, %v4774_v53 }
 0x543   :  { %v4148_v37 = vsel %vm1950_vm6, 1.0, %v7578_v8  ;;  %v4149_v49 = vsel %vm1951_vm7, 1.0, %v7578_v8 }
 0x544   :  { %v6800_v26 = vadd.f32 %v4148_v37, %v6513_v28  ;;  %v6803_v60 = vadd.f32 %v4149_v49, %v6515_v15  ;;  %v4192_v28 = vsel %vm1994_vm8, 1.0, %v7578_v8  ;;  %v4193_v15 = vsel %vm1995_vm9, 1.0, %v7578_v8 }
 0x546   :  { %4489 = vset.pattern.permute.xlu2 %v4542_v3 }
 0x547   :  { %4488 = vset.pattern.permute.xlu1 %v7685_v4 }
 0x548   :  { %v1216_v27 = vpop.permute.xlu2 %1215 }
 0x549   :  { %vm1962_vm10 = vcmp.eq.s32.totalorder %v1216_v27, %v4768_v51  ;;  %vm1963_vm11 = vcmp.eq.s32.totalorder %v1216_v27, %v4774_v53  ;;  %v7742_v27 = vld [vmem:[#allocation5_spill] sm:$0xff] }
 0x54a   :  { %v4160_v50 = vsel %vm1962_vm10, 1.0, %v7578_v8  ;;  %v4161_v9 = vsel %vm1963_vm11, 1.0, %v7578_v8 }
 0x54b   :  { %v3265_v44 = vadd.f32 %v4160_v50, %v6686_v61  ;;  %v3280_v12 = vadd.f32 %v4161_v9, %v6689_v18  ;;  %v7740_v61 = vld [vmem:[#allocation55_spill] sm:$0xff]  ;;  %v7741_v18 = vld [vmem:[#allocation41_spill] sm:$0xff] }
 0x54d   :  { %v6819_v25 = vadd.f32 %v4192_v28, %v3265_v44  ;;  %v6821_v20 = vadd.f32 %v4193_v15, %v3280_v12 }
 0x54e   :  { %1306 = vperm.xlu2 %4489, %v7738_v32  }
 0x54f   :  { %1300 = vperm.xlu1 %4488, %v7738_v32  }
 0x551   :  { %v1198_v14 = vpop.permute.xlu1 %1197 }
 0x552   :  { %vm1956_vm12 = vcmp.eq.s32.totalorder %v1198_v14, %v4768_v51  ;;  %vm1957_vm14 = vcmp.eq.s32.totalorder %v1198_v14, %v4774_v53 }
 0x553   :  { %v4154_v5 = vsel %vm1956_vm12, 1.0, %v7578_v8  ;;  %v4155_v37 = vsel %vm1957_vm14, 1.0, %v7578_v8 }
 0x554   :  { %v6830_v49 = vadd.f32 %v4154_v5, %v7740_v61  ;;  %v6833_v42 = vadd.f32 %v4155_v37, %v7741_v18 }
 0x556   :  { %4492 = vset.pattern.permute.xlu2 %v4588_v13 }
 0x557   :  { %4491 = vset.pattern.permute.xlu1 %v7742_v27 }
 0x558   :  { %v1234_v28 = vpop.permute.xlu2 %1233 }
 0x559   :  { %vm1968_vm13 = vcmp.eq.s32.totalorder %v1234_v28, %v4768_v51  ;;  %vm1969_vm15 = vcmp.eq.s32.totalorder %v1234_v28, %v4774_v53 }
 0x55a   :  { %v4166_v15 = vsel %vm1968_vm13, 1.0, %v7578_v8  ;;  %v4167_v50 = vsel %vm1969_vm15, 1.0, %v7578_v8 }
 0x55b   :  { %v6842_v9 = vadd.f32 %v4166_v15, %v6717_v63  ;;  %v6845_v44 = vadd.f32 %v4167_v50, %v6719_v33 }
 0x55e   :  { %1324 = vperm.xlu2 %4492, %v7738_v32  }
 0x55f   :  { %1318 = vperm.xlu1 %4491, %v7738_v32  }
 0x561   :  { %v1210_v12 = vpop.permute.xlu1 %1209 }
 0x562   :  { %vm1960_vm0 = vcmp.eq.s32.totalorder %v1210_v12, %v4768_v51  ;;  %vm1961_vm1 = vcmp.eq.s32.totalorder %v1210_v12, %v4774_v53 }
 0x563   :  { %v4158_v14 = vsel %vm1960_vm0, 1.0, %v7578_v8  ;;  %v4159_v5 = vsel %vm1961_vm1, 1.0, %v7578_v8 }
 0x564   :  { %v6854_v37 = vadd.f32 %v4158_v14, %v6620_v46  ;;  %v6857_v63 = vadd.f32 %v4159_v5, %v6623_v31  ;;  %v4518_v46 = vld [vmem:[%s7432_s0 + $0x8] sm:$0xff] }
 0x565   :  { %v6868_v28 = vperm.slane %v4518_v46, 6 }
 0x566   :  { %4494 = vset.pattern.permute.xlu2 %v7702_v55 }
 0x567   :  { %4493 = vset.pattern.permute.xlu1 %v7702_v55 }
 0x568   :  { %v1246_v33 = vpop.permute.xlu2 %1245 }
 0x569   :  { %vm1972_vm2 = vcmp.eq.s32.totalorder %v1246_v33, %v4768_v51  ;;  %vm1973_vm3 = vcmp.eq.s32.totalorder %v1246_v33, %v4774_v53 }
 0x56a   :  { %v4170_v61 = vsel %vm1972_vm2, 1.0, %v7578_v8  ;;  %v4171_v18 = vsel %vm1973_vm3, 1.0, %v7578_v8 }
 0x56b   :  { %v6871_v31 = vadd.f32 %v4170_v61, %v6740_v35  ;;  %v6874_v55 = vadd.f32 %v4171_v18, %v6743_v24 }
 0x56e   :  { %1427 = vperm.xlu2 %4494, %v6868_v28  }
 0x56f   :  { %1330 = vperm.xlu1 %4493, %v7738_v32  }
 0x571   :  { %v1228_v15 = vpop.permute.xlu1 %1227 }
 0x572   :  { %vm1966_vm4 = vcmp.eq.s32.totalorder %v1228_v15, %v4768_v51  ;;  %vm1967_vm5 = vcmp.eq.s32.totalorder %v1228_v15, %v4774_v53 }
 0x573   :  { %v4164_v50 = vsel %vm1966_vm4, 1.0, %v7578_v8  ;;  %v4165_v12 = vsel %vm1967_vm5, 1.0, %v7578_v8 }
 0x574   :  { %v6883_v14 = vadd.f32 %v4164_v50, %v6268_v36  ;;  %v6886_v35 = vadd.f32 %v4165_v12, %v6271_v43 }
 0x576   :  { %4497 = vset.pattern.permute.xlu2 %v7669_v40 }
 0x577   :  { %4496 = vset.pattern.permute.xlu1 %v4606_v17 }
 0x578   :  { %v1264_v24 = vpop.permute.xlu2 %1263 }
 0x579   :  { %vm1978_vm6 = vcmp.eq.s32.totalorder %v1264_v24, %v4768_v51  ;;  %vm1979_vm7 = vcmp.eq.s32.totalorder %v1264_v24, %v4774_v53 }
 0x57a   :  { %v4176_v5 = vsel %vm1978_vm6, 1.0, %v7578_v8  ;;  %v4177_v33 = vsel %vm1979_vm7, 1.0, %v7578_v8 }
 0x57b   :  { %v6895_v61 = vadd.f32 %v4176_v5, %v6777_v7  ;;  %v6898_v36 = vadd.f32 %v4177_v33, %v6779_v11  ;;  %v7743_v11 = vld [vmem:[#allocation29_spill] sm:$0xff] }
 0x57e   :  { %1379 = vperm.xlu2 %4497, %v6868_v28  }
 0x57f   :  { %1336 = vperm.xlu1 %4496, %v7738_v32  }
 0x581   :  { %v1240_v17 = vpop.permute.xlu1 %1239 }
 0x582   :  { %vm1970_vm8 = vcmp.eq.s32.totalorder %v1240_v17, %v4768_v51  ;;  %vm1971_vm9 = vcmp.eq.s32.totalorder %v1240_v17, %v4774_v53 }
 0x583   :  { %v4168_v40 = vsel %vm1970_vm8, 1.0, %v7578_v8  ;;  %v4169_v43 = vsel %vm1971_vm9, 1.0, %v7578_v8 }
 0x584   :  { %v6907_v18 = vadd.f32 %v4168_v40, %v6674_v1  ;;  %v6910_v7 = vadd.f32 %v4169_v43, %v6677_v0  ;;  %v7744_v0 = vld [vmem:[#allocation17_spill] sm:$0xff] }
 0x585   :  { %vm1944_vm12 = vcmp.eq.s32.totalorder %v7744_v0, %v4768_v51  ;;  %vm1945_vm14 = vcmp.eq.s32.totalorder %v7744_v0, %v4774_v53 }
 0x586   :  { %1476 = vperm.xlu2 %4497, %v7743_v11   ;;  %v4142_v24 = vsel %vm1944_vm12, 1.0, %v7578_v8  ;;  %v4143_v5 = vsel %vm1945_vm14, 1.0, %v7578_v8 }
 0x587   :  { %1433 = vperm.xlu1 %4496, %v6868_v28  }
 0x588   :  { %v1276_v46 = vpop.permute.xlu2 %1275 }
 0x589   :  { %vm1982_vm10 = vcmp.eq.s32.totalorder %v1276_v46, %v4768_v51  ;;  %vm1983_vm11 = vcmp.eq.s32.totalorder %v1276_v46, %v4774_v53 }
 0x58a   :  { %v4180_v15 = vsel %vm1982_vm10, 1.0, %v7578_v8  ;;  %v4181_v50 = vsel %vm1983_vm11, 1.0, %v7578_v8 }
 0x58b   :  { %v6919_v12 = vadd.f32 %v4180_v15, %v6800_v26  ;;  %v6922_v1 = vadd.f32 %v4181_v50, %v6803_v60  ;;  %v3474_v26 = vadd.f32 %v4142_v24, %v6442_v58  ;;  %v3489_v60 = vadd.f32 %v4143_v5, %v6445_v45 }
 0x58e   :  { %4500 = vset.pattern.permute.xlu2 %v7737_v38 }
 0x58f   :  { %4499 = vset.pattern.permute.xlu1 %v4603_v16 }
 0x591   :  { %v1258_v33 = vpop.permute.xlu1 %1257 }
 0x592   :  { %vm1976_vm13 = vcmp.eq.s32.totalorder %v1258_v33, %v4768_v51  ;;  %vm1977_vm15 = vcmp.eq.s32.totalorder %v1258_v33, %v4774_v53  ;;  %v3615_v33 = vld [vmem:[%s7433_s1 + $0xf8] sm:$0xff] }
 0x593   :  { %v4174_v17 = vsel %vm1976_vm13, 1.0, %v7578_v8  ;;  %v4175_v40 = vsel %vm1977_vm15, 1.0, %v7578_v8  ;;  %3681 = vmatpush.msra.mxu1 %v3615_v33  ;;  %4294 = vmatpush.msra.mxu3 %v3615_v33  ;;  %v3592_v33 = vld [vmem:[%s7433_s1 + $0x40] sm:$0xff] }
 0x594   :  { %v6938_v38 = vadd.f32 %v4174_v17, %v3474_v26  ;;  %v6940_v43 = vadd.f32 %v4175_v40, %v3489_v60  ;;  %v3597_v26 = vld [vmem:[%s7433_s1 + $0x68] sm:$0xff]  ;;  %v3612_v17 = vld [vmem:[%s7433_s1 + $0xe0] sm:$0xff] }
 0x596   :  { %1385 = vperm.xlu2 %4500, %v6868_v28  }
 0x597   :  { %1342 = vperm.xlu1 %4499, %v7738_v32  }
 0x598   :  { %v1295_v16 = vpop.permute.xlu2 %1294 }
 0x599   :  { %vm1988_vm0 = vcmp.eq.s32.totalorder %v1295_v16, %v4768_v51  ;;  %vm1989_vm1 = vcmp.eq.s32.totalorder %v1295_v16, %v4774_v53 }
 0x59a   :  { %v4186_v58 = vsel %vm1988_vm0, 1.0, %v7578_v8  ;;  %v4187_v45 = vsel %vm1989_vm1, 1.0, %v7578_v8 }
 0x59b   :  { %v6949_v46 = vadd.f32 %v4186_v58, %v6830_v49  ;;  %v6952_v15 = vadd.f32 %v4187_v45, %v6833_v42  ;;  %v3599_v42 = vld [vmem:[%s7433_s1 + $0x78] sm:$0xff] }
 0x59c   :  { %3616 = vmatpush.msra.mxu0 %v3599_v42  ;;  %4278 = vmatpush.msra.mxu2 %v3599_v42  ;;  %v3609_v42 = vld [vmem:[%s7433_s1 + $0xc8] sm:$0xff] }
 0x59e   :  { %1482 = vperm.xlu2 %4500, %v7743_v11  }
 0x59f   :  { %1439 = vperm.xlu1 %4499, %v6868_v28  }
 0x5a1   :  { %v1270_v50 = vpop.permute.xlu1 %1269 }
 0x5a2   :  { %vm1980_vm2 = vcmp.eq.s32.totalorder %v1270_v50, %v4768_v51  ;;  %vm1981_vm3 = vcmp.eq.s32.totalorder %v1270_v50, %v4774_v53  ;;  %v3595_v50 = vld [vmem:[%s7433_s1 + $0x58] sm:$0xff] }
 0x5a3   :  { %v4178_v0 = vsel %vm1980_vm2, 1.0, %v7578_v8  ;;  %v4179_v24 = vsel %vm1981_vm3, 1.0, %v7578_v8 }
 0x5a4   :  { %v6961_v5 = vadd.f32 %v4178_v0, %v6728_v29  ;;  %v6964_v49 = vadd.f32 %v4179_v24, %v6731_v56  ;;  %v3598_v29 = vld [vmem:[%s7433_s1 + $0x70] sm:$0xff]  ;;  %v3611_v0 = vld [vmem:[%s7433_s1 + $0xd8] sm:$0xff]  ;;  %v3593_v24 = vld [vmem:[%s7433_s1 + $0x48] sm:$0xff] }
 0x5a5   :  { %v3614_v56 = vld [vmem:[%s7433_s1 + $0xf0] sm:$0xff]  ;;  %3617 = vmatpush.msra.mxu0 %v3598_v29  ;;  %4279 = vmatpush.msra.mxu2 %v3598_v29  ;;  %v3608_v29 = vld [vmem:[%s7433_s1 + $0xc0] sm:$0xff] }
 0x5a6   :  { %4503 = vset.pattern.permute.xlu2 %v7726_v52  ;;  %3682 = vmatpush.msra.mxu1 %v3614_v56  ;;  %v3596_v52 = vld [vmem:[%s7433_s1 + $0x60] sm:$0xff] }
 0x5a7   :  { %4502 = vset.pattern.permute.xlu1 %v4624_v21  ;;  %v3613_v21 = vld [vmem:[%s7433_s1 + $0xe8] sm:$0xff]  ;;  %4295 = vmatpush.msra.mxu3 %v3614_v56  ;;  %v3591_v56 = vld [vmem:[%s7433_s1 + $0x38] sm:$0xff] }
 0x5a8   :  { %v1307_v60 = vpop.permute.xlu2 %1306  ;;  %3618 = vmatpush.msra.mxu0 %v3597_v26  ;;  %3683 = vmatpush.msra.mxu1 %v3613_v21 }
 0x5a9   :  { %vm1992_vm4 = vcmp.eq.s32.totalorder %v1307_v60, %v4768_v51  ;;  %vm1993_vm5 = vcmp.eq.s32.totalorder %v1307_v60, %v4774_v53  ;;  %4280 = vmatpush.msra.mxu2 %v3597_v26  ;;  %4296 = vmatpush.msra.mxu3 %v3613_v21  ;;  %v3607_v26 = vld [vmem:[%s7433_s1 + $0xb8] sm:$0xff]  ;;  %v3590_v60 = vld [vmem:[%s7433_s1 + $0x30] sm:$0xff] }
 0x5aa   :  { %v4190_v40 = vsel %vm1992_vm4, 1.0, %v7578_v8  ;;  %v4191_v16 = vsel %vm1993_vm5, 1.0, %v7578_v8  ;;  %3619 = vmatpush.msra.mxu0 %v3596_v52  ;;  %3684 = vmatpush.msra.mxu1 %v3612_v17  ;;  %v3606_v21 = vld [vmem:[%s7433_s1 + $0xb0] sm:$0xff] }
 0x5ab   :  { %v6997_v58 = vadd.f32 %v4190_v40, %v6854_v37  ;;  %v7000_v45 = vadd.f32 %v4191_v16, %v6857_v63  ;;  %4281 = vmatpush.msra.mxu2 %v3596_v52  ;;  %4297 = vmatpush.msra.mxu3 %v3612_v17  ;;  %v3594_v37 = vld [vmem:[%s7433_s1 + $0x50] sm:$0xff] }
 0x5ac   :  { %3620 = vmatpush.msra.mxu0 %v3595_v50  ;;  %3685 = vmatpush.msra.mxu1 %v3611_v0  ;;  %v3610_v63 = vld [vmem:[%s7433_s1 + $0xd0] sm:$0xff] }
 0x5ad   :  { %4282 = vmatpush.msra.mxu2 %v3595_v50  ;;  %4298 = vmatpush.msra.mxu3 %v3611_v0  ;;  %v3589_v50 = vld [vmem:[%s7433_s1 + $0x28] sm:$0xff] }
 0x5ae   :  { %1391 = vperm.xlu2 %4503, %v6868_v28   ;;  %3621 = vmatpush.msra.mxu0 %v3594_v37  ;;  %v3605_v0 = vld [vmem:[%s7433_s1 + $0xa8] sm:$0xff] }
 0x5af   :  { %1348 = vperm.xlu1 %4502, %v7738_v32   ;;  %3686 = vmatpush.msra.mxu1 %v3610_v63 }
 0x5b0   :  { %4283 = vmatpush.msra.mxu2 %v3594_v37  ;;  %3622 = vmatpush.msra.mxu0 %v3593_v24  ;;  %v3588_v37 = vld [vmem:[%s7433_s1 + $0x20] sm:$0xff] }
 0x5b1   :  { %3687 = vmatpush.msra.mxu1 %v3609_v42  ;;  %4299 = vmatpush.msra.mxu3 %v3610_v63  ;;  %v7042_v17 = vpop.permute.xlu1 %1288 }
 0x5b2   :  { %4284 = vmatpush.msra.mxu2 %v3593_v24  ;;  %3623 = vmatpush.msra.mxu0 %v3592_v33 }
 0x5b3   :  { %3688 = vmatpush.msra.mxu1 %v3608_v29  ;;  %4300 = vmatpush.msra.mxu3 %v3609_v42  ;;  %v3604_v42 = vld [vmem:[%s7433_s1 + $0xa0] sm:$0xff] }
 0x5b4   :  { %3624 = vmatpush.msra.mxu0 %v3591_v56  ;;  %4285 = vmatpush.msra.mxu2 %v3592_v33  ;;  %v3587_v33 = vld [vmem:[%s7433_s1 + $0x18] sm:$0xff] }
 0x5b5   :  { %3689 = vmatpush.msra.mxu1 %v3607_v26  ;;  %4301 = vmatpush.msra.mxu3 %v3608_v29  ;;  %v3602_v29 = vld [vmem:[%s7433_s1 + $0x90] sm:$0xff] }
 0x5b6   :  { %1488 = vperm.xlu2 %4503, %v7743_v11   ;;  %3625 = vmatpush.msra.mxu0 %v3590_v60 }
 0x5b7   :  { %1445 = vperm.xlu1 %4502, %v6868_v28   ;;  %3690 = vmatpush.msra.mxu1 %v3606_v21 }
 0x5b8   :  { %v1325_v52 = vpop.permute.xlu2 %1324  ;;  %4286 = vmatpush.msra.mxu2 %v3591_v56  ;;  %3626 = vmatpush.msra.mxu0 %v3589_v50 }
 0x5b9   :  { %vm1998_vm6 = vcmp.eq.s32.totalorder %v1325_v52, %v4768_v51  ;;  %vm1999_vm7 = vcmp.eq.s32.totalorder %v1325_v52, %v4774_v53  ;;  %4302 = vmatpush.msra.mxu3 %v3607_v26  ;;  %3691 = vmatpush.msra.mxu1 %v3605_v0 }
 0x5ba   :  { %v4196_v40 = vsel %vm1998_vm6, 1.0, %v7578_v8  ;;  %v4197_v16 = vsel %vm1999_vm7, 1.0, %v7578_v8  ;;  %4287 = vmatpush.msra.mxu2 %v3590_v60  ;;  %3627 = vmatpush.msra.mxu0 %v3588_v37  ;;  %vm1986_vm6 = vcmp.eq.s32.totalorder %v7042_v17, %v4768_v51  ;;  %vm1987_vm7 = vcmp.eq.s32.totalorder %v7042_v17, %v4774_v53 }
 0x5bb   :  { %v7058_v63 = vadd.f32 %v4196_v40, %v6883_v14  ;;  %v7061_v24 = vadd.f32 %v4197_v16, %v6886_v35  ;;  %4303 = vmatpush.msra.mxu3 %v3606_v21  ;;  %3692 = vmatpush.msra.mxu1 %v3604_v42  ;;  %v3603_v14 = vld [vmem:[%s7433_s1 + $0x98] sm:$0xff]  ;;  %v3586_v35 = vld [vmem:[%s7433_s1 + $0x10] sm:$0xff]  ;;  %v3584_v40 = vld [vmem:[%s7433_s1] sm:$0xff] }
 0x5bc   :  { %4288 = vmatpush.msra.mxu2 %v3589_v50  ;;  %3628 = vmatpush.msra.mxu0 %v3587_v33  ;;  %v3600_v16 = vld [vmem:[%s7433_s1 + $0x80] sm:$0xff] }
 0x5bd   :  { %4304 = vmatpush.msra.mxu3 %v3605_v0  ;;  %3693 = vmatpush.msra.mxu1 %v3603_v14 }
 0x5be   :  { %4506 = vset.pattern.permute.xlu2 %v7685_v4  ;;  %4289 = vmatpush.msra.mxu2 %v3588_v37  ;;  %v3585_v4 = vld [vmem:[%s7433_s1 + $0x8] sm:$0xff] }
 0x5bf   :  { %4505 = vset.pattern.permute.xlu1 %v7733_v57  ;;  %3629 = vmatpush.msra.mxu0 %v3586_v35  ;;  %v3601_v57 = vld [vmem:[%s7433_s1 + $0x88] sm:$0xff] }
 0x5c0   :  { %4305 = vmatpush.msra.mxu3 %v3604_v42  ;;  %3694 = vmatpush.msra.mxu1 %v3602_v29 }
 0x5c1   :  { %v1301_v56 = vpop.permute.xlu1 %1300  ;;  %4290 = vmatpush.msra.mxu2 %v3587_v33  ;;  %3630 = vmatpush.msra.mxu0 %v3585_v4 }
 0x5c2   :  { %vm1990_vm8 = vcmp.eq.s32.totalorder %v1301_v56, %v4768_v51  ;;  %vm1991_vm9 = vcmp.eq.s32.totalorder %v1301_v56, %v4774_v53  ;;  %4306 = vmatpush.msra.mxu3 %v3603_v14  ;;  %3695 = vmatpush.msra.mxu1 %v3601_v57 }
 0x5c3   :  { %v4188_v26 = vsel %vm1990_vm8, 1.0, %v7578_v8  ;;  %v4189_v60 = vsel %vm1991_vm9, 1.0, %v7578_v8  ;;  %4291 = vmatpush.msra.mxu2 %v3586_v35  ;;  %3631 = vmatpush.msra.mxu0 %v3584_v40 }
 0x5c4   :  { %v7091_v21 = vadd.f32 %v4188_v26, %v6788_v62  ;;  %v7094_v52 = vadd.f32 %v4189_v60, %v6791_v34  ;;  %4307 = vmatpush.msra.mxu3 %v3602_v29  ;;  %3696 = vmatpush.msra.mxu1 %v3600_v16 }
 0x5c5   :  { %4292 = vmatpush.msra.mxu2 %v3585_v4 }
 0x5c6   :  { %1397 = vperm.xlu2 %4506, %v6868_v28   ;;  %4308 = vmatpush.msra.mxu3 %v3601_v57 }
 0x5c7   :  { %1354 = vperm.xlu1 %4505, %v7738_v32   ;;  %4293 = vmatpush.msra.mxu2 %v3584_v40 }
 0x5c8   :  { %4309 = vmatpush.msra.mxu3 %v3600_v16  ;;  %v1428_v62 = vpop.permute.xlu2 %1427 }
 0x5c9   :  { %vm2032_vm13 = vcmp.eq.s32.totalorder %v1428_v62, %v4768_v51  ;;  %vm2033_vm15 = vcmp.eq.s32.totalorder %v1428_v62, %v4774_v53  ;;  %v7745_v62 = vld [vmem:[#allocation77_spill] sm:$0xff] }
 0x5ca   :  { %vm2064_vm4 = vcmp.eq.s32.totalorder %v7745_v62, %v4768_v51  ;;  %vm2065_vm5 = vcmp.eq.s32.totalorder %v7745_v62, %v4774_v53 }
 0x5ce   :  { %1494 = vperm.xlu2 %4506, %v7743_v11  }
 0x5cf   :  { %1451 = vperm.xlu1 %4505, %v6868_v28  }
 0x5d1   :  { %v1319_v34 = vpop.permute.xlu1 %1318 }
 0x5d2   :  { %vm1996_vm10 = vcmp.eq.s32.totalorder %v1319_v34, %v4768_v51  ;;  %vm1997_vm11 = vcmp.eq.s32.totalorder %v1319_v34, %v4774_v53 }
 0x5d3   :  { %v4194_v50 = vsel %vm1996_vm10, 1.0, %v7578_v8  ;;  %v4195_v0 = vsel %vm1997_vm11, 1.0, %v7578_v8 }
 0x5d4   :  { %v7111_v37 = vadd.f32 %v4194_v50, %v6651_v22  ;;  %v7114_v42 = vadd.f32 %v4195_v0, %v6653_v54  ;;  %v4262_v0 = vsel %vm2064_vm4, 1.0, %v7578_v8 }
 0x5d6   :  { %4509 = vset.pattern.permute.xlu2 %v4542_v3  ;;  %v4230_v3 = vsel %vm2032_vm13, 1.0, %v7578_v8 }
 0x5d7   :  { %4508 = vset.pattern.permute.xlu1 %v7716_v59  ;;  %v4231_v59 = vsel %vm2033_vm15, 1.0, %v7578_v8 }
 0x5d8   :  { %v1380_v33 = vpop.permute.xlu2 %1379 }
 0x5d9   :  { %vm2016_vm12 = vcmp.eq.s32.totalorder %v1380_v33, %v4768_v51  ;;  %vm2017_vm14 = vcmp.eq.s32.totalorder %v1380_v33, %v4774_v53  ;;  %v4263_v33 = vsel %vm2065_vm5, 1.0, %v7578_v8 }
 0x5da   :  { %v4214_v14 = vsel %vm2016_vm12, 1.0, %v7578_v8  ;;  %v4215_v22 = vsel %vm2017_vm14, 1.0, %v7578_v8 }
 0x5db   :  { %v3117_v29 = vadd.f32 %v4214_v14, %v6763_v48  ;;  %v3132_v56 = vadd.f32 %v4215_v22, %v6765_v39 }
 0x5de   :  { %1403 = vperm.xlu2 %4509, %v6868_v28  }
 0x5df   :  { %1360 = vperm.xlu1 %4508, %v7738_v32  }
 0x5e0   :  { %v1477_v54 = vpop.permute.xlu2 %1476 }
 0x5e1   :  { %vm2048_vm0 = vcmp.eq.s32.totalorder %v1477_v54, %v4768_v51  ;;  %vm2049_vm1 = vcmp.eq.s32.totalorder %v1477_v54, %v4774_v53  ;;  %v1331_v35 = vpop.permute.xlu1 %1330 }
 0x5e2   :  { %vm2000_vm2 = vcmp.eq.s32.totalorder %v1331_v35, %v4768_v51  ;;  %vm2001_vm3 = vcmp.eq.s32.totalorder %v1331_v35, %v4774_v53  ;;  %v4246_v4 = vsel %vm2048_vm0, 1.0, %v7578_v8  ;;  %v4247_v57 = vsel %vm2049_vm1, 1.0, %v7578_v8 }
 0x5e3   :  { %v4198_v26 = vsel %vm2000_vm2, 1.0, %v7578_v8  ;;  %v4199_v60 = vsel %vm2001_vm3, 1.0, %v7578_v8  ;;  %v3118_v40 = vadd.f32 %v4246_v4, %v3117_v29  ;;  %v3133_v16 = vadd.f32 %v4247_v57, %v3132_v56  ;;  %v7746_v56 = vld [vmem:[#allocation84_spill] sm:$0xff] }
 0x5e4   :  { %v3356_v48 = vadd.f32 %v4198_v26, %v6842_v9  ;;  %v3371_v39 = vadd.f32 %v4199_v60, %v6845_v44  ;;  %vm2066_vm12 = vcmp.eq.s32.totalorder %v7746_v56, %v4768_v51  ;;  %vm2067_vm14 = vcmp.eq.s32.totalorder %v7746_v56, %v4774_v53 }
 0x5e5   :  { %3632 = vmatmul.f32.vlgmr.msra.gmra.mxu0 %v3118_v40  ;;  %3697 = vmatmul.f32.vlgmr.msra.gmra.mxu1 %v3133_v16 }
 0x5e6   :  { %1500 = vperm.xlu2 %4509, %v7743_v11   ;;  %v3357_v34 = vadd.f32 %v4230_v3, %v3356_v48  ;;  %v3372_v50 = vadd.f32 %v4231_v59, %v3371_v39  ;;  %v4184_v3 = vsel %vm1986_vm6, 1.0, %v7578_v8  ;;  %v4185_v59 = vsel %vm1987_vm7, 1.0, %v7578_v8 }
 0x5e7   :  { %1457 = vperm.xlu1 %4508, %v6868_v28   ;;  %v3146_v17 = vadd.f32 %v4184_v3, %v6597_v6  ;;  %v3161_v54 = vadd.f32 %v4185_v59, %v6599_v41 }
 0x5e8   :  { %v3358_v14 = vadd.f32 %v4262_v0, %v3357_v34  ;;  %v3373_v22 = vadd.f32 %v4263_v33, %v3372_v50  ;;  %v4264_v50 = vsel %vm2066_vm12, 1.0, %v7578_v8  ;;  %v4265_v0 = vsel %vm2067_vm14, 1.0, %v7578_v8 }
 0x5ea   :  { %3656 = vmatmul.f32.vlgmr.msra.gmra.mxu2 %v3358_v14  ;;  %3721 = vmatmul.f32.vlgmr.msra.gmra.mxu3 %v3373_v22 }
 0x5ee   :  { %4512 = vset.pattern.permute.xlu2 %v4573_v10 }
 0x5ef   :  { %4511 = vset.pattern.permute.xlu1 %v4636_v23 }
 0x5f0   :  { %v1386_v9 = vpop.permute.xlu2 %1385 }
 0x5f1   :  { %v1337_v44 = vpop.permute.xlu1 %1336  ;;  %vm2018_vm8 = vcmp.eq.s32.totalorder %v1386_v9, %v4768_v51  ;;  %vm2019_vm9 = vcmp.eq.s32.totalorder %v1386_v9, %v4774_v53 }
 0x5f2   :  { %vm2002_vm10 = vcmp.eq.s32.totalorder %v1337_v44, %v4768_v51  ;;  %vm2003_vm11 = vcmp.eq.s32.totalorder %v1337_v44, %v4774_v53  ;;  %v4216_v10 = vsel %vm2018_vm8, 1.0, %v7578_v8  ;;  %v4217_v23 = vsel %vm2019_vm9, 1.0, %v7578_v8 }
 0x5f3   :  { %v4200_v35 = vsel %vm2002_vm10, 1.0, %v7578_v8  ;;  %v4201_v29 = vsel %vm2003_vm11, 1.0, %v7578_v8  ;;  %v3147_v57 = vadd.f32 %v4216_v10, %v3146_v17  ;;  %v3162_v26 = vadd.f32 %v4217_v23, %v3161_v54 }
 0x5f4   :  { %v3386_v6 = vadd.f32 %v4200_v35, %v6907_v18  ;;  %v3401_v41 = vadd.f32 %v4201_v29, %v6910_v7 }
 0x5f6   :  { %1409 = vperm.xlu2 %4512, %v6868_v28  }
 0x5f7   :  { %1366 = vperm.xlu1 %4511, %v7738_v32  }
 0x5f8   :  { %v1483_v4 = vpop.permute.xlu2 %1482 }
 0x5f9   :  { %vm2050_vm13 = vcmp.eq.s32.totalorder %v1483_v4, %v4768_v51  ;;  %vm2051_vm15 = vcmp.eq.s32.totalorder %v1483_v4, %v4774_v53  ;;  %v1434_v60 = vpop.permute.xlu1 %1433 }
 0x5fa   :  { %vm2034_vm0 = vcmp.eq.s32.totalorder %v1434_v60, %v4768_v51  ;;  %vm2035_vm1 = vcmp.eq.s32.totalorder %v1434_v60, %v4774_v53  ;;  %v4248_v40 = vsel %vm2050_vm13, 1.0, %v7578_v8  ;;  %v4249_v16 = vsel %vm2051_vm15, 1.0, %v7578_v8 }
 0x5fb   :  { %v4232_v62 = vsel %vm2034_vm0, 1.0, %v7578_v8  ;;  %v4233_v48 = vsel %vm2035_vm1, 1.0, %v7578_v8  ;;  %v3148_v18 = vadd.f32 %v4248_v40, %v3147_v57  ;;  %v3163_v39 = vadd.f32 %v4249_v16, %v3162_v26  ;;  %v7748_v16 = vld [vmem:[#allocation91_spill] sm:$0xff] }
 0x5fc   :  { %v3387_v7 = vadd.f32 %v4232_v62, %v3386_v6  ;;  %v3402_v34 = vadd.f32 %v4233_v48, %v3401_v41  ;;  %vm1974_vm12 = vcmp.eq.s32.totalorder %v7748_v16, %v4768_v51  ;;  %vm1975_vm14 = vcmp.eq.s32.totalorder %v7748_v16, %v4774_v53 }
 0x5fd   :  { %3635 = vmatmul.f32.gmra.mxu0 %v3148_v18  ;;  %3700 = vmatmul.f32.gmra.mxu1 %v3163_v39  ;;  %v4172_v48 = vsel %vm1974_vm12, 1.0, %v7578_v8 }
 0x5fe   :  { %1506 = vperm.xlu2 %4512, %v7743_v11   ;;  %v3388_v33 = vadd.f32 %v4264_v50, %v3387_v7  ;;  %v3403_v14 = vadd.f32 %v4265_v0, %v3402_v34  ;;  %v3445_v50 = vadd.f32 %v4172_v48, %v6698_v47 }
 0x5ff   :  { %1463 = vperm.xlu1 %4511, %v6868_v28  }
 0x600   :  { %3659 = vmatmul.f32.gmra.mxu2 %v3388_v33  ;;  %3724 = vmatmul.f32.gmra.mxu3 %v3403_v14  ;;  %v7749_v33 = vld [vmem:[#allocation36_spill] sm:$0xff] }
 0x606   :  { %4514 = vset.pattern.permute.xlu2 %v7742_v27 }
 0x607   :  { %4513 = vset.pattern.permute.xlu1 %v4539_v2  ;;  %v7747_v2 = vld [vmem:[#allocation88_spill] sm:$0xff] }
 0x608   :  { %v1392_v22 = vpop.permute.xlu2 %1391  ;;  %vm2068_vm6 = vcmp.eq.s32.totalorder %v7747_v2, %v4768_v51  ;;  %vm2069_vm7 = vcmp.eq.s32.totalorder %v7747_v2, %v4774_v53 }
 0x609   :  { %v1343_v9 = vpop.permute.xlu1 %1342  ;;  %vm2020_vm2 = vcmp.eq.s32.totalorder %v1392_v22, %v4768_v51  ;;  %vm2021_vm3 = vcmp.eq.s32.totalorder %v1392_v22, %v4774_v53  ;;  %v4266_v26 = vsel %vm2068_vm6, 1.0, %v7578_v8  ;;  %v4267_v6 = vsel %vm2069_vm7, 1.0, %v7578_v8 }
 0x60a   :  { %vm2004_vm4 = vcmp.eq.s32.totalorder %v1343_v9, %v4768_v51  ;;  %vm2005_vm5 = vcmp.eq.s32.totalorder %v1343_v9, %v4774_v53  ;;  %v4218_v44 = vsel %vm2020_vm2, 1.0, %v7578_v8  ;;  %v4219_v3 = vsel %vm2021_vm3, 1.0, %v7578_v8 }
 0x60b   :  { %v4202_v59 = vsel %vm2004_vm4, 1.0, %v7578_v8  ;;  %v4203_v27 = vsel %vm2005_vm5, 1.0, %v7578_v8  ;;  %v3177_v23 = vadd.f32 %v4218_v44, %v6949_v46  ;;  %v3192_v17 = vadd.f32 %v4219_v3, %v6952_v15 }
 0x60c   :  { %v3416_v54 = vadd.f32 %v4202_v59, %v6871_v31  ;;  %v3431_v35 = vadd.f32 %v4203_v27, %v6874_v55  ;;  %vm2070_vm2 = vcmp.eq.s32.totalorder %v7749_v33, %v4768_v51  ;;  %vm2071_vm3 = vcmp.eq.s32.totalorder %v7749_v33, %v4774_v53 }
 0x60e   :  { %1415 = vperm.xlu2 %4514, %v6868_v28  }
 0x60f   :  { %1372 = vperm.xlu1 %4513, %v7738_v32  }
 0x610   :  { %v1489_v10 = vpop.permute.xlu2 %1488 }
 0x611   :  { %vm2052_vm8 = vcmp.eq.s32.totalorder %v1489_v10, %v4768_v51  ;;  %vm2053_vm9 = vcmp.eq.s32.totalorder %v1489_v10, %v4774_v53  ;;  %v1440_v32 = vpop.permute.xlu1 %1439  ;;  %v4268_v10 = vsel %vm2070_vm2, 1.0, %v7578_v8 }
 0x612   :  { %vm2036_vm10 = vcmp.eq.s32.totalorder %v1440_v32, %v4768_v51  ;;  %vm2037_vm11 = vcmp.eq.s32.totalorder %v1440_v32, %v4774_v53  ;;  %v4250_v29 = vsel %vm2052_vm8, 1.0, %v7578_v8  ;;  %v4251_v56 = vsel %vm2053_vm9, 1.0, %v7578_v8 }
 0x613   :  { %v4234_v46 = vsel %vm2036_vm10, 1.0, %v7578_v8  ;;  %v4235_v15 = vsel %vm2037_vm11, 1.0, %v7578_v8  ;;  %v3178_v31 = vadd.f32 %v4250_v29, %v3177_v23  ;;  %v3193_v4 = vadd.f32 %v4251_v56, %v3192_v17 }
 0x614   :  { %v3417_v55 = vadd.f32 %v4234_v46, %v3416_v54  ;;  %v3432_v57 = vadd.f32 %v4235_v15, %v3431_v35  ;;  %v4269_v23 = vsel %vm2071_vm3, 1.0, %v7578_v8 }
 0x615   :  { %3638 = vmatmul.f32.gmra.mxu0 %v3178_v31  ;;  %3703 = vmatmul.f32.gmra.mxu1 %v3193_v4  ;;  %v7750_v31 = vld [vmem:[#allocation6_spill] sm:$0xff] }
 0x616   :  { %1512 = vperm.xlu2 %4514, %v7743_v11   ;;  %v3418_v41 = vadd.f32 %v4266_v26, %v3417_v55  ;;  %v3433_v60 = vadd.f32 %v4267_v6, %v3432_v57  ;;  %vm2072_vm12 = vcmp.eq.s32.totalorder %v7750_v31, %v4768_v51 }
 0x617   :  { %1469 = vperm.xlu1 %4513, %v6868_v28   ;;  %v4270_v48 = vsel %vm2072_vm12, 1.0, %v7578_v8 }
 0x618   :  { %3662 = vmatmul.f32.gmra.mxu2 %v3418_v41  ;;  %3727 = vmatmul.f32.gmra.mxu3 %v3433_v60 }
 0x61e   :  { %4517 = vset.pattern.permute.xlu2 %v4588_v13 }
 0x61f   :  { %4516 = vset.pattern.permute.xlu1 %v4588_v13  ;;  %v4173_v13 = vsel %vm1975_vm14, 1.0, %v7578_v8  ;;  %vm2073_vm14 = vcmp.eq.s32.totalorder %v7750_v31, %v4774_v53 }
 0x620   :  { %v1398_v40 = vpop.permute.xlu2 %1397  ;;  %v3460_v0 = vadd.f32 %v4173_v13, %v6701_v19  ;;  %v4271_v13 = vsel %vm2073_vm14, 1.0, %v7578_v8 }
 0x621   :  { %v1349_v62 = vpop.permute.xlu1 %1348  ;;  %vm2022_vm13 = vcmp.eq.s32.totalorder %v1398_v40, %v4768_v51  ;;  %vm2023_vm15 = vcmp.eq.s32.totalorder %v1398_v40, %v4774_v53 }
 0x622   :  { %vm2006_vm0 = vcmp.eq.s32.totalorder %v1349_v62, %v4768_v51  ;;  %vm2007_vm1 = vcmp.eq.s32.totalorder %v1349_v62, %v4774_v53  ;;  %v4220_v18 = vsel %vm2022_vm13, 1.0, %v7578_v8  ;;  %v4221_v39 = vsel %vm2023_vm15, 1.0, %v7578_v8 }
 0x623   :  { %v4204_v7 = vsel %vm2006_vm0, 1.0, %v7578_v8  ;;  %v4205_v34 = vsel %vm2007_vm1, 1.0, %v7578_v8  ;;  %v3207_v22 = vadd.f32 %v4220_v18, %v7091_v21  ;;  %v3222_v9 = vadd.f32 %v4221_v39, %v7094_v52 }
 0x624   :  { %v3446_v44 = vadd.f32 %v4204_v7, %v3445_v50  ;;  %v3461_v3 = vadd.f32 %v4205_v34, %v3460_v0 }
 0x626   :  { %1518 = vperm.xlu2 %4517, %v7743_v11  }
 0x627   :  { %1421 = vperm.xlu1 %4516, %v6868_v28  }
 0x628   :  { %v1495_v14 = vpop.permute.xlu2 %1494 }
 0x629   :  { %vm2054_vm4 = vcmp.eq.s32.totalorder %v1495_v14, %v4768_v51  ;;  %vm2055_vm5 = vcmp.eq.s32.totalorder %v1495_v14, %v4774_v53  ;;  %v1446_v47 = vpop.permute.xlu1 %1445 }
 0x62a   :  { %vm2038_vm6 = vcmp.eq.s32.totalorder %v1446_v47, %v4768_v51  ;;  %vm2039_vm7 = vcmp.eq.s32.totalorder %v1446_v47, %v4774_v53  ;;  %v4252_v19 = vsel %vm2054_vm4, 1.0, %v7578_v8  ;;  %v4253_v28 = vsel %vm2055_vm5, 1.0, %v7578_v8 }
 0x62b   :  { %v4236_v11 = vsel %vm2038_vm6, 1.0, %v7578_v8  ;;  %v4237_v21 = vsel %vm2039_vm7, 1.0, %v7578_v8  ;;  %v3208_v52 = vadd.f32 %v4252_v19, %v3207_v22  ;;  %v3223_v59 = vadd.f32 %v4253_v28, %v3222_v9 }
 0x62c   :  { %v3447_v27 = vadd.f32 %v4236_v11, %v3446_v44  ;;  %v3462_v2 = vadd.f32 %v4237_v21, %v3461_v3  ;;  %vm2074_vm6 = vcmp.eq.s32.totalorder %v6473_v30, %v4768_v51  ;;  %vm2075_vm7 = vcmp.eq.s32.totalorder %v6473_v30, %v4774_v53 }
 0x62d   :  { %3641 = vmatmul.f32.gmra.mxu0 %v3208_v52  ;;  %3706 = vmatmul.f32.gmra.mxu1 %v3223_v59  ;;  %v4272_v59 = vsel %vm2074_vm6, 1.0, %v7578_v8 }
 0x62e   :  { %v3448_v17 = vadd.f32 %v4268_v10, %v3447_v27  ;;  %v3463_v54 = vadd.f32 %v4269_v23, %v3462_v2  ;;  %v4273_v27 = vsel %vm2075_vm7, 1.0, %v7578_v8 }
 0x630   :  { %3665 = vmatmul.f32.gmra.mxu2 %v3448_v17  ;;  %3730 = vmatmul.f32.gmra.mxu3 %v3463_v54 }
 0x638   :  { %v1404_v35 = vpop.permute.xlu2 %1403 }
 0x639   :  { %v1355_v32 = vpop.permute.xlu1 %1354  ;;  %vm2024_vm8 = vcmp.eq.s32.totalorder %v1404_v35, %v4768_v51  ;;  %vm2025_vm9 = vcmp.eq.s32.totalorder %v1404_v35, %v4774_v53 }
 0x63a   :  { %vm2008_vm10 = vcmp.eq.s32.totalorder %v1355_v32, %v4768_v51  ;;  %vm2009_vm11 = vcmp.eq.s32.totalorder %v1355_v32, %v4774_v53  ;;  %v4222_v29 = vsel %vm2024_vm8, 1.0, %v7578_v8  ;;  %v4223_v56 = vsel %vm2025_vm9, 1.0, %v7578_v8 }
 0x63b   :  { %v4206_v46 = vsel %vm2008_vm10, 1.0, %v7578_v8  ;;  %v4207_v15 = vsel %vm2009_vm11, 1.0, %v7578_v8  ;;  %v3237_v55 = vadd.f32 %v4222_v29, %v6997_v58  ;;  %v3252_v57 = vadd.f32 %v4223_v56, %v7000_v45  ;;  %v1561_v29 = vpop.permute.xlu0 %1560 }
 0x63c   :  { %v3476_v26 = vadd.f32 %v4206_v46, %v6938_v38  ;;  %v3491_v6 = vadd.f32 %v4207_v15, %v6940_v43 }
 0x640   :  { %v1501_v4 = vpop.permute.xlu2 %1500 }
 0x641   :  { %vm2056_vm13 = vcmp.eq.s32.totalorder %v1501_v4, %v4768_v51  ;;  %vm2057_vm15 = vcmp.eq.s32.totalorder %v1501_v4, %v4774_v53  ;;  %v1452_v41 = vpop.permute.xlu1 %1451 }
 0x642   :  { %vm2040_vm0 = vcmp.eq.s32.totalorder %v1452_v41, %v4768_v51  ;;  %vm2041_vm1 = vcmp.eq.s32.totalorder %v1452_v41, %v4774_v53  ;;  %v4254_v60 = vsel %vm2056_vm13, 1.0, %v7578_v8  ;;  %v4255_v40 = vsel %vm2057_vm15, 1.0, %v7578_v8 }
 0x643   :  { %v4238_v58 = vsel %vm2040_vm0, 1.0, %v7578_v8  ;;  %v4239_v45 = vsel %vm2041_vm1, 1.0, %v7578_v8  ;;  %v3238_v38 = vadd.f32 %v4254_v60, %v3237_v55  ;;  %v3253_v16 = vadd.f32 %v4255_v40, %v3252_v57 }
 0x644   :  { %v3477_v43 = vadd.f32 %v4238_v58, %v3476_v26  ;;  %v3492_v62 = vadd.f32 %v4239_v45, %v3491_v6  ;;  %vm2076_vm0 = vcmp.eq.s32.totalorder %v1561_v29, %v4768_v51  ;;  %vm2077_vm1 = vcmp.eq.s32.totalorder %v1561_v29, %v4774_v53 }
 0x645   :  { %3644 = vmatmul.f32.gmra.mxu0 %v3238_v38  ;;  %3709 = vmatmul.f32.gmra.mxu1 %v3253_v16  ;;  %v4274_v41 = vsel %vm2076_vm0, 1.0, %v7578_v8  ;;  %v4275_v60 = vsel %vm2077_vm1, 1.0, %v7578_v8 }
 0x646   :  { %v3478_v18 = vadd.f32 %v4270_v48, %v3477_v43  ;;  %v3493_v39 = vadd.f32 %v4271_v13, %v3492_v62 }
 0x648   :  { %3668 = vmatmul.f32.gmra.mxu2 %v3478_v18  ;;  %3733 = vmatmul.f32.gmra.mxu3 %v3493_v39 }
 0x650   :  { %v1410_v7 = vpop.permute.xlu2 %1409 }
 0x651   :  { %v1361_v34 = vpop.permute.xlu1 %1360  ;;  %vm2026_vm2 = vcmp.eq.s32.totalorder %v1410_v7, %v4768_v51  ;;  %vm2027_vm3 = vcmp.eq.s32.totalorder %v1410_v7, %v4774_v53 }
 0x652   :  { %vm2010_vm4 = vcmp.eq.s32.totalorder %v1361_v34, %v4768_v51  ;;  %vm2011_vm5 = vcmp.eq.s32.totalorder %v1361_v34, %v4774_v53  ;;  %v4224_v50 = vsel %vm2026_vm2, 1.0, %v7578_v8  ;;  %v4225_v0 = vsel %vm2027_vm3, 1.0, %v7578_v8 }
 0x653   :  { %v4208_v33 = vsel %vm2010_vm4, 1.0, %v7578_v8  ;;  %v4209_v14 = vsel %vm2011_vm5, 1.0, %v7578_v8  ;;  %v3267_v9 = vadd.f32 %v4224_v50, %v6819_v25  ;;  %v3282_v44 = vadd.f32 %v4225_v0, %v6821_v20 }
 0x654   :  { %v3506_v3 = vadd.f32 %v4208_v33, %v6895_v61  ;;  %v3521_v47 = vadd.f32 %v4209_v14, %v6898_v36  ;;  %v1567_v14 = vpop.permute.xlu0 %1566 }
 0x658   :  { %v1507_v22 = vpop.permute.xlu2 %1506 }
 0x659   :  { %vm2058_vm8 = vcmp.eq.s32.totalorder %v1507_v22, %v4768_v51  ;;  %vm2059_vm9 = vcmp.eq.s32.totalorder %v1507_v22, %v4774_v53  ;;  %v1458_v19 = vpop.permute.xlu1 %1457 }
 0x65a   :  { %vm2042_vm10 = vcmp.eq.s32.totalorder %v1458_v19, %v4768_v51  ;;  %vm2043_vm11 = vcmp.eq.s32.totalorder %v1458_v19, %v4774_v53  ;;  %v4256_v28 = vsel %vm2058_vm8, 1.0, %v7578_v8  ;;  %v4257_v11 = vsel %vm2059_vm9, 1.0, %v7578_v8 }
 0x65b   :  { %v4240_v25 = vsel %vm2042_vm10, 1.0, %v7578_v8  ;;  %v4241_v20 = vsel %vm2043_vm11, 1.0, %v7578_v8  ;;  %v3268_v61 = vadd.f32 %v4256_v28, %v3267_v9  ;;  %v3283_v21 = vadd.f32 %v4257_v11, %v3282_v44 }
 0x65c   :  { %v3507_v36 = vadd.f32 %v4240_v25, %v3506_v3  ;;  %v3522_v52 = vadd.f32 %v4241_v20, %v3521_v47  ;;  %vm2078_vm8 = vcmp.eq.s32.totalorder %v1567_v14, %v4768_v51  ;;  %vm2079_vm9 = vcmp.eq.s32.totalorder %v1567_v14, %v4774_v53 }
 0x65d   :  { %3647 = vmatmul.f32.gmra.mxu0 %v3268_v61  ;;  %3712 = vmatmul.f32.gmra.mxu1 %v3283_v21  ;;  %v4276_v11 = vsel %vm2078_vm8, 1.0, %v7578_v8  ;;  %v4277_v25 = vsel %vm2079_vm9, 1.0, %v7578_v8 }
 0x65e   :  { %v3508_v2 = vadd.f32 %v4272_v59, %v3507_v36  ;;  %v3523_v10 = vadd.f32 %v4273_v27, %v3522_v52 }
 0x660   :  { %3671 = vmatmul.f32.gmra.mxu2 %v3508_v2  ;;  %3736 = vmatmul.f32.gmra.mxu3 %v3523_v10 }
 0x662   :  { %v3633_v23 = vpop.f32.mrf.mxu0  ;;  %v3698_v17 = vpop.f32.mrf.mxu1 }
 0x663   :  { %v3699_v54 = vadd.f32 %v3698_v17, %v3633_v23 }
 0x665   :  { %3746 = vst [vmem:[%s7434_s2] sm:$0xff] %v3699_v54 }
 0x668   :  { %v1416_v35 = vpop.permute.xlu2 %1415 }
 0x669   :  { %v1367_v32 = vpop.permute.xlu1 %1366  ;;  %vm2028_vm12 = vcmp.eq.s32.totalorder %v1416_v35, %v4768_v51  ;;  %vm2029_vm14 = vcmp.eq.s32.totalorder %v1416_v35, %v4774_v53 }
 0x66a   :  { %vm2012_vm13 = vcmp.eq.s32.totalorder %v1367_v32, %v4768_v51  ;;  %vm2013_vm15 = vcmp.eq.s32.totalorder %v1367_v32, %v4774_v53  ;;  %v4226_v30 = vsel %vm2028_vm12, 1.0, %v7578_v8  ;;  %v4227_v56 = vsel %vm2029_vm14, 1.0, %v7578_v8 }
 0x66b   :  { %v4210_v31 = vsel %vm2012_vm13, 1.0, %v7578_v8  ;;  %v4211_v4 = vsel %vm2013_vm15, 1.0, %v7578_v8  ;;  %v3297_v26 = vadd.f32 %v4226_v30, %v7111_v37  ;;  %v3312_v6 = vadd.f32 %v4227_v56, %v7114_v42 }
 0x66c   :  { %v3536_v40 = vadd.f32 %v4210_v31, %v6961_v5  ;;  %v3551_v58 = vadd.f32 %v4211_v4, %v6964_v49 }
 0x66d   :  { %v3657_v46 = vpop.f32.mrf.mxu2  ;;  %v3722_v15 = vpop.f32.mrf.mxu3 }
 0x66e   :  { %v3723_v55 = vadd.f32 %v3722_v15, %v3657_v46 }
 0x670   :  { %3754 = vst [vmem:[%s7434_s2 + $0x40] sm:$0xff] %v3723_v55  ;;  %v1513_v57 = vpop.permute.xlu2 %1512 }
 0x671   :  { %vm2060_vm2 = vcmp.eq.s32.totalorder %v1513_v57, %v4768_v51  ;;  %vm2061_vm3 = vcmp.eq.s32.totalorder %v1513_v57, %v4774_v53  ;;  %v1464_v45 = vpop.permute.xlu1 %1463 }
 0x672   :  { %vm2044_vm4 = vcmp.eq.s32.totalorder %v1464_v45, %v4768_v51  ;;  %vm2045_vm5 = vcmp.eq.s32.totalorder %v1464_v45, %v4774_v53  ;;  %v4258_v37 = vsel %vm2060_vm2, 1.0, %v7578_v8  ;;  %v4259_v42 = vsel %vm2061_vm3, 1.0, %v7578_v8 }
 0x673   :  { %v4242_v38 = vsel %vm2044_vm4, 1.0, %v7578_v8  ;;  %v4243_v16 = vsel %vm2045_vm5, 1.0, %v7578_v8  ;;  %v3298_v5 = vadd.f32 %v4258_v37, %v3297_v26  ;;  %v3313_v43 = vadd.f32 %v4259_v42, %v3312_v6 }
 0x674   :  { %v3537_v49 = vadd.f32 %v4242_v38, %v3536_v40  ;;  %v3552_v62 = vadd.f32 %v4243_v16, %v3551_v58 }
 0x675   :  { %3650 = vmatmul.f32.gmra.mxu0 %v3298_v5  ;;  %3715 = vmatmul.f32.gmra.mxu1 %v3313_v43 }
 0x676   :  { %v3538_v48 = vadd.f32 %v4274_v41, %v3537_v49  ;;  %v3553_v13 = vadd.f32 %v4275_v60, %v3552_v62 }
 0x678   :  { %3674 = vmatmul.f32.gmra.mxu2 %v3538_v48  ;;  %3739 = vmatmul.f32.gmra.mxu3 %v3553_v13 }
 0x67a   :  { %v3636_v18 = vpop.f32.mrf.mxu0  ;;  %v3701_v39 = vpop.f32.mrf.mxu1 }
 0x67b   :  { %v3702_v7 = vadd.f32 %v3701_v39, %v3636_v18 }
 0x67d   :  { %3747 = vst [vmem:[%s7434_s2 + $0x8] sm:$0xff] %v3702_v7 }
 0x680   :  { %v1519_v59 = vpop.permute.xlu2 %1518 }
 0x681   :  { %v1373_v34 = vpop.permute.xlu1 %1372  ;;  %vm2062_vm12 = vcmp.eq.s32.totalorder %v1519_v59, %v4768_v51  ;;  %vm2063_vm14 = vcmp.eq.s32.totalorder %v1519_v59, %v4774_v53 }
 0x682   :  { %vm2014_vm6 = vcmp.eq.s32.totalorder %v1373_v34, %v4768_v51  ;;  %vm2015_vm7 = vcmp.eq.s32.totalorder %v1373_v34, %v4774_v53  ;;  %v4260_v23 = vsel %vm2062_vm12, 1.0, %v7578_v8  ;;  %v4261_v17 = vsel %vm2063_vm14, 1.0, %v7578_v8 }
 0x683   :  { %v3660_v50 = vpop.f32.mrf.mxu2  ;;  %v3725_v0 = vpop.f32.mrf.mxu3  ;;  %v4212_v22 = vsel %vm2014_vm6, 1.0, %v7578_v8  ;;  %v4213_v9 = vsel %vm2015_vm7, 1.0, %v7578_v8 }
 0x684   :  { %v3726_v33 = vadd.f32 %v3725_v0, %v3660_v50  ;;  %v3566_v3 = vadd.f32 %v4212_v22, %v6919_v12  ;;  %v3581_v47 = vadd.f32 %v4213_v9, %v6922_v1 }
 0x686   :  { %3755 = vst [vmem:[%s7434_s2 + $0x48] sm:$0xff] %v3726_v33 }
 0x689   :  { %v1470_v44 = vpop.permute.xlu1 %1469 }
 0x68a   :  { %vm2046_vm10 = vcmp.eq.s32.totalorder %v1470_v44, %v4768_v51  ;;  %vm2047_vm11 = vcmp.eq.s32.totalorder %v1470_v44, %v4774_v53 }
 0x68b   :  { %v4244_v19 = vsel %vm2046_vm10, 1.0, %v7578_v8  ;;  %v4245_v28 = vsel %vm2047_vm11, 1.0, %v7578_v8 }
 0x68c   :  { %v3567_v20 = vadd.f32 %v4244_v19, %v3566_v3  ;;  %v3582_v61 = vadd.f32 %v4245_v28, %v3581_v47 }
 0x68e   :  { %v3568_v21 = vadd.f32 %v4276_v11, %v3567_v20  ;;  %v3583_v36 = vadd.f32 %v4277_v25, %v3582_v61 }
 0x690   :  { %3677 = vmatmul.f32.gmra.mxu2 %v3568_v21  ;;  %3742 = vmatmul.f32.gmra.mxu3 %v3583_v36 }
 0x692   :  { %v3639_v12 = vpop.f32.mrf.mxu0  ;;  %v3704_v1 = vpop.f32.mrf.mxu1 }
 0x693   :  { %v3705_v52 = vadd.f32 %v3704_v1, %v3639_v12 }
 0x695   :  { %3748 = vst [vmem:[%s7434_s2 + $0x10] sm:$0xff] %v3705_v52 }
 0x699   :  { %v1422_v27 = vpop.permute.xlu1 %1421 }
 0x69a   :  { %vm2030_vm13 = vcmp.eq.s32.totalorder %v1422_v27, %v4768_v51  ;;  %vm2031_vm15 = vcmp.eq.s32.totalorder %v1422_v27, %v4774_v53 }
 0x69b   :  { %v4228_v2 = vsel %vm2030_vm13, 1.0, %v7578_v8  ;;  %v4229_v10 = vsel %vm2031_vm15, 1.0, %v7578_v8  ;;  %v3663_v54 = vpop.f32.mrf.mxu2  ;;  %v3728_v35 = vpop.f32.mrf.mxu3 }
 0x69c   :  { %v3327_v32 = vadd.f32 %v4228_v2, %v7058_v63  ;;  %v3342_v29 = vadd.f32 %v4229_v10, %v7061_v24  ;;  %v3729_v30 = vadd.f32 %v3728_v35, %v3663_v54 }
 0x69e   :  { %3756 = vst [vmem:[%s7434_s2 + $0x50] sm:$0xff] %v3729_v30  ;;  %v3328_v51 = vadd.f32 %v4260_v23, %v3327_v32  ;;  %v3343_v53 = vadd.f32 %v4261_v17, %v3342_v29 }
 0x6a0   :  { %3653 = vmatmul.f32.gmra.mxu0 %v3328_v51  ;;  %3718 = vmatmul.f32.gmra.mxu1 %v3343_v53 }
 0x6aa   :  { %v3642_v56 = vpop.f32.mrf.mxu0  ;;  %v3707_v46 = vpop.f32.mrf.mxu1 }
 0x6ab   :  { %v3708_v15 = vadd.f32 %v3707_v46, %v3642_v56 }
 0x6ad   :  { %3749 = vst [vmem:[%s7434_s2 + $0x18] sm:$0xff] %v3708_v15 }
 0x6b3   :  { %v3666_v8 = vpop.f32.mrf.mxu2  ;;  %v3731_v63 = vpop.f32.mrf.mxu3 }
 0x6b4   :  { %v3732_v31 = vadd.f32 %v3731_v63, %v3666_v8 }
 0x6b6   :  { %3757 = vst [vmem:[%s7434_s2 + $0x58] sm:$0xff] %v3732_v31 }
 0x6c2   :  { %v3645_v24 = vpop.f32.mrf.mxu0  ;;  %v3710_v4 = vpop.f32.mrf.mxu1 }
 0x6c3   :  { %v3711_v55 = vadd.f32 %v3710_v4, %v3645_v24 }
 0x6c5   :  { %3750 = vst [vmem:[%s7434_s2 + $0x20] sm:$0xff] %v3711_v55 }
 0x6cb   :  { %v3669_v57 = vpop.f32.mrf.mxu2  ;;  %v3734_v26 = vpop.f32.mrf.mxu3 }
 0x6cc   :  { %v3735_v6 = vadd.f32 %v3734_v26, %v3669_v57 }
 0x6ce   :  { %3758 = vst [vmem:[%s7434_s2 + $0x60] sm:$0xff] %v3735_v6 }
 0x6da   :  { %v3648_v41 = vpop.f32.mrf.mxu0  ;;  %v3713_v60 = vpop.f32.mrf.mxu1 }
 0x6db   :  { %v3714_v40 = vadd.f32 %v3713_v60, %v3648_v41 }
 0x6dd   :  { %3751 = vst [vmem:[%s7434_s2 + $0x28] sm:$0xff] %v3714_v40 }
 0x6e3   :  { %v3672_v58 = vpop.f32.mrf.mxu2  ;;  %v3737_v45 = vpop.f32.mrf.mxu3 }
 0x6e4   :  { %v3738_v37 = vadd.f32 %v3737_v45, %v3672_v58 }
 0x6e6   :  { %3759 = vst [vmem:[%s7434_s2 + $0x68] sm:$0xff] %v3738_v37 }
 0x6f2   :  { %v3651_v42 = vpop.f32.mrf.mxu0  ;;  %v3716_v38 = vpop.f32.mrf.mxu1 }
 0x6f3   :  { %v3717_v16 = vadd.f32 %v3716_v38, %v3651_v42 }
 0x6f5   :  { %3752 = vst [vmem:[%s7434_s2 + $0x30] sm:$0xff] %v3717_v16 }
 0x6fb   :  { %v3675_v5 = vpop.f32.mrf.mxu2  ;;  %v3740_v43 = vpop.f32.mrf.mxu3 }
 0x6fc   :  { %v3741_v49 = vadd.f32 %v3740_v43, %v3675_v5 }
 0x6fe   :  { %3760 = vst [vmem:[%s7434_s2 + $0x70] sm:$0xff] %v3741_v49 }
 0x713   :  { %v3678_v62 = vpop.f32.mrf.mxu2  ;;  %v3743_v48 = vpop.f32.mrf.mxu3 }
 0x714   :  { %v3744_v13 = vadd.f32 %v3743_v48, %v3678_v62 }
 0x716   :  { %3761 = vst [vmem:[%s7434_s2 + $0x78] sm:$0xff] %v3744_v13 }
 0x71d   :  { %v3654_v18 = vpop.f32.mrf.mxu0  ;;  %v3719_v39 = vpop.f32.mrf.mxu1 }
 0x71e   :  { %v3720_v7 = vadd.f32 %v3719_v39, %v3654_v18 }
 0x720   :  { %3753 = vst [vmem:[%s7434_s2 + $0x38] sm:$0xff] %v3720_v7 }

</bundles_post_ra>
